<compile_context>
chip_gen: v7x
topology: tpu7x:2x2x1
jax: 0.10.0
libtpu: 0.0.40
codegen_flags: <defaults>
</compile_context>

<pallas_src>
import jax
import jax.numpy as jnp
from jax.experimental import pallas as pl
from jax.experimental.pallas import tpu as pltpu


def _vmem_capacity_bytes():
    try:
        cap = getattr(pltpu.get_tpu_info(), "vmem_capacity_bytes", None)
        if cap:
            return int(cap)
    except Exception:
        pass
    return 64 * 1024 * 1024  # conservative (v7x-sized) fallback


def cbam_pallas(x, w1, w2, w_sp):
    """x: (B, C, H, W); w1, w2: (C, Cr); w_sp: (2*K*K,) flattened conv weight."""
    B, C, H, W = x.shape
    HW = H * W
    HWp = ((HW + 127) // 128) * 128              # lane-dense flat spatial dim
    Cr = w1.shape[1]
    KS = int(round((w_sp.shape[0] // 2) ** 0.5))
    PAD = (KS - 1) // 2

    # ---- generation-aware batch blocking -------------------------------------
    vmem_cap = _vmem_capacity_bytes()
    big_vmem = vmem_cap >= 96 * 1024 * 1024      # v5e / v6e: 128 MiB VMEM, 1 TC
    block_budget = (12 if big_vmem else 5) * 1024 * 1024
    vmem_limit = (96 if big_vmem else 32) * 1024 * 1024

    per_batch_bytes = C * HWp * x.dtype.itemsize
    bt = max(1, min(B, block_budget // max(per_batch_bytes, 1)))
    while B % bt:                                # bt must divide B
        bt -= 1
    if (not big_vmem) and B >= 2:
        # v7x: batch axis is sharded over 2 TensorCores -> keep >= 2 grid steps
        # and (when B is even) an even step count so both cores get equal work.
        while bt > 1 and ((B // bt) < 2 or (B % 2 == 0 and (B // bt) % 2)):
            bt -= 1
            while B % bt:
                bt -= 1

    inv_hw = 1.0 / float(HW)
    inv_c = 1.0 / float(C)
    pad_lanes = HWp != HW

    # ---- boundary masks for the flat KxK conv (built once, outside the kernel) ----
    pos = jnp.arange(HWp, dtype=jnp.int32)[None, :]         # (1, HWp) flat index
    yy = pos // W
    xx = pos % W
    dd = jnp.arange(KS, dtype=jnp.int32)[:, None] - PAD     # (KS, 1) tap offsets
    ymask = (yy + dd >= 0) & (yy + dd < H)                   # (KS, HWp)
    xmask = (xx + dd >= 0) & (xx + dd < W)                   # (KS, HWp)
    lane_valid = pos < HW                                    # (1, HWp)
    masks = jnp.concatenate([ymask, xmask, lane_valid], axis=0).astype(jnp.float32)

    def kernel(x_ref, w1_ref, w2_ref, m_ref, wsp_ref, o_ref):
        # x_ref/o_ref: (bt, C, HWp)   w1_ref/w2_ref: (C, Cr)
        # m_ref: (2*KS+1, HWp) f32    wsp_ref: (2*KS*KS,) f32 in SMEM
        w1v = w1_ref[...].astype(jnp.float32)                # (C, Cr), resident
        w2v = w2_ref[...].astype(jnp.float32)                # (C, Cr)

        # hoisted per-step constants (shared by every batch and every tap)
        ymf = [m_ref[k:k + 1, :] for k in range(KS)]          # KS x (1, HWp)
        xmf = [m_ref[KS + k:KS + k + 1, :] for k in range(KS)]
        if pad_lanes:
            valid = m_ref[2 * KS:2 * KS + 1, :] > 0.5         # (1, HWp) bool

        def mlp(v):  # (C,1) f32 -> (C,1) f32; transpose-free (VPU broadcast + reduce)
            h = jnp.maximum(jnp.sum(w1v * v, axis=0, keepdims=True), 0.0)  # (1, Cr)
            return jnp.sum(w2v * h, axis=1, keepdims=True)                 # (C, 1)

        def body(b, carry):
            xb = x_ref[b]                                     # (C, HWp), native dtype

            # -------- channel attention: global avg / max pool -> shared MLP --------
            avg_c = jnp.sum(xb, axis=1, keepdims=True, dtype=jnp.float32) * inv_hw
            if pad_lanes:
                xmx = jnp.where(valid, xb, jnp.array(-jnp.inf, dtype=xb.dtype))
            else:
                xmx = xb
            max_c = jnp.max(xmx, axis=1, keepdims=True).astype(jnp.float32)
            gate_c = jax.nn.sigmoid(mlp(avg_c) + mlp(max_c))                 # (C, 1)

            # stream the channel-gated tensor through the resident output block
            # instead of keeping the (C, HWp) slab live in vregs across the
            # spatial stage (keeps vreg pressure flat for large C*HW).
            o_ref[b] = (xb * gate_c.astype(xb.dtype)).astype(o_ref.dtype)

            # -------- spatial attention: channel mean / max -> KxK conv --------
            ob = o_ref[b]                                     # (C, HWp)
            avg_sp = jnp.sum(ob, axis=0, keepdims=True, dtype=jnp.float32) * inv_c
            max_sp = jnp.max(ob, axis=0, keepdims=True).astype(jnp.float32)

            # flat conv: tap (ky, kx) reads source pos + (dy*W + dx) via a lane roll
            # (XLU) masked by the precomputed boundary masks (VPU). No padded
            # scratch, no per-row scatter/gather, no misaligned tap slices.
            acc = jnp.zeros((1, HWp), jnp.float32)
            for ky in range(KS):
                for kx in range(KS):
                    off = (ky - PAD) * W + (kx - PAD)
                    if off % HWp == 0:
                        ra, rm = avg_sp, max_sp
                    else:
                        sh = (-off) % HWp
                        ra = pltpu.roll(avg_sp, shift=sh, axis=1)
                        rm = pltpu.roll(max_sp, shift=sh, axis=1)
                    w_a = wsp_ref[ky * KS + kx]                    # avg-channel weight
                    w_m = wsp_ref[KS * KS + ky * KS + kx]          # max-channel weight
                    acc = acc + (w_a * ra + w_m * rm) * (ymf[ky] * xmf[kx])
            gate_sp = jax.nn.sigmoid(acc)                                    # (1, HWp)

            # in-place final multiply on the already-resident output block
            o_ref[b] = (o_ref[b] * gate_sp.astype(o_ref.dtype)).astype(o_ref.dtype)
            return carry

        jax.lax.fori_loop(0, bt, body, 0)

    x3 = x.reshape(B, C, HW)
    if pad_lanes:
        x3 = jnp.pad(x3, ((0, 0), (0, 0), (0, HWp - HW)))

    out3 = pl.pallas_call(
        kernel,
        out_shape=jax.ShapeDtypeStruct((B, C, HWp), x.dtype),
        grid_spec=pltpu.PrefetchScalarGridSpec(
            num_scalar_prefetch=0,
            grid=(B // bt,),
            in_specs=[
                pl.BlockSpec((bt, C, HWp), lambda i: (i, 0, 0)),
                pl.BlockSpec((C, Cr), lambda i: (0, 0)),
                pl.BlockSpec((C, Cr), lambda i: (0, 0)),
                pl.BlockSpec((2 * KS + 1, HWp), lambda i: (0, 0)),
                pl.BlockSpec(memory_space=pltpu.MemorySpace.SMEM),
            ],
            out_specs=pl.BlockSpec((bt, C, HWp), lambda i: (i, 0, 0)),
        ),
        compiler_params=pltpu.CompilerParams(
            dimension_semantics=("parallel",),
            vmem_limit_bytes=vmem_limit,
        ),
    )(x3, w1, w2, masks, w_sp)

    if pad_lanes:
        out3 = out3[:, :, :HW]
    return out3.reshape(B, C, H, W)


def cbam_ref(x, w1, w2, w_sp):
    """Pure-JAX reference matching the PyTorch CBAM forward."""
    B, C, H, W = x.shape
    KS = int(round((w_sp.shape[0] // 2) ** 0.5))
    pad = (KS - 1) // 2
    avg = jnp.mean(x, axis=(2, 3))                       # (B, C)
    mx = jnp.max(x, axis=(2, 3))                         # (B, C)

    def mlp(v):                                          # (B, C) -> (B, C)
        return jnp.maximum(v @ w1, 0.0) @ w2.T

    gate_c = jax.nn.sigmoid(mlp(avg) + mlp(mx))          # (B, C)
    out1 = x * gate_c[:, :, None, None]

    avg_sp = jnp.mean(out1, axis=1, keepdims=True)
    max_sp = jnp.max(out1, axis=1, keepdims=True)
    cat = jnp.concatenate([avg_sp, max_sp], axis=1)      # (B, 2, H, W)
    conv_w = w_sp.reshape(1, 2, KS, KS)
    sp = jax.lax.conv_general_dilated(
        cat, conv_w, window_strides=(1, 1),
        padding=((pad, pad), (pad, pad)),
        dimension_numbers=("NCHW", "OIHW", "NCHW"))
    gate_sp = jax.nn.sigmoid(sp)                         # (B, 1, H, W)
    return out1 * gate_sp


if __name__ == "__main__":
    B, C, H, W = 2, 32, 16, 16
    reduction = 16
    Cr = C // reduction
    KS = 7

    key = jax.random.PRNGKey(0)
    kx, k1, k2, k3 = jax.random.split(key, 4)

    x = jax.random.normal(kx, (B, C, H, W), dtype=jnp.float32)
    # ChannelAttention fc (bias=False): W1 (Cr,C) stored transposed; W2 (C,Cr) as-is.
    w1 = jax.random.normal(k1, (C, Cr), dtype=jnp.float32) * (1.0 / jnp.sqrt(C))
    w2 = jax.random.normal(k2, (C, Cr), dtype=jnp.float32) * (1.0 / jnp.sqrt(Cr))
    # SpatialAttention conv weight (1, 2, 7, 7), flattened.
    w_sp = jax.random.normal(k3, (2 * KS * KS,), dtype=jnp.float32) * 0.1

    out = jax.block_until_ready(cbam_pallas(x, w1, w2, w_sp))
    ref = cbam_ref(x, w1, w2, w_sp)

    assert out.shape == x.shape
    err = float(jnp.max(jnp.abs(out - ref)))
    assert jnp.allclose(out, ref, atol=5e-5, rtol=5e-5), err
    print("KERNEL_OK")
</pallas_src>

<mosaic_0001>
module attributes {stable_mosaic.version = 11 : i64} {
  func.func @kernel(%arg0: i32, %arg1: memref<1x32x256xf32, #tpu.memory_space<vmem>>, %arg2: memref<32x2xf32, #tpu.memory_space<vmem>>, %arg3: memref<32x2xf32, #tpu.memory_space<vmem>>, %arg4: memref<15x256xf32, #tpu.memory_space<vmem>>, %arg5: memref<98xf32, #tpu.memory_space<smem>>, %arg6: memref<1x32x256xf32, #tpu.memory_space<vmem>>) attributes {dimension_semantics = [#tpu.dimension_semantics<parallel>], iteration_bounds = array<i64: 2>, scalar_prefetch = 0 : i64, scratch_operands = 0 : i64, tpu.core_type = #tpu.core_type<tc>, window_params = [{transform_indices = @transform_0, window_bounds = array<i64: 1, 32, 256>}, {pipeline_mode = #tpu.pipeline_mode<synchronous>, transform_indices = @transform_1, window_bounds = array<i64: 32, 2>}, {pipeline_mode = #tpu.pipeline_mode<synchronous>, transform_indices = @transform_2, window_bounds = array<i64: 32, 2>}, {pipeline_mode = #tpu.pipeline_mode<synchronous>, transform_indices = @transform_3, window_bounds = array<i64: 15, 256>}, {transform_indices = @transform_4, window_bounds = array<i64: 98>}, {transform_indices = @transform_5, window_bounds = array<i64: 1, 32, 256>}]} {
    %c0 = arith.constant 0 : index
    %c0_0 = arith.constant 0 : index
    %0 = vector.load %arg2[%c0, %c0_0] : memref<32x2xf32, #tpu.memory_space<vmem>>, vector<32x2xf32>
    %c0_1 = arith.constant 0 : index
    %c0_2 = arith.constant 0 : index
    %1 = vector.load %arg3[%c0_1, %c0_2] : memref<32x2xf32, #tpu.memory_space<vmem>>, vector<32x2xf32>
    %c0_3 = arith.constant 0 : index
    %c0_4 = arith.constant 0 : index
    %2 = vector.load %arg4[%c0_3, %c0_4] : memref<15x256xf32, #tpu.memory_space<vmem>>, vector<1x256xf32>
    %c1 = arith.constant 1 : index
    %c0_5 = arith.constant 0 : index
    %3 = vector.load %arg4[%c1, %c0_5] : memref<15x256xf32, #tpu.memory_space<vmem>>, vector<1x256xf32>
    %c2 = arith.constant 2 : index
    %c0_6 = arith.constant 0 : index
    %4 = vector.load %arg4[%c2, %c0_6] : memref<15x256xf32, #tpu.memory_space<vmem>>, vector<1x256xf32>
    %c3 = arith.constant 3 : index
    %c0_7 = arith.constant 0 : index
    %5 = vector.load %arg4[%c3, %c0_7] : memref<15x256xf32, #tpu.memory_space<vmem>>, vector<1x256xf32>
    %c4 = arith.constant 4 : index
    %c0_8 = arith.constant 0 : index
    %6 = vector.load %arg4[%c4, %c0_8] : memref<15x256xf32, #tpu.memory_space<vmem>>, vector<1x256xf32>
    %c5 = arith.constant 5 : index
    %c0_9 = arith.constant 0 : index
    %7 = vector.load %arg4[%c5, %c0_9] : memref<15x256xf32, #tpu.memory_space<vmem>>, vector<1x256xf32>
    %c6 = arith.constant 6 : index
    %c0_10 = arith.constant 0 : index
    %8 = vector.load %arg4[%c6, %c0_10] : memref<15x256xf32, #tpu.memory_space<vmem>>, vector<1x256xf32>
    %c7 = arith.constant 7 : index
    %c0_11 = arith.constant 0 : index
    %9 = vector.load %arg4[%c7, %c0_11] : memref<15x256xf32, #tpu.memory_space<vmem>>, vector<1x256xf32>
    %c8 = arith.constant 8 : index
    %c0_12 = arith.constant 0 : index
    %10 = vector.load %arg4[%c8, %c0_12] : memref<15x256xf32, #tpu.memory_space<vmem>>, vector<1x256xf32>
    %c9 = arith.constant 9 : index
    %c0_13 = arith.constant 0 : index
    %11 = vector.load %arg4[%c9, %c0_13] : memref<15x256xf32, #tpu.memory_space<vmem>>, vector<1x256xf32>
    %c10 = arith.constant 10 : index
    %c0_14 = arith.constant 0 : index
    %12 = vector.load %arg4[%c10, %c0_14] : memref<15x256xf32, #tpu.memory_space<vmem>>, vector<1x256xf32>
    %c11 = arith.constant 11 : index
    %c0_15 = arith.constant 0 : index
    %13 = vector.load %arg4[%c11, %c0_15] : memref<15x256xf32, #tpu.memory_space<vmem>>, vector<1x256xf32>
    %c12 = arith.constant 12 : index
    %c0_16 = arith.constant 0 : index
    %14 = vector.load %arg4[%c12, %c0_16] : memref<15x256xf32, #tpu.memory_space<vmem>>, vector<1x256xf32>
    %c13 = arith.constant 13 : index
    %c0_17 = arith.constant 0 : index
    %15 = vector.load %arg4[%c13, %c0_17] : memref<15x256xf32, #tpu.memory_space<vmem>>, vector<1x256xf32>
    %c0_i32 = arith.constant 0 : i32
    %16 = arith.index_cast %c0_i32 : i32 to index
    %c0_18 = arith.constant 0 : index
    %c0_19 = arith.constant 0 : index
    %17 = vector.load %arg1[%16, %c0_18, %c0_19] : memref<1x32x256xf32, #tpu.memory_space<vmem>>, vector<1x32x256xf32>
    %18 = vector.shape_cast %17 : vector<1x32x256xf32> to vector<32x256xf32>
    %cst = arith.constant dense<0.000000e+00> : vector<32xf32>
    %19 = vector.multi_reduction <add>, %18, %cst [1] : vector<32x256xf32> to vector<32xf32>
    %20 = vector.shape_cast %19 : vector<32xf32> to vector<32x1xf32>
    %cst_20 = arith.constant 3.906250e-03 : f32
    %21 = vector.broadcast %cst_20 : f32 to vector<32x1xf32>
    %22 = arith.mulf %20, %21 : vector<32x1xf32>
    %cst_21 = arith.constant dense<0xFF800000> : vector<32xf32>
    %23 = vector.multi_reduction <maximumf>, %18, %cst_21 [1] : vector<32x256xf32> to vector<32xf32>
    %24 = vector.shape_cast %23 : vector<32xf32> to vector<32x1xf32>
    %25 = vector.broadcast %22 : vector<32x1xf32> to vector<32x2xf32>
    %26 = arith.mulf %0, %25 : vector<32x2xf32>
    %cst_22 = arith.constant dense<0.000000e+00> : vector<2xf32>
    %27 = vector.multi_reduction <add>, %26, %cst_22 [0] : vector<32x2xf32> to vector<2xf32>
    %28 = vector.shape_cast %27 : vector<2xf32> to vector<1x2xf32>
    %cst_23 = arith.constant 0.000000e+00 : f32
    %29 = vector.broadcast %cst_23 : f32 to vector<1x2xf32>
    %30 = arith.maximumf %28, %29 : vector<1x2xf32>
    %31 = vector.broadcast %30 : vector<1x2xf32> to vector<32x2xf32>
    %32 = arith.mulf %1, %31 : vector<32x2xf32>
    %cst_24 = arith.constant dense<0.000000e+00> : vector<32xf32>
    %33 = vector.multi_reduction <add>, %32, %cst_24 [1] : vector<32x2xf32> to vector<32xf32>
    %34 = vector.shape_cast %33 : vector<32xf32> to vector<32x1xf32>
    %35 = vector.broadcast %24 : vector<32x1xf32> to vector<32x2xf32>
    %36 = arith.mulf %0, %35 : vector<32x2xf32>
    %cst_25 = arith.constant dense<0.000000e+00> : vector<2xf32>
    %37 = vector.multi_reduction <add>, %36, %cst_25 [0] : vector<32x2xf32> to vector<2xf32>
    %38 = vector.shape_cast %37 : vector<2xf32> to vector<1x2xf32>
    %cst_26 = arith.constant 0.000000e+00 : f32
    %39 = vector.broadcast %cst_26 : f32 to vector<1x2xf32>
    %40 = arith.maximumf %38, %39 : vector<1x2xf32>
    %41 = vector.broadcast %40 : vector<1x2xf32> to vector<32x2xf32>
    %42 = arith.mulf %1, %41 : vector<32x2xf32>
    %cst_27 = arith.constant dense<0.000000e+00> : vector<32xf32>
    %43 = vector.multi_reduction <add>, %42, %cst_27 [1] : vector<32x2xf32> to vector<32xf32>
    %44 = vector.shape_cast %43 : vector<32xf32> to vector<32x1xf32>
    %45 = arith.addf %34, %44 : vector<32x1xf32>
    %46 = arith.negf %45 : vector<32x1xf32>
    %47 = math.exp %46 : vector<32x1xf32>
    %cst_28 = arith.constant 1.000000e+00 : f32
    %48 = vector.broadcast %cst_28 : f32 to vector<32x1xf32>
    %49 = arith.addf %48, %47 : vector<32x1xf32>
    %50 = arith.divf %48, %49 : vector<32x1xf32>
    %51 = vector.broadcast %50 : vector<32x1xf32> to vector<32x256xf32>
    %52 = arith.mulf %18, %51 : vector<32x256xf32>
    %53 = arith.index_cast %c0_i32 : i32 to index
    %c0_29 = arith.constant 0 : index
    %c0_30 = arith.constant 0 : index
    %54 = vector.load %arg6[%53, %c0_29, %c0_30] : memref<1x32x256xf32, #tpu.memory_space<vmem>>, vector<1x32x256xf32>
    %55 = vector.shape_cast %54 : vector<1x32x256xf32> to vector<32x256xf32>
    %56 = vector.shape_cast %52 : vector<32x256xf32> to vector<1x32x256xf32>
    tpu.vector_store %arg6[%53, %c0_29, %c0_30], %56 {strides = array<i32>} : memref<1x32x256xf32, #tpu.memory_space<vmem>>, vector<1x32x256xf32>,
    %57 = arith.index_cast %c0_i32 : i32 to index
    %c0_31 = arith.constant 0 : index
    %c0_32 = arith.constant 0 : index
    %58 = vector.load %arg6[%57, %c0_31, %c0_32] : memref<1x32x256xf32, #tpu.memory_space<vmem>>, vector<1x32x256xf32>
    %59 = vector.shape_cast %58 : vector<1x32x256xf32> to vector<32x256xf32>
    %cst_33 = arith.constant dense<0.000000e+00> : vector<256xf32>
    %60 = vector.multi_reduction <add>, %59, %cst_33 [0] : vector<32x256xf32> to vector<256xf32>
    %61 = vector.shape_cast %60 : vector<256xf32> to vector<1x256xf32>
    %cst_34 = arith.constant 3.125000e-02 : f32
    %62 = vector.broadcast %cst_34 : f32 to vector<1x256xf32>
    %63 = arith.mulf %61, %62 : vector<1x256xf32>
    %cst_35 = arith.constant dense<0xFF800000> : vector<256xf32>
    %64 = vector.multi_reduction <maximumf>, %59, %cst_35 [0] : vector<32x256xf32> to vector<256xf32>
    %65 = vector.shape_cast %64 : vector<256xf32> to vector<1x256xf32>
    %cst_36 = arith.constant 0.000000e+00 : f32
    %66 = vector.broadcast %cst_36 : f32 to vector<1x256xf32>
    %c51_i32 = arith.constant 51 : i32
    %67 = tpu.dynamic_rotate %63 by %c51_i32 dim 1 : vector<1x256xf32>, i32 -> vector<1x256xf32>
    %c51_i32_37 = arith.constant 51 : i32
    %68 = tpu.dynamic_rotate %65 by %c51_i32_37 dim 1 : vector<1x256xf32>, i32 -> vector<1x256xf32>
    %c0_38 = arith.constant 0 : index
    %69 = memref.load %arg5[%c0_38] : memref<98xf32, #tpu.memory_space<smem>>
    %c49 = arith.constant 49 : index
    %70 = memref.load %arg5[%c49] : memref<98xf32, #tpu.memory_space<smem>>
    %71 = vector.broadcast %69 : f32 to vector<1x256xf32>
    %72 = arith.mulf %71, %67 : vector<1x256xf32>
    %73 = vector.broadcast %70 : f32 to vector<1x256xf32>
    %74 = arith.mulf %73, %68 : vector<1x256xf32>
    %75 = arith.addf %72, %74 : vector<1x256xf32>
    %76 = arith.mulf %2, %9 : vector<1x256xf32>
    %77 = arith.mulf %75, %76 : vector<1x256xf32>
    %78 = arith.addf %66, %77 : vector<1x256xf32>
    %c50_i32 = arith.constant 50 : i32
    %79 = tpu.dynamic_rotate %63 by %c50_i32 dim 1 : vector<1x256xf32>, i32 -> vector<1x256xf32>
    %c50_i32_39 = arith.constant 50 : i32
    %80 = tpu.dynamic_rotate %65 by %c50_i32_39 dim 1 : vector<1x256xf32>, i32 -> vector<1x256xf32>
    %c1_40 = arith.constant 1 : index
    %81 = memref.load %arg5[%c1_40] : memref<98xf32, #tpu.memory_space<smem>>
    %c50 = arith.constant 50 : index
    %82 = memref.load %arg5[%c50] : memref<98xf32, #tpu.memory_space<smem>>
    %83 = vector.broadcast %81 : f32 to vector<1x256xf32>
    %84 = arith.mulf %83, %79 : vector<1x256xf32>
    %85 = vector.broadcast %82 : f32 to vector<1x256xf32>
    %86 = arith.mulf %85, %80 : vector<1x256xf32>
    %87 = arith.addf %84, %86 : vector<1x256xf32>
    %88 = arith.mulf %2, %10 : vector<1x256xf32>
    %89 = arith.mulf %87, %88 : vector<1x256xf32>
    %90 = arith.addf %78, %89 : vector<1x256xf32>
    %c49_i32 = arith.constant 49 : i32
    %91 = tpu.dynamic_rotate %63 by %c49_i32 dim 1 : vector<1x256xf32>, i32 -> vector<1x256xf32>
    %c49_i32_41 = arith.constant 49 : i32
    %92 = tpu.dynamic_rotate %65 by %c49_i32_41 dim 1 : vector<1x256xf32>, i32 -> vector<1x256xf32>
    %c2_42 = arith.constant 2 : index
    %93 = memref.load %arg5[%c2_42] : memref<98xf32, #tpu.memory_space<smem>>
    %c51 = arith.constant 51 : index
    %94 = memref.load %arg5[%c51] : memref<98xf32, #tpu.memory_space<smem>>
    %95 = vector.broadcast %93 : f32 to vector<1x256xf32>
    %96 = arith.mulf %95, %91 : vector<1x256xf32>
    %97 = vector.broadcast %94 : f32 to vector<1x256xf32>
    %98 = arith.mulf %97, %92 : vector<1x256xf32>
    %99 = arith.addf %96, %98 : vector<1x256xf32>
    %100 = arith.mulf %2, %11 : vector<1x256xf32>
    %101 = arith.mulf %99, %100 : vector<1x256xf32>
    %102 = arith.addf %90, %101 : vector<1x256xf32>
    %c48_i32 = arith.constant 48 : i32
    %103 = tpu.dynamic_rotate %63 by %c48_i32 dim 1 : vector<1x256xf32>, i32 -> vector<1x256xf32>
    %c48_i32_43 = arith.constant 48 : i32
    %104 = tpu.dynamic_rotate %65 by %c48_i32_43 dim 1 : vector<1x256xf32>, i32 -> vector<1x256xf32>
    %c3_44 = arith.constant 3 : index
    %105 = memref.load %arg5[%c3_44] : memref<98xf32, #tpu.memory_space<smem>>
    %c52 = arith.constant 52 : index
    %106 = memref.load %arg5[%c52] : memref<98xf32, #tpu.memory_space<smem>>
    %107 = vector.broadcast %105 : f32 to vector<1x256xf32>
    %108 = arith.mulf %107, %103 : vector<1x256xf32>
    %109 = vector.broadcast %106 : f32 to vector<1x256xf32>
    %110 = arith.mulf %109, %104 : vector<1x256xf32>
    %111 = arith.addf %108, %110 : vector<1x256xf32>
    %112 = arith.mulf %2, %12 : vector<1x256xf32>
    %113 = arith.mulf %111, %112 : vector<1x256xf32>
    %114 = arith.addf %102, %113 : vector<1x256xf32>
    %c47_i32 = arith.constant 47 : i32
    %115 = tpu.dynamic_rotate %63 by %c47_i32 dim 1 : vector<1x256xf32>, i32 -> vector<1x256xf32>
    %c47_i32_45 = arith.constant 47 : i32
    %116 = tpu.dynamic_rotate %65 by %c47_i32_45 dim 1 : vector<1x256xf32>, i32 -> vector<1x256xf32>
    %c4_46 = arith.constant 4 : index
    %117 = memref.load %arg5[%c4_46] : memref<98xf32, #tpu.memory_space<smem>>
    %c53 = arith.constant 53 : index
    %118 = memref.load %arg5[%c53] : memref<98xf32, #tpu.memory_space<smem>>
    %119 = vector.broadcast %117 : f32 to vector<1x256xf32>
    %120 = arith.mulf %119, %115 : vector<1x256xf32>
    %121 = vector.broadcast %118 : f32 to vector<1x256xf32>
    %122 = arith.mulf %121, %116 : vector<1x256xf32>
    %123 = arith.addf %120, %122 : vector<1x256xf32>
    %124 = arith.mulf %2, %13 : vector<1x256xf32>
    %125 = arith.mulf %123, %124 : vector<1x256xf32>
    %126 = arith.addf %114, %125 : vector<1x256xf32>
    %c46_i32 = arith.constant 46 : i32
    %127 = tpu.dynamic_rotate %63 by %c46_i32 dim 1 : vector<1x256xf32>, i32 -> vector<1x256xf32>
    %c46_i32_47 = arith.constant 46 : i32
    %128 = tpu.dynamic_rotate %65 by %c46_i32_47 dim 1 : vector<1x256xf32>, i32 -> vector<1x256xf32>
    %c5_48 = arith.constant 5 : index
    %129 = memref.load %arg5[%c5_48] : memref<98xf32, #tpu.memory_space<smem>>
    %c54 = arith.constant 54 : index
    %130 = memref.load %arg5[%c54] : memref<98xf32, #tpu.memory_space<smem>>
    %131 = vector.broadcast %129 : f32 to vector<1x256xf32>
    %132 = arith.mulf %131, %127 : vector<1x256xf32>
    %133 = vector.broadcast %130 : f32 to vector<1x256xf32>
    %134 = arith.mulf %133, %128 : vector<1x256xf32>
    %135 = arith.addf %132, %134 : vector<1x256xf32>
    %136 = arith.mulf %2, %14 : vector<1x256xf32>
    %137 = arith.mulf %135, %136 : vector<1x256xf32>
    %138 = arith.addf %126, %137 : vector<1x256xf32>
    %c45_i32 = arith.constant 45 : i32
    %139 = tpu.dynamic_rotate %63 by %c45_i32 dim 1 : vector<1x256xf32>, i32 -> vector<1x256xf32>
    %c45_i32_49 = arith.constant 45 : i32
    %140 = tpu.dynamic_rotate %65 by %c45_i32_49 dim 1 : vector<1x256xf32>, i32 -> vector<1x256xf32>
    %c6_50 = arith.constant 6 : index
    %141 = memref.load %arg5[%c6_50] : memref<98xf32, #tpu.memory_space<smem>>
    %c55 = arith.constant 55 : index
    %142 = memref.load %arg5[%c55] : memref<98xf32, #tpu.memory_space<smem>>
    %143 = vector.broadcast %141 : f32 to vector<1x256xf32>
    %144 = arith.mulf %143, %139 : vector<1x256xf32>
    %145 = vector.broadcast %142 : f32 to vector<1x256xf32>
    %146 = arith.mulf %145, %140 : vector<1x256xf32>
    %147 = arith.addf %144, %146 : vector<1x256xf32>
    %148 = arith.mulf %2, %15 : vector<1x256xf32>
    %149 = arith.mulf %147, %148 : vector<1x256xf32>
    %150 = arith.addf %138, %149 : vector<1x256xf32>
    %c35_i32 = arith.constant 35 : i32
    %151 = tpu.dynamic_rotate %63 by %c35_i32 dim 1 : vector<1x256xf32>, i32 -> vector<1x256xf32>
    %c35_i32_51 = arith.constant 35 : i32
    %152 = tpu.dynamic_rotate %65 by %c35_i32_51 dim 1 : vector<1x256xf32>, i32 -> vector<1x256xf32>
    %c7_52 = arith.constant 7 : index
    %153 = memref.load %arg5[%c7_52] : memref<98xf32, #tpu.memory_space<smem>>
    %c56 = arith.constant 56 : index
    %154 = memref.load %arg5[%c56] : memref<98xf32, #tpu.memory_space<smem>>
    %155 = vector.broadcast %153 : f32 to vector<1x256xf32>
    %156 = arith.mulf %155, %151 : vector<1x256xf32>
    %157 = vector.broadcast %154 : f32 to vector<1x256xf32>
    %158 = arith.mulf %157, %152 : vector<1x256xf32>
    %159 = arith.addf %156, %158 : vector<1x256xf32>
    %160 = arith.mulf %3, %9 : vector<1x256xf32>
    %161 = arith.mulf %159, %160 : vector<1x256xf32>
    %162 = arith.addf %150, %161 : vector<1x256xf32>
    %c34_i32 = arith.constant 34 : i32
    %163 = tpu.dynamic_rotate %63 by %c34_i32 dim 1 : vector<1x256xf32>, i32 -> vector<1x256xf32>
    %c34_i32_53 = arith.constant 34 : i32
    %164 = tpu.dynamic_rotate %65 by %c34_i32_53 dim 1 : vector<1x256xf32>, i32 -> vector<1x256xf32>
    %c8_54 = arith.constant 8 : index
    %165 = memref.load %arg5[%c8_54] : memref<98xf32, #tpu.memory_space<smem>>
    %c57 = arith.constant 57 : index
    %166 = memref.load %arg5[%c57] : memref<98xf32, #tpu.memory_space<smem>>
    %167 = vector.broadcast %165 : f32 to vector<1x256xf32>
    %168 = arith.mulf %167, %163 : vector<1x256xf32>
    %169 = vector.broadcast %166 : f32 to vector<1x256xf32>
    %170 = arith.mulf %169, %164 : vector<1x256xf32>
    %171 = arith.addf %168, %170 : vector<1x256xf32>
    %172 = arith.mulf %3, %10 : vector<1x256xf32>
    %173 = arith.mulf %171, %172 : vector<1x256xf32>
    %174 = arith.addf %162, %173 : vector<1x256xf32>
    %c33_i32 = arith.constant 33 : i32
    %175 = tpu.dynamic_rotate %63 by %c33_i32 dim 1 : vector<1x256xf32>, i32 -> vector<1x256xf32>
    %c33_i32_55 = arith.constant 33 : i32
    %176 = tpu.dynamic_rotate %65 by %c33_i32_55 dim 1 : vector<1x256xf32>, i32 -> vector<1x256xf32>
    %c9_56 = arith.constant 9 : index
    %177 = memref.load %arg5[%c9_56] : memref<98xf32, #tpu.memory_space<smem>>
    %c58 = arith.constant 58 : index
    %178 = memref.load %arg5[%c58] : memref<98xf32, #tpu.memory_space<smem>>
    %179 = vector.broadcast %177 : f32 to vector<1x256xf32>
    %180 = arith.mulf %179, %175 : vector<1x256xf32>
    %181 = vector.broadcast %178 : f32 to vector<1x256xf32>
    %182 = arith.mulf %181, %176 : vector<1x256xf32>
    %183 = arith.addf %180, %182 : vector<1x256xf32>
    %184 = arith.mulf %3, %11 : vector<1x256xf32>
    %185 = arith.mulf %183, %184 : vector<1x256xf32>
    %186 = arith.addf %174, %185 : vector<1x256xf32>
    %c32_i32 = arith.constant 32 : i32
    %187 = tpu.dynamic_rotate %63 by %c32_i32 dim 1 : vector<1x256xf32>, i32 -> vector<1x256xf32>
    %c32_i32_57 = arith.constant 32 : i32
    %188 = tpu.dynamic_rotate %65 by %c32_i32_57 dim 1 : vector<1x256xf32>, i32 -> vector<1x256xf32>
    %c10_58 = arith.constant 10 : index
    %189 = memref.load %arg5[%c10_58] : memref<98xf32, #tpu.memory_space<smem>>
    %c59 = arith.constant 59 : index
    %190 = memref.load %arg5[%c59] : memref<98xf32, #tpu.memory_space<smem>>
    %191 = vector.broadcast %189 : f32 to vector<1x256xf32>
    %192 = arith.mulf %191, %187 : vector<1x256xf32>
    %193 = vector.broadcast %190 : f32 to vector<1x256xf32>
    %194 = arith.mulf %193, %188 : vector<1x256xf32>
    %195 = arith.addf %192, %194 : vector<1x256xf32>
    %196 = arith.mulf %3, %12 : vector<1x256xf32>
    %197 = arith.mulf %195, %196 : vector<1x256xf32>
    %198 = arith.addf %186, %197 : vector<1x256xf32>
    %c31_i32 = arith.constant 31 : i32
    %199 = tpu.dynamic_rotate %63 by %c31_i32 dim 1 : vector<1x256xf32>, i32 -> vector<1x256xf32>
    %c31_i32_59 = arith.constant 31 : i32
    %200 = tpu.dynamic_rotate %65 by %c31_i32_59 dim 1 : vector<1x256xf32>, i32 -> vector<1x256xf32>
    %c11_60 = arith.constant 11 : index
    %201 = memref.load %arg5[%c11_60] : memref<98xf32, #tpu.memory_space<smem>>
    %c60 = arith.constant 60 : index
    %202 = memref.load %arg5[%c60] : memref<98xf32, #tpu.memory_space<smem>>
    %203 = vector.broadcast %201 : f32 to vector<1x256xf32>
    %204 = arith.mulf %203, %199 : vector<1x256xf32>
    %205 = vector.broadcast %202 : f32 to vector<1x256xf32>
    %206 = arith.mulf %205, %200 : vector<1x256xf32>
    %207 = arith.addf %204, %206 : vector<1x256xf32>
    %208 = arith.mulf %3, %13 : vector<1x256xf32>
    %209 = arith.mulf %207, %208 : vector<1x256xf32>
    %210 = arith.addf %198, %209 : vector<1x256xf32>
    %c30_i32 = arith.constant 30 : i32
    %211 = tpu.dynamic_rotate %63 by %c30_i32 dim 1 : vector<1x256xf32>, i32 -> vector<1x256xf32>
    %c30_i32_61 = arith.constant 30 : i32
    %212 = tpu.dynamic_rotate %65 by %c30_i32_61 dim 1 : vector<1x256xf32>, i32 -> vector<1x256xf32>
    %c12_62 = arith.constant 12 : index
    %213 = memref.load %arg5[%c12_62] : memref<98xf32, #tpu.memory_space<smem>>
    %c61 = arith.constant 61 : index
    %214 = memref.load %arg5[%c61] : memref<98xf32, #tpu.memory_space<smem>>
    %215 = vector.broadcast %213 : f32 to vector<1x256xf32>
    %216 = arith.mulf %215, %211 : vector<1x256xf32>
    %217 = vector.broadcast %214 : f32 to vector<1x256xf32>
    %218 = arith.mulf %217, %212 : vector<1x256xf32>
    %219 = arith.addf %216, %218 : vector<1x256xf32>
    %220 = arith.mulf %3, %14 : vector<1x256xf32>
    %221 = arith.mulf %219, %220 : vector<1x256xf32>
    %222 = arith.addf %210, %221 : vector<1x256xf32>
    %c29_i32 = arith.constant 29 : i32
    %223 = tpu.dynamic_rotate %63 by %c29_i32 dim 1 : vector<1x256xf32>, i32 -> vector<1x256xf32>
    %c29_i32_63 = arith.constant 29 : i32
    %224 = tpu.dynamic_rotate %65 by %c29_i32_63 dim 1 : vector<1x256xf32>, i32 -> vector<1x256xf32>
    %c13_64 = arith.constant 13 : index
    %225 = memref.load %arg5[%c13_64] : memref<98xf32, #tpu.memory_space<smem>>
    %c62 = arith.constant 62 : index
    %226 = memref.load %arg5[%c62] : memref<98xf32, #tpu.memory_space<smem>>
    %227 = vector.broadcast %225 : f32 to vector<1x256xf32>
    %228 = arith.mulf %227, %223 : vector<1x256xf32>
    %229 = vector.broadcast %226 : f32 to vector<1x256xf32>
    %230 = arith.mulf %229, %224 : vector<1x256xf32>
    %231 = arith.addf %228, %230 : vector<1x256xf32>
    %232 = arith.mulf %3, %15 : vector<1x256xf32>
    %233 = arith.mulf %231, %232 : vector<1x256xf32>
    %234 = arith.addf %222, %233 : vector<1x256xf32>
    %c19_i32 = arith.constant 19 : i32
    %235 = tpu.dynamic_rotate %63 by %c19_i32 dim 1 : vector<1x256xf32>, i32 -> vector<1x256xf32>
    %c19_i32_65 = arith.constant 19 : i32
    %236 = tpu.dynamic_rotate %65 by %c19_i32_65 dim 1 : vector<1x256xf32>, i32 -> vector<1x256xf32>
    %c14 = arith.constant 14 : index
    %237 = memref.load %arg5[%c14] : memref<98xf32, #tpu.memory_space<smem>>
    %c63 = arith.constant 63 : index
    %238 = memref.load %arg5[%c63] : memref<98xf32, #tpu.memory_space<smem>>
    %239 = vector.broadcast %237 : f32 to vector<1x256xf32>
    %240 = arith.mulf %239, %235 : vector<1x256xf32>
    %241 = vector.broadcast %238 : f32 to vector<1x256xf32>
    %242 = arith.mulf %241, %236 : vector<1x256xf32>
    %243 = arith.addf %240, %242 : vector<1x256xf32>
    %244 = arith.mulf %4, %9 : vector<1x256xf32>
    %245 = arith.mulf %243, %244 : vector<1x256xf32>
    %246 = arith.addf %234, %245 : vector<1x256xf32>
    %c18_i32 = arith.constant 18 : i32
    %247 = tpu.dynamic_rotate %63 by %c18_i32 dim 1 : vector<1x256xf32>, i32 -> vector<1x256xf32>
    %c18_i32_66 = arith.constant 18 : i32
    %248 = tpu.dynamic_rotate %65 by %c18_i32_66 dim 1 : vector<1x256xf32>, i32 -> vector<1x256xf32>
    %c15 = arith.constant 15 : index
    %249 = memref.load %arg5[%c15] : memref<98xf32, #tpu.memory_space<smem>>
    %c64 = arith.constant 64 : index
    %250 = memref.load %arg5[%c64] : memref<98xf32, #tpu.memory_space<smem>>
    %251 = vector.broadcast %249 : f32 to vector<1x256xf32>
    %252 = arith.mulf %251, %247 : vector<1x256xf32>
    %253 = vector.broadcast %250 : f32 to vector<1x256xf32>
    %254 = arith.mulf %253, %248 : vector<1x256xf32>
    %255 = arith.addf %252, %254 : vector<1x256xf32>
    %256 = arith.mulf %4, %10 : vector<1x256xf32>
    %257 = arith.mulf %255, %256 : vector<1x256xf32>
    %258 = arith.addf %246, %257 : vector<1x256xf32>
    %c17_i32 = arith.constant 17 : i32
    %259 = tpu.dynamic_rotate %63 by %c17_i32 dim 1 : vector<1x256xf32>, i32 -> vector<1x256xf32>
    %c17_i32_67 = arith.constant 17 : i32
    %260 = tpu.dynamic_rotate %65 by %c17_i32_67 dim 1 : vector<1x256xf32>, i32 -> vector<1x256xf32>
    %c16 = arith.constant 16 : index
    %261 = memref.load %arg5[%c16] : memref<98xf32, #tpu.memory_space<smem>>
    %c65 = arith.constant 65 : index
    %262 = memref.load %arg5[%c65] : memref<98xf32, #tpu.memory_space<smem>>
    %263 = vector.broadcast %261 : f32 to vector<1x256xf32>
    %264 = arith.mulf %263, %259 : vector<1x256xf32>
    %265 = vector.broadcast %262 : f32 to vector<1x256xf32>
    %266 = arith.mulf %265, %260 : vector<1x256xf32>
    %267 = arith.addf %264, %266 : vector<1x256xf32>
    %268 = arith.mulf %4, %11 : vector<1x256xf32>
    %269 = arith.mulf %267, %268 : vector<1x256xf32>
    %270 = arith.addf %258, %269 : vector<1x256xf32>
    %c16_i32 = arith.constant 16 : i32
    %271 = tpu.dynamic_rotate %63 by %c16_i32 dim 1 : vector<1x256xf32>, i32 -> vector<1x256xf32>
    %c16_i32_68 = arith.constant 16 : i32
    %272 = tpu.dynamic_rotate %65 by %c16_i32_68 dim 1 : vector<1x256xf32>, i32 -> vector<1x256xf32>
    %c17 = arith.constant 17 : index
    %273 = memref.load %arg5[%c17] : memref<98xf32, #tpu.memory_space<smem>>
    %c66 = arith.constant 66 : index
    %274 = memref.load %arg5[%c66] : memref<98xf32, #tpu.memory_space<smem>>
    %275 = vector.broadcast %273 : f32 to vector<1x256xf32>
    %276 = arith.mulf %275, %271 : vector<1x256xf32>
    %277 = vector.broadcast %274 : f32 to vector<1x256xf32>
    %278 = arith.mulf %277, %272 : vector<1x256xf32>
    %279 = arith.addf %276, %278 : vector<1x256xf32>
    %280 = arith.mulf %4, %12 : vector<1x256xf32>
    %281 = arith.mulf %279, %280 : vector<1x256xf32>
    %282 = arith.addf %270, %281 : vector<1x256xf32>
    %c15_i32 = arith.constant 15 : i32
    %283 = tpu.dynamic_rotate %63 by %c15_i32 dim 1 : vector<1x256xf32>, i32 -> vector<1x256xf32>
    %c15_i32_69 = arith.constant 15 : i32
    %284 = tpu.dynamic_rotate %65 by %c15_i32_69 dim 1 : vector<1x256xf32>, i32 -> vector<1x256xf32>
    %c18 = arith.constant 18 : index
    %285 = memref.load %arg5[%c18] : memref<98xf32, #tpu.memory_space<smem>>
    %c67 = arith.constant 67 : index
    %286 = memref.load %arg5[%c67] : memref<98xf32, #tpu.memory_space<smem>>
    %287 = vector.broadcast %285 : f32 to vector<1x256xf32>
    %288 = arith.mulf %287, %283 : vector<1x256xf32>
    %289 = vector.broadcast %286 : f32 to vector<1x256xf32>
    %290 = arith.mulf %289, %284 : vector<1x256xf32>
    %291 = arith.addf %288, %290 : vector<1x256xf32>
    %292 = arith.mulf %4, %13 : vector<1x256xf32>
    %293 = arith.mulf %291, %292 : vector<1x256xf32>
    %294 = arith.addf %282, %293 : vector<1x256xf32>
    %c14_i32 = arith.constant 14 : i32
    %295 = tpu.dynamic_rotate %63 by %c14_i32 dim 1 : vector<1x256xf32>, i32 -> vector<1x256xf32>
    %c14_i32_70 = arith.constant 14 : i32
    %296 = tpu.dynamic_rotate %65 by %c14_i32_70 dim 1 : vector<1x256xf32>, i32 -> vector<1x256xf32>
    %c19 = arith.constant 19 : index
    %297 = memref.load %arg5[%c19] : memref<98xf32, #tpu.memory_space<smem>>
    %c68 = arith.constant 68 : index
    %298 = memref.load %arg5[%c68] : memref<98xf32, #tpu.memory_space<smem>>
    %299 = vector.broadcast %297 : f32 to vector<1x256xf32>
    %300 = arith.mulf %299, %295 : vector<1x256xf32>
    %301 = vector.broadcast %298 : f32 to vector<1x256xf32>
    %302 = arith.mulf %301, %296 : vector<1x256xf32>
    %303 = arith.addf %300, %302 : vector<1x256xf32>
    %304 = arith.mulf %4, %14 : vector<1x256xf32>
    %305 = arith.mulf %303, %304 : vector<1x256xf32>
    %306 = arith.addf %294, %305 : vector<1x256xf32>
    %c13_i32 = arith.constant 13 : i32
    %307 = tpu.dynamic_rotate %63 by %c13_i32 dim 1 : vector<1x256xf32>, i32 -> vector<1x256xf32>
    %c13_i32_71 = arith.constant 13 : i32
    %308 = tpu.dynamic_rotate %65 by %c13_i32_71 dim 1 : vector<1x256xf32>, i32 -> vector<1x256xf32>
    %c20 = arith.constant 20 : index
    %309 = memref.load %arg5[%c20] : memref<98xf32, #tpu.memory_space<smem>>
    %c69 = arith.constant 69 : index
    %310 = memref.load %arg5[%c69] : memref<98xf32, #tpu.memory_space<smem>>
    %311 = vector.broadcast %309 : f32 to vector<1x256xf32>
    %312 = arith.mulf %311, %307 : vector<1x256xf32>
    %313 = vector.broadcast %310 : f32 to vector<1x256xf32>
    %314 = arith.mulf %313, %308 : vector<1x256xf32>
    %315 = arith.addf %312, %314 : vector<1x256xf32>
    %316 = arith.mulf %4, %15 : vector<1x256xf32>
    %317 = arith.mulf %315, %316 : vector<1x256xf32>
    %318 = arith.addf %306, %317 : vector<1x256xf32>
    %c3_i32 = arith.constant 3 : i32
    %319 = tpu.dynamic_rotate %63 by %c3_i32 dim 1 : vector<1x256xf32>, i32 -> vector<1x256xf32>
    %c3_i32_72 = arith.constant 3 : i32
    %320 = tpu.dynamic_rotate %65 by %c3_i32_72 dim 1 : vector<1x256xf32>, i32 -> vector<1x256xf32>
    %c21 = arith.constant 21 : index
    %321 = memref.load %arg5[%c21] : memref<98xf32, #tpu.memory_space<smem>>
    %c70 = arith.constant 70 : index
    %322 = memref.load %arg5[%c70] : memref<98xf32, #tpu.memory_space<smem>>
    %323 = vector.broadcast %321 : f32 to vector<1x256xf32>
    %324 = arith.mulf %323, %319 : vector<1x256xf32>
    %325 = vector.broadcast %322 : f32 to vector<1x256xf32>
    %326 = arith.mulf %325, %320 : vector<1x256xf32>
    %327 = arith.addf %324, %326 : vector<1x256xf32>
    %328 = arith.mulf %5, %9 : vector<1x256xf32>
    %329 = arith.mulf %327, %328 : vector<1x256xf32>
    %330 = arith.addf %318, %329 : vector<1x256xf32>
    %c2_i32 = arith.constant 2 : i32
    %331 = tpu.dynamic_rotate %63 by %c2_i32 dim 1 : vector<1x256xf32>, i32 -> vector<1x256xf32>
    %c2_i32_73 = arith.constant 2 : i32
    %332 = tpu.dynamic_rotate %65 by %c2_i32_73 dim 1 : vector<1x256xf32>, i32 -> vector<1x256xf32>
    %c22 = arith.constant 22 : index
    %333 = memref.load %arg5[%c22] : memref<98xf32, #tpu.memory_space<smem>>
    %c71 = arith.constant 71 : index
    %334 = memref.load %arg5[%c71] : memref<98xf32, #tpu.memory_space<smem>>
    %335 = vector.broadcast %333 : f32 to vector<1x256xf32>
    %336 = arith.mulf %335, %331 : vector<1x256xf32>
    %337 = vector.broadcast %334 : f32 to vector<1x256xf32>
    %338 = arith.mulf %337, %332 : vector<1x256xf32>
    %339 = arith.addf %336, %338 : vector<1x256xf32>
    %340 = arith.mulf %5, %10 : vector<1x256xf32>
    %341 = arith.mulf %339, %340 : vector<1x256xf32>
    %342 = arith.addf %330, %341 : vector<1x256xf32>
    %c1_i32 = arith.constant 1 : i32
    %343 = tpu.dynamic_rotate %63 by %c1_i32 dim 1 : vector<1x256xf32>, i32 -> vector<1x256xf32>
    %c1_i32_74 = arith.constant 1 : i32
    %344 = tpu.dynamic_rotate %65 by %c1_i32_74 dim 1 : vector<1x256xf32>, i32 -> vector<1x256xf32>
    %c23 = arith.constant 23 : index
    %345 = memref.load %arg5[%c23] : memref<98xf32, #tpu.memory_space<smem>>
    %c72 = arith.constant 72 : index
    %346 = memref.load %arg5[%c72] : memref<98xf32, #tpu.memory_space<smem>>
    %347 = vector.broadcast %345 : f32 to vector<1x256xf32>
    %348 = arith.mulf %347, %343 : vector<1x256xf32>
    %349 = vector.broadcast %346 : f32 to vector<1x256xf32>
    %350 = arith.mulf %349, %344 : vector<1x256xf32>
    %351 = arith.addf %348, %350 : vector<1x256xf32>
    %352 = arith.mulf %5, %11 : vector<1x256xf32>
    %353 = arith.mulf %351, %352 : vector<1x256xf32>
    %354 = arith.addf %342, %353 : vector<1x256xf32>
    %c24 = arith.constant 24 : index
    %355 = memref.load %arg5[%c24] : memref<98xf32, #tpu.memory_space<smem>>
    %c73 = arith.constant 73 : index
    %356 = memref.load %arg5[%c73] : memref<98xf32, #tpu.memory_space<smem>>
    %357 = vector.broadcast %355 : f32 to vector<1x256xf32>
    %358 = arith.mulf %357, %63 : vector<1x256xf32>
    %359 = vector.broadcast %356 : f32 to vector<1x256xf32>
    %360 = arith.mulf %359, %65 : vector<1x256xf32>
    %361 = arith.addf %358, %360 : vector<1x256xf32>
    %362 = arith.mulf %5, %12 : vector<1x256xf32>
    %363 = arith.mulf %361, %362 : vector<1x256xf32>
    %364 = arith.addf %354, %363 : vector<1x256xf32>
    %c255_i32 = arith.constant 255 : i32
    %365 = tpu.dynamic_rotate %63 by %c255_i32 dim 1 : vector<1x256xf32>, i32 -> vector<1x256xf32>
    %c255_i32_75 = arith.constant 255 : i32
    %366 = tpu.dynamic_rotate %65 by %c255_i32_75 dim 1 : vector<1x256xf32>, i32 -> vector<1x256xf32>
    %c25 = arith.constant 25 : index
    %367 = memref.load %arg5[%c25] : memref<98xf32, #tpu.memory_space<smem>>
    %c74 = arith.constant 74 : index
    %368 = memref.load %arg5[%c74] : memref<98xf32, #tpu.memory_space<smem>>
    %369 = vector.broadcast %367 : f32 to vector<1x256xf32>
    %370 = arith.mulf %369, %365 : vector<1x256xf32>
    %371 = vector.broadcast %368 : f32 to vector<1x256xf32>
    %372 = arith.mulf %371, %366 : vector<1x256xf32>
    %373 = arith.addf %370, %372 : vector<1x256xf32>
    %374 = arith.mulf %5, %13 : vector<1x256xf32>
    %375 = arith.mulf %373, %374 : vector<1x256xf32>
    %376 = arith.addf %364, %375 : vector<1x256xf32>
    %c254_i32 = arith.constant 254 : i32
    %377 = tpu.dynamic_rotate %63 by %c254_i32 dim 1 : vector<1x256xf32>, i32 -> vector<1x256xf32>
    %c254_i32_76 = arith.constant 254 : i32
    %378 = tpu.dynamic_rotate %65 by %c254_i32_76 dim 1 : vector<1x256xf32>, i32 -> vector<1x256xf32>
    %c26 = arith.constant 26 : index
    %379 = memref.load %arg5[%c26] : memref<98xf32, #tpu.memory_space<smem>>
    %c75 = arith.constant 75 : index
    %380 = memref.load %arg5[%c75] : memref<98xf32, #tpu.memory_space<smem>>
    %381 = vector.broadcast %379 : f32 to vector<1x256xf32>
    %382 = arith.mulf %381, %377 : vector<1x256xf32>
    %383 = vector.broadcast %380 : f32 to vector<1x256xf32>
    %384 = arith.mulf %383, %378 : vector<1x256xf32>
    %385 = arith.addf %382, %384 : vector<1x256xf32>
    %386 = arith.mulf %5, %14 : vector<1x256xf32>
    %387 = arith.mulf %385, %386 : vector<1x256xf32>
    %388 = arith.addf %376, %387 : vector<1x256xf32>
    %c253_i32 = arith.constant 253 : i32
    %389 = tpu.dynamic_rotate %63 by %c253_i32 dim 1 : vector<1x256xf32>, i32 -> vector<1x256xf32>
    %c253_i32_77 = arith.constant 253 : i32
    %390 = tpu.dynamic_rotate %65 by %c253_i32_77 dim 1 : vector<1x256xf32>, i32 -> vector<1x256xf32>
    %c27 = arith.constant 27 : index
    %391 = memref.load %arg5[%c27] : memref<98xf32, #tpu.memory_space<smem>>
    %c76 = arith.constant 76 : index
    %392 = memref.load %arg5[%c76] : memref<98xf32, #tpu.memory_space<smem>>
    %393 = vector.broadcast %391 : f32 to vector<1x256xf32>
    %394 = arith.mulf %393, %389 : vector<1x256xf32>
    %395 = vector.broadcast %392 : f32 to vector<1x256xf32>
    %396 = arith.mulf %395, %390 : vector<1x256xf32>
    %397 = arith.addf %394, %396 : vector<1x256xf32>
    %398 = arith.mulf %5, %15 : vector<1x256xf32>
    %399 = arith.mulf %397, %398 : vector<1x256xf32>
    %400 = arith.addf %388, %399 : vector<1x256xf32>
    %c243_i32 = arith.constant 243 : i32
    %401 = tpu.dynamic_rotate %63 by %c243_i32 dim 1 : vector<1x256xf32>, i32 -> vector<1x256xf32>
    %c243_i32_78 = arith.constant 243 : i32
    %402 = tpu.dynamic_rotate %65 by %c243_i32_78 dim 1 : vector<1x256xf32>, i32 -> vector<1x256xf32>
    %c28 = arith.constant 28 : index
    %403 = memref.load %arg5[%c28] : memref<98xf32, #tpu.memory_space<smem>>
    %c77 = arith.constant 77 : index
    %404 = memref.load %arg5[%c77] : memref<98xf32, #tpu.memory_space<smem>>
    %405 = vector.broadcast %403 : f32 to vector<1x256xf32>
    %406 = arith.mulf %405, %401 : vector<1x256xf32>
    %407 = vector.broadcast %404 : f32 to vector<1x256xf32>
    %408 = arith.mulf %407, %402 : vector<1x256xf32>
    %409 = arith.addf %406, %408 : vector<1x256xf32>
    %410 = arith.mulf %6, %9 : vector<1x256xf32>
    %411 = arith.mulf %409, %410 : vector<1x256xf32>
    %412 = arith.addf %400, %411 : vector<1x256xf32>
    %c242_i32 = arith.constant 242 : i32
    %413 = tpu.dynamic_rotate %63 by %c242_i32 dim 1 : vector<1x256xf32>, i32 -> vector<1x256xf32>
    %c242_i32_79 = arith.constant 242 : i32
    %414 = tpu.dynamic_rotate %65 by %c242_i32_79 dim 1 : vector<1x256xf32>, i32 -> vector<1x256xf32>
    %c29 = arith.constant 29 : index
    %415 = memref.load %arg5[%c29] : memref<98xf32, #tpu.memory_space<smem>>
    %c78 = arith.constant 78 : index
    %416 = memref.load %arg5[%c78] : memref<98xf32, #tpu.memory_space<smem>>
    %417 = vector.broadcast %415 : f32 to vector<1x256xf32>
    %418 = arith.mulf %417, %413 : vector<1x256xf32>
    %419 = vector.broadcast %416 : f32 to vector<1x256xf32>
    %420 = arith.mulf %419, %414 : vector<1x256xf32>
    %421 = arith.addf %418, %420 : vector<1x256xf32>
    %422 = arith.mulf %6, %10 : vector<1x256xf32>
    %423 = arith.mulf %421, %422 : vector<1x256xf32>
    %424 = arith.addf %412, %423 : vector<1x256xf32>
    %c241_i32 = arith.constant 241 : i32
    %425 = tpu.dynamic_rotate %63 by %c241_i32 dim 1 : vector<1x256xf32>, i32 -> vector<1x256xf32>
    %c241_i32_80 = arith.constant 241 : i32
    %426 = tpu.dynamic_rotate %65 by %c241_i32_80 dim 1 : vector<1x256xf32>, i32 -> vector<1x256xf32>
    %c30 = arith.constant 30 : index
    %427 = memref.load %arg5[%c30] : memref<98xf32, #tpu.memory_space<smem>>
    %c79 = arith.constant 79 : index
    %428 = memref.load %arg5[%c79] : memref<98xf32, #tpu.memory_space<smem>>
    %429 = vector.broadcast %427 : f32 to vector<1x256xf32>
    %430 = arith.mulf %429, %425 : vector<1x256xf32>
    %431 = vector.broadcast %428 : f32 to vector<1x256xf32>
    %432 = arith.mulf %431, %426 : vector<1x256xf32>
    %433 = arith.addf %430, %432 : vector<1x256xf32>
    %434 = arith.mulf %6, %11 : vector<1x256xf32>
    %435 = arith.mulf %433, %434 : vector<1x256xf32>
    %436 = arith.addf %424, %435 : vector<1x256xf32>
    %c240_i32 = arith.constant 240 : i32
    %437 = tpu.dynamic_rotate %63 by %c240_i32 dim 1 : vector<1x256xf32>, i32 -> vector<1x256xf32>
    %c240_i32_81 = arith.constant 240 : i32
    %438 = tpu.dynamic_rotate %65 by %c240_i32_81 dim 1 : vector<1x256xf32>, i32 -> vector<1x256xf32>
    %c31 = arith.constant 31 : index
    %439 = memref.load %arg5[%c31] : memref<98xf32, #tpu.memory_space<smem>>
    %c80 = arith.constant 80 : index
    %440 = memref.load %arg5[%c80] : memref<98xf32, #tpu.memory_space<smem>>
    %441 = vector.broadcast %439 : f32 to vector<1x256xf32>
    %442 = arith.mulf %441, %437 : vector<1x256xf32>
    %443 = vector.broadcast %440 : f32 to vector<1x256xf32>
    %444 = arith.mulf %443, %438 : vector<1x256xf32>
    %445 = arith.addf %442, %444 : vector<1x256xf32>
    %446 = arith.mulf %6, %12 : vector<1x256xf32>
    %447 = arith.mulf %445, %446 : vector<1x256xf32>
    %448 = arith.addf %436, %447 : vector<1x256xf32>
    %c239_i32 = arith.constant 239 : i32
    %449 = tpu.dynamic_rotate %63 by %c239_i32 dim 1 : vector<1x256xf32>, i32 -> vector<1x256xf32>
    %c239_i32_82 = arith.constant 239 : i32
    %450 = tpu.dynamic_rotate %65 by %c239_i32_82 dim 1 : vector<1x256xf32>, i32 -> vector<1x256xf32>
    %c32 = arith.constant 32 : index
    %451 = memref.load %arg5[%c32] : memref<98xf32, #tpu.memory_space<smem>>
    %c81 = arith.constant 81 : index
    %452 = memref.load %arg5[%c81] : memref<98xf32, #tpu.memory_space<smem>>
    %453 = vector.broadcast %451 : f32 to vector<1x256xf32>
    %454 = arith.mulf %453, %449 : vector<1x256xf32>
    %455 = vector.broadcast %452 : f32 to vector<1x256xf32>
    %456 = arith.mulf %455, %450 : vector<1x256xf32>
    %457 = arith.addf %454, %456 : vector<1x256xf32>
    %458 = arith.mulf %6, %13 : vector<1x256xf32>
    %459 = arith.mulf %457, %458 : vector<1x256xf32>
    %460 = arith.addf %448, %459 : vector<1x256xf32>
    %c238_i32 = arith.constant 238 : i32
    %461 = tpu.dynamic_rotate %63 by %c238_i32 dim 1 : vector<1x256xf32>, i32 -> vector<1x256xf32>
    %c238_i32_83 = arith.constant 238 : i32
    %462 = tpu.dynamic_rotate %65 by %c238_i32_83 dim 1 : vector<1x256xf32>, i32 -> vector<1x256xf32>
    %c33 = arith.constant 33 : index
    %463 = memref.load %arg5[%c33] : memref<98xf32, #tpu.memory_space<smem>>
    %c82 = arith.constant 82 : index
    %464 = memref.load %arg5[%c82] : memref<98xf32, #tpu.memory_space<smem>>
    %465 = vector.broadcast %463 : f32 to vector<1x256xf32>
    %466 = arith.mulf %465, %461 : vector<1x256xf32>
    %467 = vector.broadcast %464 : f32 to vector<1x256xf32>
    %468 = arith.mulf %467, %462 : vector<1x256xf32>
    %469 = arith.addf %466, %468 : vector<1x256xf32>
    %470 = arith.mulf %6, %14 : vector<1x256xf32>
    %471 = arith.mulf %469, %470 : vector<1x256xf32>
    %472 = arith.addf %460, %471 : vector<1x256xf32>
    %c237_i32 = arith.constant 237 : i32
    %473 = tpu.dynamic_rotate %63 by %c237_i32 dim 1 : vector<1x256xf32>, i32 -> vector<1x256xf32>
    %c237_i32_84 = arith.constant 237 : i32
    %474 = tpu.dynamic_rotate %65 by %c237_i32_84 dim 1 : vector<1x256xf32>, i32 -> vector<1x256xf32>
    %c34 = arith.constant 34 : index
    %475 = memref.load %arg5[%c34] : memref<98xf32, #tpu.memory_space<smem>>
    %c83 = arith.constant 83 : index
    %476 = memref.load %arg5[%c83] : memref<98xf32, #tpu.memory_space<smem>>
    %477 = vector.broadcast %475 : f32 to vector<1x256xf32>
    %478 = arith.mulf %477, %473 : vector<1x256xf32>
    %479 = vector.broadcast %476 : f32 to vector<1x256xf32>
    %480 = arith.mulf %479, %474 : vector<1x256xf32>
    %481 = arith.addf %478, %480 : vector<1x256xf32>
    %482 = arith.mulf %6, %15 : vector<1x256xf32>
    %483 = arith.mulf %481, %482 : vector<1x256xf32>
    %484 = arith.addf %472, %483 : vector<1x256xf32>
    %c227_i32 = arith.constant 227 : i32
    %485 = tpu.dynamic_rotate %63 by %c227_i32 dim 1 : vector<1x256xf32>, i32 -> vector<1x256xf32>
    %c227_i32_85 = arith.constant 227 : i32
    %486 = tpu.dynamic_rotate %65 by %c227_i32_85 dim 1 : vector<1x256xf32>, i32 -> vector<1x256xf32>
    %c35 = arith.constant 35 : index
    %487 = memref.load %arg5[%c35] : memref<98xf32, #tpu.memory_space<smem>>
    %c84 = arith.constant 84 : index
    %488 = memref.load %arg5[%c84] : memref<98xf32, #tpu.memory_space<smem>>
    %489 = vector.broadcast %487 : f32 to vector<1x256xf32>
    %490 = arith.mulf %489, %485 : vector<1x256xf32>
    %491 = vector.broadcast %488 : f32 to vector<1x256xf32>
    %492 = arith.mulf %491, %486 : vector<1x256xf32>
    %493 = arith.addf %490, %492 : vector<1x256xf32>
    %494 = arith.mulf %7, %9 : vector<1x256xf32>
    %495 = arith.mulf %493, %494 : vector<1x256xf32>
    %496 = arith.addf %484, %495 : vector<1x256xf32>
    %c226_i32 = arith.constant 226 : i32
    %497 = tpu.dynamic_rotate %63 by %c226_i32 dim 1 : vector<1x256xf32>, i32 -> vector<1x256xf32>
    %c226_i32_86 = arith.constant 226 : i32
    %498 = tpu.dynamic_rotate %65 by %c226_i32_86 dim 1 : vector<1x256xf32>, i32 -> vector<1x256xf32>
    %c36 = arith.constant 36 : index
    %499 = memref.load %arg5[%c36] : memref<98xf32, #tpu.memory_space<smem>>
    %c85 = arith.constant 85 : index
    %500 = memref.load %arg5[%c85] : memref<98xf32, #tpu.memory_space<smem>>
    %501 = vector.broadcast %499 : f32 to vector<1x256xf32>
    %502 = arith.mulf %501, %497 : vector<1x256xf32>
    %503 = vector.broadcast %500 : f32 to vector<1x256xf32>
    %504 = arith.mulf %503, %498 : vector<1x256xf32>
    %505 = arith.addf %502, %504 : vector<1x256xf32>
    %506 = arith.mulf %7, %10 : vector<1x256xf32>
    %507 = arith.mulf %505, %506 : vector<1x256xf32>
    %508 = arith.addf %496, %507 : vector<1x256xf32>
    %c225_i32 = arith.constant 225 : i32
    %509 = tpu.dynamic_rotate %63 by %c225_i32 dim 1 : vector<1x256xf32>, i32 -> vector<1x256xf32>
    %c225_i32_87 = arith.constant 225 : i32
    %510 = tpu.dynamic_rotate %65 by %c225_i32_87 dim 1 : vector<1x256xf32>, i32 -> vector<1x256xf32>
    %c37 = arith.constant 37 : index
    %511 = memref.load %arg5[%c37] : memref<98xf32, #tpu.memory_space<smem>>
    %c86 = arith.constant 86 : index
    %512 = memref.load %arg5[%c86] : memref<98xf32, #tpu.memory_space<smem>>
    %513 = vector.broadcast %511 : f32 to vector<1x256xf32>
    %514 = arith.mulf %513, %509 : vector<1x256xf32>
    %515 = vector.broadcast %512 : f32 to vector<1x256xf32>
    %516 = arith.mulf %515, %510 : vector<1x256xf32>
    %517 = arith.addf %514, %516 : vector<1x256xf32>
    %518 = arith.mulf %7, %11 : vector<1x256xf32>
    %519 = arith.mulf %517, %518 : vector<1x256xf32>
    %520 = arith.addf %508, %519 : vector<1x256xf32>
    %c224_i32 = arith.constant 224 : i32
    %521 = tpu.dynamic_rotate %63 by %c224_i32 dim 1 : vector<1x256xf32>, i32 -> vector<1x256xf32>
    %c224_i32_88 = arith.constant 224 : i32
    %522 = tpu.dynamic_rotate %65 by %c224_i32_88 dim 1 : vector<1x256xf32>, i32 -> vector<1x256xf32>
    %c38 = arith.constant 38 : index
    %523 = memref.load %arg5[%c38] : memref<98xf32, #tpu.memory_space<smem>>
    %c87 = arith.constant 87 : index
    %524 = memref.load %arg5[%c87] : memref<98xf32, #tpu.memory_space<smem>>
    %525 = vector.broadcast %523 : f32 to vector<1x256xf32>
    %526 = arith.mulf %525, %521 : vector<1x256xf32>
    %527 = vector.broadcast %524 : f32 to vector<1x256xf32>
    %528 = arith.mulf %527, %522 : vector<1x256xf32>
    %529 = arith.addf %526, %528 : vector<1x256xf32>
    %530 = arith.mulf %7, %12 : vector<1x256xf32>
    %531 = arith.mulf %529, %530 : vector<1x256xf32>
    %532 = arith.addf %520, %531 : vector<1x256xf32>
    %c223_i32 = arith.constant 223 : i32
    %533 = tpu.dynamic_rotate %63 by %c223_i32 dim 1 : vector<1x256xf32>, i32 -> vector<1x256xf32>
    %c223_i32_89 = arith.constant 223 : i32
    %534 = tpu.dynamic_rotate %65 by %c223_i32_89 dim 1 : vector<1x256xf32>, i32 -> vector<1x256xf32>
    %c39 = arith.constant 39 : index
    %535 = memref.load %arg5[%c39] : memref<98xf32, #tpu.memory_space<smem>>
    %c88 = arith.constant 88 : index
    %536 = memref.load %arg5[%c88] : memref<98xf32, #tpu.memory_space<smem>>
    %537 = vector.broadcast %535 : f32 to vector<1x256xf32>
    %538 = arith.mulf %537, %533 : vector<1x256xf32>
    %539 = vector.broadcast %536 : f32 to vector<1x256xf32>
    %540 = arith.mulf %539, %534 : vector<1x256xf32>
    %541 = arith.addf %538, %540 : vector<1x256xf32>
    %542 = arith.mulf %7, %13 : vector<1x256xf32>
    %543 = arith.mulf %541, %542 : vector<1x256xf32>
    %544 = arith.addf %532, %543 : vector<1x256xf32>
    %c222_i32 = arith.constant 222 : i32
    %545 = tpu.dynamic_rotate %63 by %c222_i32 dim 1 : vector<1x256xf32>, i32 -> vector<1x256xf32>
    %c222_i32_90 = arith.constant 222 : i32
    %546 = tpu.dynamic_rotate %65 by %c222_i32_90 dim 1 : vector<1x256xf32>, i32 -> vector<1x256xf32>
    %c40 = arith.constant 40 : index
    %547 = memref.load %arg5[%c40] : memref<98xf32, #tpu.memory_space<smem>>
    %c89 = arith.constant 89 : index
    %548 = memref.load %arg5[%c89] : memref<98xf32, #tpu.memory_space<smem>>
    %549 = vector.broadcast %547 : f32 to vector<1x256xf32>
    %550 = arith.mulf %549, %545 : vector<1x256xf32>
    %551 = vector.broadcast %548 : f32 to vector<1x256xf32>
    %552 = arith.mulf %551, %546 : vector<1x256xf32>
    %553 = arith.addf %550, %552 : vector<1x256xf32>
    %554 = arith.mulf %7, %14 : vector<1x256xf32>
    %555 = arith.mulf %553, %554 : vector<1x256xf32>
    %556 = arith.addf %544, %555 : vector<1x256xf32>
    %c221_i32 = arith.constant 221 : i32
    %557 = tpu.dynamic_rotate %63 by %c221_i32 dim 1 : vector<1x256xf32>, i32 -> vector<1x256xf32>
    %c221_i32_91 = arith.constant 221 : i32
    %558 = tpu.dynamic_rotate %65 by %c221_i32_91 dim 1 : vector<1x256xf32>, i32 -> vector<1x256xf32>
    %c41 = arith.constant 41 : index
    %559 = memref.load %arg5[%c41] : memref<98xf32, #tpu.memory_space<smem>>
    %c90 = arith.constant 90 : index
    %560 = memref.load %arg5[%c90] : memref<98xf32, #tpu.memory_space<smem>>
    %561 = vector.broadcast %559 : f32 to vector<1x256xf32>
    %562 = arith.mulf %561, %557 : vector<1x256xf32>
    %563 = vector.broadcast %560 : f32 to vector<1x256xf32>
    %564 = arith.mulf %563, %558 : vector<1x256xf32>
    %565 = arith.addf %562, %564 : vector<1x256xf32>
    %566 = arith.mulf %7, %15 : vector<1x256xf32>
    %567 = arith.mulf %565, %566 : vector<1x256xf32>
    %568 = arith.addf %556, %567 : vector<1x256xf32>
    %c211_i32 = arith.constant 211 : i32
    %569 = tpu.dynamic_rotate %63 by %c211_i32 dim 1 : vector<1x256xf32>, i32 -> vector<1x256xf32>
    %c211_i32_92 = arith.constant 211 : i32
    %570 = tpu.dynamic_rotate %65 by %c211_i32_92 dim 1 : vector<1x256xf32>, i32 -> vector<1x256xf32>
    %c42 = arith.constant 42 : index
    %571 = memref.load %arg5[%c42] : memref<98xf32, #tpu.memory_space<smem>>
    %c91 = arith.constant 91 : index
    %572 = memref.load %arg5[%c91] : memref<98xf32, #tpu.memory_space<smem>>
    %573 = vector.broadcast %571 : f32 to vector<1x256xf32>
    %574 = arith.mulf %573, %569 : vector<1x256xf32>
    %575 = vector.broadcast %572 : f32 to vector<1x256xf32>
    %576 = arith.mulf %575, %570 : vector<1x256xf32>
    %577 = arith.addf %574, %576 : vector<1x256xf32>
    %578 = arith.mulf %8, %9 : vector<1x256xf32>
    %579 = arith.mulf %577, %578 : vector<1x256xf32>
    %580 = arith.addf %568, %579 : vector<1x256xf32>
    %c210_i32 = arith.constant 210 : i32
    %581 = tpu.dynamic_rotate %63 by %c210_i32 dim 1 : vector<1x256xf32>, i32 -> vector<1x256xf32>
    %c210_i32_93 = arith.constant 210 : i32
    %582 = tpu.dynamic_rotate %65 by %c210_i32_93 dim 1 : vector<1x256xf32>, i32 -> vector<1x256xf32>
    %c43 = arith.constant 43 : index
    %583 = memref.load %arg5[%c43] : memref<98xf32, #tpu.memory_space<smem>>
    %c92 = arith.constant 92 : index
    %584 = memref.load %arg5[%c92] : memref<98xf32, #tpu.memory_space<smem>>
    %585 = vector.broadcast %583 : f32 to vector<1x256xf32>
    %586 = arith.mulf %585, %581 : vector<1x256xf32>
    %587 = vector.broadcast %584 : f32 to vector<1x256xf32>
    %588 = arith.mulf %587, %582 : vector<1x256xf32>
    %589 = arith.addf %586, %588 : vector<1x256xf32>
    %590 = arith.mulf %8, %10 : vector<1x256xf32>
    %591 = arith.mulf %589, %590 : vector<1x256xf32>
    %592 = arith.addf %580, %591 : vector<1x256xf32>
    %c209_i32 = arith.constant 209 : i32
    %593 = tpu.dynamic_rotate %63 by %c209_i32 dim 1 : vector<1x256xf32>, i32 -> vector<1x256xf32>
    %c209_i32_94 = arith.constant 209 : i32
    %594 = tpu.dynamic_rotate %65 by %c209_i32_94 dim 1 : vector<1x256xf32>, i32 -> vector<1x256xf32>
    %c44 = arith.constant 44 : index
    %595 = memref.load %arg5[%c44] : memref<98xf32, #tpu.memory_space<smem>>
    %c93 = arith.constant 93 : index
    %596 = memref.load %arg5[%c93] : memref<98xf32, #tpu.memory_space<smem>>
    %597 = vector.broadcast %595 : f32 to vector<1x256xf32>
    %598 = arith.mulf %597, %593 : vector<1x256xf32>
    %599 = vector.broadcast %596 : f32 to vector<1x256xf32>
    %600 = arith.mulf %599, %594 : vector<1x256xf32>
    %601 = arith.addf %598, %600 : vector<1x256xf32>
    %602 = arith.mulf %8, %11 : vector<1x256xf32>
    %603 = arith.mulf %601, %602 : vector<1x256xf32>
    %604 = arith.addf %592, %603 : vector<1x256xf32>
    %c208_i32 = arith.constant 208 : i32
    %605 = tpu.dynamic_rotate %63 by %c208_i32 dim 1 : vector<1x256xf32>, i32 -> vector<1x256xf32>
    %c208_i32_95 = arith.constant 208 : i32
    %606 = tpu.dynamic_rotate %65 by %c208_i32_95 dim 1 : vector<1x256xf32>, i32 -> vector<1x256xf32>
    %c45 = arith.constant 45 : index
    %607 = memref.load %arg5[%c45] : memref<98xf32, #tpu.memory_space<smem>>
    %c94 = arith.constant 94 : index
    %608 = memref.load %arg5[%c94] : memref<98xf32, #tpu.memory_space<smem>>
    %609 = vector.broadcast %607 : f32 to vector<1x256xf32>
    %610 = arith.mulf %609, %605 : vector<1x256xf32>
    %611 = vector.broadcast %608 : f32 to vector<1x256xf32>
    %612 = arith.mulf %611, %606 : vector<1x256xf32>
    %613 = arith.addf %610, %612 : vector<1x256xf32>
    %614 = arith.mulf %8, %12 : vector<1x256xf32>
    %615 = arith.mulf %613, %614 : vector<1x256xf32>
    %616 = arith.addf %604, %615 : vector<1x256xf32>
    %c207_i32 = arith.constant 207 : i32
    %617 = tpu.dynamic_rotate %63 by %c207_i32 dim 1 : vector<1x256xf32>, i32 -> vector<1x256xf32>
    %c207_i32_96 = arith.constant 207 : i32
    %618 = tpu.dynamic_rotate %65 by %c207_i32_96 dim 1 : vector<1x256xf32>, i32 -> vector<1x256xf32>
    %c46 = arith.constant 46 : index
    %619 = memref.load %arg5[%c46] : memref<98xf32, #tpu.memory_space<smem>>
    %c95 = arith.constant 95 : index
    %620 = memref.load %arg5[%c95] : memref<98xf32, #tpu.memory_space<smem>>
    %621 = vector.broadcast %619 : f32 to vector<1x256xf32>
    %622 = arith.mulf %621, %617 : vector<1x256xf32>
    %623 = vector.broadcast %620 : f32 to vector<1x256xf32>
    %624 = arith.mulf %623, %618 : vector<1x256xf32>
    %625 = arith.addf %622, %624 : vector<1x256xf32>
    %626 = arith.mulf %8, %13 : vector<1x256xf32>
    %627 = arith.mulf %625, %626 : vector<1x256xf32>
    %628 = arith.addf %616, %627 : vector<1x256xf32>
    %c206_i32 = arith.constant 206 : i32
    %629 = tpu.dynamic_rotate %63 by %c206_i32 dim 1 : vector<1x256xf32>, i32 -> vector<1x256xf32>
    %c206_i32_97 = arith.constant 206 : i32
    %630 = tpu.dynamic_rotate %65 by %c206_i32_97 dim 1 : vector<1x256xf32>, i32 -> vector<1x256xf32>
    %c47 = arith.constant 47 : index
    %631 = memref.load %arg5[%c47] : memref<98xf32, #tpu.memory_space<smem>>
    %c96 = arith.constant 96 : index
    %632 = memref.load %arg5[%c96] : memref<98xf32, #tpu.memory_space<smem>>
    %633 = vector.broadcast %631 : f32 to vector<1x256xf32>
    %634 = arith.mulf %633, %629 : vector<1x256xf32>
    %635 = vector.broadcast %632 : f32 to vector<1x256xf32>
    %636 = arith.mulf %635, %630 : vector<1x256xf32>
    %637 = arith.addf %634, %636 : vector<1x256xf32>
    %638 = arith.mulf %8, %14 : vector<1x256xf32>
    %639 = arith.mulf %637, %638 : vector<1x256xf32>
    %640 = arith.addf %628, %639 : vector<1x256xf32>
    %c205_i32 = arith.constant 205 : i32
    %641 = tpu.dynamic_rotate %63 by %c205_i32 dim 1 : vector<1x256xf32>, i32 -> vector<1x256xf32>
    %c205_i32_98 = arith.constant 205 : i32
    %642 = tpu.dynamic_rotate %65 by %c205_i32_98 dim 1 : vector<1x256xf32>, i32 -> vector<1x256xf32>
    %c48 = arith.constant 48 : index
    %643 = memref.load %arg5[%c48] : memref<98xf32, #tpu.memory_space<smem>>
    %c97 = arith.constant 97 : index
    %644 = memref.load %arg5[%c97] : memref<98xf32, #tpu.memory_space<smem>>
    %645 = vector.broadcast %643 : f32 to vector<1x256xf32>
    %646 = arith.mulf %645, %641 : vector<1x256xf32>
    %647 = vector.broadcast %644 : f32 to vector<1x256xf32>
    %648 = arith.mulf %647, %642 : vector<1x256xf32>
    %649 = arith.addf %646, %648 : vector<1x256xf32>
    %650 = arith.mulf %8, %15 : vector<1x256xf32>
    %651 = arith.mulf %649, %650 : vector<1x256xf32>
    %652 = arith.addf %640, %651 : vector<1x256xf32>
    %653 = arith.negf %652 : vector<1x256xf32>
    %654 = math.exp %653 : vector<1x256xf32>
    %cst_99 = arith.constant 1.000000e+00 : f32
    %655 = vector.broadcast %cst_99 : f32 to vector<1x256xf32>
    %656 = arith.addf %655, %654 : vector<1x256xf32>
    %657 = arith.divf %655, %656 : vector<1x256xf32>
    %658 = arith.index_cast %c0_i32 : i32 to index
    %c0_100 = arith.constant 0 : index
    %c0_101 = arith.constant 0 : index
    %659 = vector.load %arg6[%658, %c0_100, %c0_101] : memref<1x32x256xf32, #tpu.memory_space<vmem>>, vector<1x32x256xf32>
    %660 = vector.shape_cast %659 : vector<1x32x256xf32> to vector<32x256xf32>
    %661 = vector.broadcast %657 : vector<1x256xf32> to vector<32x256xf32>
    %662 = arith.mulf %660, %661 : vector<32x256xf32>
    %663 = arith.index_cast %c0_i32 : i32 to index
    %c0_102 = arith.constant 0 : index
    %c0_103 = arith.constant 0 : index
    %664 = vector.load %arg6[%663, %c0_102, %c0_103] : memref<1x32x256xf32, #tpu.memory_space<vmem>>, vector<1x32x256xf32>
    %665 = vector.shape_cast %664 : vector<1x32x256xf32> to vector<32x256xf32>
    %666 = vector.shape_cast %662 : vector<32x256xf32> to vector<1x32x256xf32>
    tpu.vector_store %arg6[%663, %c0_102, %c0_103], %666 {strides = array<i32>} : memref<1x32x256xf32, #tpu.memory_space<vmem>>, vector<1x32x256xf32>,
    %c1_i32_104 = arith.constant 1 : i32
    return
  }
  func.func @transform_0(%arg0: i32) -> (i32, i32, i32) {
    %c0_i32 = arith.constant 0 : i32
    %c0_i32_0 = arith.constant 0 : i32
    %c0_i32_1 = arith.constant 0 : i32
    return %arg0, %c0_i32, %c0_i32_0 : i32, i32, i32
  }
  func.func @transform_1(%arg0: i32) -> (i32, i32) {
    %c0_i32 = arith.constant 0 : i32
    %c0_i32_0 = arith.constant 0 : i32
    %c0_i32_1 = arith.constant 0 : i32
    return %c0_i32, %c0_i32_0 : i32, i32
  }
  func.func @transform_2(%arg0: i32) -> (i32, i32) {
    %c0_i32 = arith.constant 0 : i32
    %c0_i32_0 = arith.constant 0 : i32
    %c0_i32_1 = arith.constant 0 : i32
    return %c0_i32, %c0_i32_0 : i32, i32
  }
  func.func @transform_3(%arg0: i32) -> (i32, i32) {
    %c0_i32 = arith.constant 0 : i32
    %c0_i32_0 = arith.constant 0 : i32
    %c0_i32_1 = arith.constant 0 : i32
    return %c0_i32, %c0_i32_0 : i32, i32
  }
  func.func @transform_4(%arg0: i32) -> i32 {
    %c0_i32 = arith.constant 0 : i32
    %c0_i32_0 = arith.constant 0 : i32
    return %c0_i32 : i32
  }
  func.func @transform_5(%arg0: i32) -> (i32, i32, i32) {
    %c0_i32 = arith.constant 0 : i32
    %c0_i32_0 = arith.constant 0 : i32
    %c0_i32_1 = arith.constant 0 : i32
    return %arg0, %c0_i32, %c0_i32_0 : i32, i32, i32
  }
}

</mosaic_0001>

<bundles_post_ra>
// kernel: tpu_custom_call.1
= control target key start
LH: loop header
LB: loop body
LE: loop exit
PB: predicated region body
PF: predicated region fallthrough
CT: control target
= control target key end

     0   :  { %s5967_s0 = inlined_call_operand.hbm [shape: f32[2,32,256], index: 0, kind: input, shape index: {}]   ;;  %s5968_s1 = inlined_call_operand.vmem [shape: f32[32,2], index: 1, kind: input, shape index: {}]   ;;  %s5969_s2 = inlined_call_operand.vmem [shape: f32[32,2], index: 2, kind: input, shape index: {}]   ;;  %s5970_s3 = inlined_call_operand.vmem [shape: f32[15,256], index: 3, kind: input, shape index: {}]   ;;  %s5971_s4 = inlined_call_operand.vmem [shape: f32[98], index: 4, kind: input, shape index: {}]   ;;  %s5972_s5 = inlined_call_operand.hbm [shape: f32[2,32,256], index: 5, kind: output, shape index: {}]  }
   0x1   :  { %6142 = sst [smem:[#allocation99_spill]] %s5967_s0 }
   0x2   :  { %6143 = sst [smem:[#allocation100_spill]] %s5968_s1 }
   0x3   :  { %6144 = sst [smem:[#allocation101_spill]] %s5969_s2 }
   0x4   :  { %6145 = sst [smem:[#allocation102_spill]] %s5970_s3 }
   0x5   :  { %6146 = sst [smem:[#allocation103_spill]] %s5971_s4 }
   0x6   :  { %6147 = sst [smem:[#allocation104_spill]] %s5972_s5 }
   0x7   :  { %10 = vsyncpa [#allocation3], 0 }
   0x8   :  { %12 = vsyncpa [#allocation3 + $0x1], 0 }
   0x9   :  { %13 = vsyncpa [#allocation5], 0 }
   0xa   :  { %14 = vsyncpa [#allocation4], 0 }
   0xb   :  { %16 = vsyncpa [#allocation4 + $0x1], 0  ;;  %s2997_s18 = smov 0   ;;  %s2999_s19 = smov 0  }
   0xc   :  { %s3001_s20 = smov 0   ;;  %s3003_s21 = smov 0  }
   0xd LB: > { %6148 = sst [smem:[#allocation11_spill]] %s2899_s18  ;;  %s3018_s22 = sadd.s32 4294967295, %s2911_s21   ;;  %s2911_s21 = sphi %s3003_s21, %s6559_s21   ;;  %s2907_s20 = sphi %s3001_s20, %s6562_s20   ;;  %s2903_s19 = sphi %s2999_s19, %s6561_s19   ;;  %s2899_s18 = sphi %s2997_s18, %s6560_s18  }
   0xe   : > { %6149 = sst [smem:[#allocation12_spill]] %s2903_s19  ;;  %s2522_s23 = sadd.s32 4294967294, %s2911_s21  }
   0xf   : > { %6150 = sst [smem:[#allocation13_spill]] %s2907_s20  ;;  %s3022_s24 = sadd.s32 1, %s2911_s21  }
  0x10   : > { %6151 = sst [smem:[#allocation14_spill]] %s2911_s21  ;;  %s29_s25 = sadd.s32 1, %s2907_s20 }
  0x11   : > { %6152 = sst [smem:[#allocation15_spill]] %s3018_s22  ;;  %s26_s26 = ssub.s32 %s2911_s21, %s3022_s24 }
  0x12   : > { %6153 = sst [smem:[#allocation16_spill]] %s3022_s24  ;;  %p36_p0 = scmp.ne.s32.totalorder %s2907_s20, %s2903_s19 }
  0x13   : > { %p27_p1 = scmp.eq.s32.totalorder %s26_s26, 0  ;;  %p37_p2 = scmp.eq.s32.totalorder %s2911_s21, 0 }
  0x14   : > { %p42_p3 = scmp.ne.s32.totalorder %s2903_s19, %s2899_s18  ;;  %p5974_p4 = scmp.eq.s32.totalorder %s3018_s22, 0 }
  0x15   : > { %s3034_s27 = scalar_select %p27_p1, %s2907_s20, %s29_s25  }
  0x16   : > { %p3036_p5 = por %p37_p2, %p36_p0  ;;  %p3042_p6 = por %p5974_p4, %p42_p3 }
  0x17   : > { %6154 = sst [smem:[#allocation17_spill]] %s3034_s27  ;;  %p150_p7 = scmp.eq.s32.totalorder %s3018_s22, 1 }
  0x18   : > { %s6156_s29 = scalar_select %p3042_p6, 1, 0 }
  0x19   : > { %p156_p8 = scmp.eq.s32.totalorder %s2522_s23, 1  ;;  %p2523_p9 = scmp.ge.s32.totalorder %s2911_s21, 1 }
  0x1a   : > { %p163_p10 = scmp.lt.s32.totalorder %s2911_s21, 3  ;;  %p3049_p11 = por %p150_p7, %p36_p0 }
  0x1b   : > { %p3053_p12 = por %p156_p8, %p42_p3  ;;  %s6162_s4 = sld [smem:[#allocation103_spill]] }
  0x1c   : > { %s6157_s30 = scalar_select %p3049_p11, 1, 0 }
  0x1d   : > { %s6159_s6 = scalar_select %p3053_p12, 1, 0 }
  0x1e   : > { %6158 = sst [smem:[#allocation18_spill]] %s6157_s30  ;;  %p3057_p13 = pnand %p2523_p9, %p163_p10 }
  0x1f   : > { %6160 = sst [smem:[#allocation19_spill]] %s6159_s6  ;;  %p2677_p2 = scmp.lt.s32.totalorder %s2911_s21, 2 }
  0x20   : > { %p2664_p1 = pneg %p3057_p13  ;;  %s196_s12 = sand.u32 1, %s2907_s20  }
  0x21   : > { %s185_s10 = sshll.u32 %s6162_s4, 4  ;;  %p3077_p3 = pnand %p2677_p2, %p3036_p5  ;;  %s186_s10 = int_to_ptr.vmem [resolvable:$true] %s185_s10 }
  0x22   : > { %p3070_p7 = pnand %p2664_p1, %p5974_p4  ;;  %s2526_s14 = sshll.u32 %s196_s12, 6 }
  0x23   : > { %s2796_s15 = scalar_lea.vmem %s186_s10, 16  ;;  %p2804_p12 = scmp.lt.s32.totalorder %s186_s10, %s186_s10 }
  0x24   : > { %p2797_p8 = scmp.ne.s32.totalorder %s186_s10, %s2796_s15  ;;  %p2798_p9 = pneg %p3070_p7 }
  0x25   : > { %p2805_p11 = scmp.lt.s32.totalorder %s2796_s15, %s2796_s15 }
  0x26   : > { %p2799_p10 = pnand %p2798_p9, %p2797_p8 }
  0x27   : > { %p2806_p1 = por %p2805_p11, %p2804_p12 }
  0x28   : > { %p2800_p0 = pneg %p2799_p10 }
  0x2a   : > { %p2807_p4 = pnand %p2806_p1, %p2800_p0 }
  0x2c   : > { %2810 = shalt.err (!%p2807_p4)
}
  0x2d   : > { %s2913_s16 = smov [#allocation6]   ;;  %s2654_s17 = sshll.u32 %s2911_s21, 10 }
  0x2e   : > { %2667 = dma.vmem_to_smem (!%p3070_p7), %s186_s10, 16, %s2913_s16, [#allocation5]  }
  0x2f   : > { %s200_s23 = scalar_lea.vmem [#allocation2], %s2526_s14  ;;  %s6165_s0 = sld [smem:[#allocation99_spill]] }
  0x30   : > { %s207_s25 = sshll.u32 %s200_s23, 4  ;;  %s3093_s9 = scalar_lea.sflag [#allocation3], %s196_s12  ;;  %s3091_s25 = int_to_ptr.vmem [resolvable:$true] %s207_s25 }
  0x31   : > { %p2813_p5 = pneg %p3077_p3 }
  0x35   : > { %s3089_s8 = scalar_lea.hbm %s6165_s0, %s2654_s17  ;;  %s2816_s15 = scalar_lea.hbm %s6165_s0, 2048 }
  0x36   : > { %s2811_s11 = scalar_lea.hbm %s3089_s8, 1024  ;;  %p2817_p0 = scmp.lt.u32.totalorder %s3089_s8, %s6165_s0 }
  0x37   : > { %p2812_p4 = scmp.ne.s32.totalorder %s3089_s8, %s2811_s11  ;;  %p2818_p2 = scmp.lt.u32.totalorder %s2816_s15, %s2811_s11 }
  0x38   : > { %p2820_p8 = scmp.lt.u32.totalorder %s2811_s11, %s3089_s8 }
  0x39   : > { %p2814_p11 = pnand %p2813_p5, %p2812_p4  ;;  %p2819_p7 = por %p2818_p2, %p2817_p0 }
  0x3b   : > { %p2815_p12 = pneg %p2814_p11  ;;  %p2821_p9 = por %p2820_p8, %p2819_p7 }
  0x3d   : > { %p2822_p10 = pnand %p2821_p9, %p2815_p12 }
  0x3f   : > { %2825 = shalt.err (!%p2822_p10)
}
  0x40   : > { %s2826_s12 = scalar_lea.vmem %s3091_s25, 1024  ;;  %s2914_s23 = smov [#allocation2]  }
  0x41   : > { %p2827_p1 = scmp.ne.s32.totalorder %s3091_s25, %s2826_s12  ;;  %s2831_s26 = sshll.u32 %s2914_s23, 4  ;;  %s2832_s26 = int_to_ptr.vmem [resolvable:$false] %s2831_s26 }
  0x42   : > { %s2833_s28 = scalar_lea.vmem %s2832_s26, 2048  ;;  %p2834_p6 = scmp.lt.s32.totalorder %s3091_s25, %s2832_s26 }
  0x43   : > { %p2829_p4 = pnand %p2827_p1, %p2813_p5  ;;  %p2835_p0 = scmp.lt.s32.totalorder %s2833_s28, %s2826_s12 }
  0x45   : > { %p2830_p11 = pneg %p2829_p4  ;;  %p2836_p2 = por %p2835_p0, %p2834_p6 }
  0x47   : > { %p2837_p7 = pnand %p2836_p2, %p2830_p11 }
  0x49   : > { %2840 = shalt.err (!%p2837_p7)
}
  0x4a   : > { %s2915_s11 = smov 256   ;;  %s2916_s10 = smov 16  }
  0x4b   : > { %2671 = dma.hbm_to_vmem [thread:$0]  (!%p3077_p3), %s3089_s8, 1024, %s3091_s25, %s3093_s9, %s2915_s11, %s2915_s11, %s2916_s10  }
  0x4c   : > { %219 = sbr.rel (%p3057_p13) target bundleno = 1050 (0x41a), region = 40 }
  0x53   : > { %s3124_s14 = sand.u32 1, %s2903_s19   ;;  %p6167_p6 = scmp.ne.s32.totalorder %s6156_s29, 0 }
  0x54   : > { %6166 = sst [smem:[#allocation20_spill]] %s3124_s14  ;;  %s5976_s15 = sshll.u32 %s3124_s14, 6 }
  0x55   : > { %s222_s16 = scalar_lea.sflag [#allocation3], %s3124_s14  ;;  %s225_s17 = scalar_lea.vmem [#allocation2], %s5976_s15 }
  0x56   : > { %2886 = dma.done.wait (%p6167_p6), %s222_s16, 1024  }
  0x57   : > { %2888 = vsyncadd (%p6167_p6), %s222_s16, 4294966272  ;;  %p6168_p3 = scmp.eq.s32.totalorder %s3018_s22, 0 }
  0x59   : > { %2890 = dma.done.wait (%p6168_p3), [#allocation5], 16   ;;  %p6169_p13 = pmov %p6168_p3 }
  0x5b   : > { %2892 = vsyncadd (%p6169_p13), [#allocation5], 4294967280 }
  0x5c   : > { %234 = sfence }
  0x5d   : > { %v3138_v0 = vld [vmem:[%s225_s17 + $0x20] sm:$0xff]  ;;  %v3140_v1 = vld [vmem:[%s225_s17 + $0x28] sm:$0xff]  ;;  %v3148_v5 = vld [vmem:[%s225_s17 + $0x10] sm:$0xff]  ;;  %s6170_s1 = sld [smem:[#allocation100_spill]]  ;;  %vm332_vm0 = vcmask 15360   ;;  %s6171_s2 = sld [smem:[#allocation101_spill]] }
  0x5e   : > { %v3142_v2 = vld [vmem:[%s225_s17] sm:$0xff]  ;;  %v306_v3 = vadd.f32 %v3140_v1, %v3138_v0  ;;  %v3146_v4 = vld [vmem:[%s225_s17 + $0x8] sm:$0xff]  ;;  %v3150_v6 = vld [vmem:[%s225_s17 + $0x18] sm:$0xff]  ;;  %v322_v15 = vmax.f32 %v3138_v0, %v3140_v1  ;;  %s2917_s13 = smov 50   ;;  %s2918_s25 = smov 51  }
  0x5f   : > { %v300_v7 = vadd.f32 %v3146_v4, %v3142_v2  ;;  %v316_v8 = vmax.f32 %v3142_v2, %v3146_v4  ;;  %v303_v9 = vadd.f32 %v3150_v6, %v3148_v5  ;;  %v3158_v10 = vld [vmem:[%s225_s17 + $0x30] sm:$0xff]  ;;  %v3160_v11 = vld [vmem:[%s225_s17 + $0x38] sm:$0xff]  ;;  %v319_v13 = vmax.f32 %v3148_v5, %v3150_v6  ;;  %s2919_s8 = smov 49   ;;  %s2920_s9 = smov 48  }
  0x60   : > { %307 = vadd.xlane.f32.xlu1 %v306_v3  ;;  %v309_v12 = vadd.f32 %v3160_v11, %v3158_v10  ;;  %v325_v14 = vmax.f32 %v3158_v10, %v3160_v11  ;;  %s2921_s12 = smov 47   ;;  %s2922_s23 = smov 46  }
  0x61   : > { %301 = vadd.xlane.f32.xlu0 %v300_v7  ;;  %s2923_s26 = smov 45   ;;  %s2924_s28 = smov 35  }
  0x62   : > { %s2925_s11 = smov 34   ;;  %s5977_s10 = smov 33  }
  0x63   : > { %v257_v19 = vld [vmem:[%s6170_s1] sm:$0xff]  ;;  %v258_v23 = vld [vmem:[%s6170_s1 + $0x8] sm:$0xff]  ;;  %v259_v24 = vld [vmem:[%s6170_s1 + $0x10] sm:$0xff]  ;;  %s5979_s16 = smov 32   ;;  %s5981_s17 = smov 31  }
  0x64   : > { %317 = vmax.xlane.f32.xlu1 %v316_v8  ;;  %v260_v30 = vld [vmem:[%s6170_s1 + $0x18] sm:$0xff]  ;;  %s5983_s29 = smov 30   ;;  %s5985_s7 = smov 29  }
  0x65   : > { %304 = vadd.xlane.f32.xlu0 %v303_v9  ;;  %v262_v9 = vld [vmem:[%s6171_s2 + $0x8] sm:$0xff]  ;;  %s5987_s15 = smov 19   ;;  %s6221_s3 = sld [smem:[#allocation102_spill]] }
  0x66   : > { %s3682_s0 = sld [smem:[#allocation6 + $0x3a]]  ;;  %s3692_s1 = sld [smem:[#allocation6 + $0x3d]] }
  0x67   : > { %s3705_s4 = sld [smem:[#allocation6 + $0x3f]]  ;;  %s3708_s27 = sld [smem:[#allocation6 + $0x40]] }
  0x68   : > { %310 = vadd.xlane.f32.xlu1 %v309_v12  ;;  %v261_v12 = vld [vmem:[%s6171_s2] sm:$0xff]  ;;  %s3710_s20 = sld [smem:[#allocation6 + $0x41]]  ;;  %s3719_s19 = sld [smem:[#allocation6 + $0x43]] }
  0x69   : > { %320 = vmax.xlane.f32.xlu0 %v319_v13  ;;  %s3722_s24 = sld [smem:[#allocation6 + $0x44]]  ;;  %s3724_s21 = sld [smem:[#allocation6 + $0x45]] }
  0x6a   : > { %s6230_s6 = smov 127   ;;  %s3733_s18 = sld [smem:[#allocation6 + $0x46]] }
  0x6b   : > { %s3750_s30 = sld [smem:[#allocation6 + $0x4a]]  ;;  %s3752_s5 = sld [smem:[#allocation6 + $0x4b]] }
  0x6c   : > { %326 = vmax.xlane.f32.xlu1 %v325_v14  ;;  %6226 = sst [smem:[#allocation60_spill]] %s3692_s1  ;;  %s3759_s14 = sld [smem:[#allocation6 + $0x4c]] }
  0x6d   : > { %323 = vmax.xlane.f32.xlu0 %v322_v15  ;;  %v264_v15 = vld [vmem:[%s6171_s2 + $0x18] sm:$0xff]  ;;  %s3761_s22 = sld [smem:[#allocation6 + $0x4d]]  ;;  %s6241_s1 = smov 125  }
  0x71   : > { %6233 = sst [smem:[#allocation65_spill]] %s3752_s5  ;;  %s6244_s5 = smov 115  }
  0x72   : > { %6235 = sst [smem:[#allocation67_spill]] %s3759_s14  ;;  %s3928_s14 = sld [smem:[#allocation6 + $0x1]] }
  0x73   : > { %6236 = sst [smem:[#allocation68_spill]] %s3761_s22  ;;  %s6256_s22 = smov 114  }
  0xed   : > { %v308_v16 = vpop.xlane.xlu1 %307 }
  0xee   : > { %v302_v17 = vpop.xlane.xlu0 %301  ;;  %v314_v20 = vmul.f32 0.00390625, %v308_v16  ;;  %v263_v16 = vld [vmem:[%s6171_s2 + $0x10] sm:$0xff]  ;;  %s6227_s2 = smov 1  }
  0xef   : > { %v312_v18 = vmul.f32 0.00390625, %v302_v17 }
  0xf0   : > { %v330_v29 = vmul.f32 %v314_v20, %v259_v24 }
  0xf1   : > { %v318_v21 = vpop.xlane.xlu1 %317  ;;  %v328_v25 = vmul.f32 %v312_v18, %v257_v19 }
  0xf2   : > { %v305_v22 = vpop.xlane.xlu0 %304  ;;  %v363_v34 = vmul.f32 %v318_v21, %v257_v19  ;;  %v336_v40 = vsel %vm332_vm0, %v330_v29, 0.0 }
  0xf3   : > { %v313_v26 = vmul.f32 0.00390625, %v305_v22  ;;  %v333_v33 = vsel %vm332_vm0, %v328_v25, 0.0 }
  0xf4   : > { %v367_v46 = vsel %vm332_vm0, %v363_v34, 0.0 }
  0xf5   : > { %v311_v27 = vpop.xlane.xlu1 %310  ;;  %v329_v28 = vmul.f32 %v313_v26, %v258_v23 }
  0xf6   : > { %v315_v31 = vmul.f32 0.00390625, %v311_v27  ;;  %v321_v32 = vpop.xlane.xlu0 %320 }
  0xf7   : > { %v334_v35 = vsel %vm332_vm0, %v329_v28, 0.0  ;;  %v364_v36 = vmul.f32 %v321_v32, %v258_v23 }
  0xf8   : > { %v335_v37 = vadd.f32 %v334_v35, %v333_v33  ;;  %v331_v38 = vmul.f32 %v315_v31, %v260_v30 }
  0xf9   : > { %v368_v39 = vsel %vm332_vm0, %v364_v36, 0.0  ;;  %v327_v41 = vpop.xlane.xlu1 %326 }
  0xfa   : > { %v324_v42 = vpop.xlane.xlu0 %323  ;;  %v337_v43 = vadd.f32 %v336_v40, %v335_v37  ;;  %v338_v44 = vsel %vm332_vm0, %v331_v38, 0.0  ;;  %v366_v45 = vmul.f32 %v327_v41, %v260_v30  ;;  %v369_v48 = vadd.f32 %v368_v39, %v367_v46 }
  0xfb   : > { %v365_v47 = vmul.f32 %v324_v42, %v259_v24 }
  0xfc   : > { %v339_v49 = vadd.f32 %v338_v44, %v337_v43  ;;  %v372_v51 = vsel %vm332_vm0, %v366_v45, 0.0 }
  0xfd   : > { %v370_v50 = vsel %vm332_vm0, %v365_v47, 0.0 }
  0xfe   : > { %v371_v52 = vadd.f32 %v370_v50, %v369_v48  ;;  %v340_v53 = vrot.slane %v339_v49, 4 }
 0x100   : > { %v341_v54 = vadd.f32 %v340_v53, %v339_v49  ;;  %v373_v55 = vadd.f32 %v372_v51, %v371_v52 }
 0x102   : > { %v342_v56 = vrot.slane %v341_v54, 2  ;;  %v374_v57 = vrot.slane %v373_v55, 4 }
 0x104   : > { %v375_v58 = vadd.f32 %v374_v57, %v373_v55  ;;  %v343_v59 = vadd.f32 %v342_v56, %v341_v54 }
 0x106   : > { %v376_v60 = vrot.slane %v375_v58, 2  ;;  %v344_v62 = vrot.slane %v343_v59, 1 }
 0x108   : > { %v377_v61 = vadd.f32 %v376_v60, %v375_v58  ;;  %v345_v7 = vadd.f32 %v344_v62, %v343_v59 }
 0x10a   : > { %v378_v63 = vrot.slane %v377_v61, 1  ;;  %v346_v17 = vmax.f32 %v345_v7, 0.0 }
 0x10c   : > { %v379_v3 = vadd.f32 %v378_v63, %v377_v61  ;;  %v348_v24 = vmul.f32 %v346_v17, %v262_v9  ;;  %v347_v25 = vmul.f32 %v346_v17, %v261_v12  ;;  %v350_v28 = vmul.f32 %v346_v17, %v264_v15 }
 0x10d   : > { %v349_v29 = vmul.f32 %v346_v17, %v263_v16 }
 0x10e   : > { %v380_v8 = vmax.f32 %v379_v3, 0.0  ;;  %v354_v26 = vsel %vm332_vm0, %v348_v24, 0.0  ;;  %v351_v27 = vsel %vm332_vm0, %v347_v25, 0.0  ;;  %v360_v30 = vsel %vm332_vm0, %v350_v28, 0.0 }
 0x10f   : > { %v357_v31 = vsel %vm332_vm0, %v349_v29, 0.0 }
 0x110   : > { %v382_v13 = vmul.f32 %v380_v8, %v262_v9  ;;  %v381_v14 = vmul.f32 %v380_v8, %v261_v12  ;;  %v384_v20 = vmul.f32 %v380_v8, %v264_v15  ;;  %v383_v21 = vmul.f32 %v380_v8, %v263_v16 }
 0x112   : > { %v388_v18 = vsel %vm332_vm0, %v382_v13, 0.0  ;;  %v385_v19 = vsel %vm332_vm0, %v381_v14, 0.0  ;;  %v394_v22 = vsel %vm332_vm0, %v384_v20, 0.0  ;;  %v391_v23 = vsel %vm332_vm0, %v383_v21, 0.0 }
 0x113   : > { %389 = vadd.xlane.f32.xlu1 %v388_v18  ;;  %386 = vadd.xlane.f32.xlu0 %v385_v19 }
 0x117   : > { %395 = vadd.xlane.f32.xlu1 %v394_v22  ;;  %392 = vadd.xlane.f32.xlu0 %v391_v23 }
 0x11b   : > { %355 = vadd.xlane.f32.xlu1 %v354_v26  ;;  %352 = vadd.xlane.f32.xlu0 %v351_v27 }
 0x11f   : > { %361 = vadd.xlane.f32.xlu1 %v360_v30  ;;  %358 = vadd.xlane.f32.xlu0 %v357_v31 }
 0x1a0   : > { %v390_v32 = vpop.xlane.xlu1 %389  ;;  %v387_v33 = vpop.xlane.xlu0 %386 }
 0x1a4   : > { %v396_v34 = vpop.xlane.xlu1 %395  ;;  %v393_v35 = vpop.xlane.xlu0 %392 }
 0x1a8   : > { %v356_v36 = vpop.xlane.xlu1 %355  ;;  %v353_v37 = vpop.xlane.xlu0 %352 }
 0x1a9   : > { %v398_v38 = vadd.f32 %v390_v32, %v356_v36  ;;  %v397_v39 = vadd.f32 %v387_v33, %v353_v37 }
 0x1ab   : > { %v2547_v40 = vmul.f32 -1.442695, %v398_v38  ;;  %v2546_v41 = vmul.f32 -1.442695, %v397_v39 }
 0x1ac   : > { %v362_v42 = vpop.xlane.xlu1 %361  ;;  %v359_v43 = vpop.xlane.xlu0 %358 }
 0x1ad   : > { %2764 = vpow2.f32 %v2547_v40  ;;  %v400_v44 = vadd.f32 %v396_v34, %v362_v42  ;;  %v399_v45 = vadd.f32 %v393_v35, %v359_v43 }
 0x1ae   : > { %2766 = vpow2.f32 %v2546_v41 }
 0x1af   : > { %v2549_v46 = vmul.f32 -1.442695, %v400_v44  ;;  %v2548_v47 = vmul.f32 -1.442695, %v399_v45 }
 0x1b1   : > { %2768 = vpow2.f32 %v2549_v46 }
 0x1b2   : > { %2770 = vpow2.f32 %v2548_v47 }
 0x1b7   : > { %v2765_v48 = vpop.eup %2764 }
 0x1b8   : > { %v2767_v49 = vpop.eup %2766  ;;  %v414_v50 = vadd.f32 1.0, %v2765_v48 }
 0x1b9   : > { %v413_v51 = vadd.f32 1.0, %v2767_v49 }
 0x1ba   : > { %2772 = vrcp.f32 %v414_v50 }
 0x1bb   : > { %v2769_v52 = vpop.eup %2768  ;;  %2774 = vrcp.f32 %v413_v51 }
 0x1bc   : > { %v2771_v53 = vpop.eup %2770  ;;  %v416_v54 = vadd.f32 1.0, %v2769_v52 }
 0x1bd   : > { %v415_v55 = vadd.f32 1.0, %v2771_v53 }
 0x1be   : > { %2776 = vrcp.f32 %v416_v54 }
 0x1bf   : > { %2778 = vrcp.f32 %v415_v55 }
 0x1c4   : > { %v2773_v56 = vpop.eup %2772 }
 0x1c5   : > { %v2775_v57 = vpop.eup %2774  ;;  %v3211_v60 = vmul.f32 %v2773_v56, %v3148_v5  ;;  %v3214_v61 = vmul.f32 %v2773_v56, %v3150_v6 }
 0x1c6   : > { %v3223_v3 = vmul.f32 %v2775_v57, %v3142_v2  ;;  %v3226_v7 = vmul.f32 %v2775_v57, %v3146_v4 }
 0x1c7   : > { %6172 = vst [vmem:[#allocation21_spill] sm:$0xff] %v3211_v60  ;;  %6173 = vst [vmem:[#allocation22_spill] sm:$0xff] %v3214_v61 }
 0x1c8   : > { %v2777_v58 = vpop.eup %2776  ;;  %6176 = vst [vmem:[#allocation25_spill] sm:$0xff] %v3223_v3  ;;  %6177 = vst [vmem:[#allocation26_spill] sm:$0xff] %v3226_v7  ;;  %v449_v28 = vadd.f32 %v3211_v60, %v3223_v3  ;;  %v458_v35 = vadd.f32 %v3214_v61, %v3226_v7 }
 0x1c9   : > { %v2779_v59 = vpop.eup %2778  ;;  %v3217_v62 = vmul.f32 %v2777_v58, %v3158_v10  ;;  %v3220_v63 = vmul.f32 %v2777_v58, %v3160_v11 }
 0x1ca   : > { %v3229_v8 = vmul.f32 %v2779_v59, %v3138_v0  ;;  %v3232_v5 = vmul.f32 %v2779_v59, %v3140_v1 }
 0x1cb   : > { %6174 = vst [vmem:[#allocation23_spill] sm:$0xff] %v3217_v62  ;;  %6175 = vst [vmem:[#allocation24_spill] sm:$0xff] %v3220_v63  ;;  %v470_v6 = vmax.f32 %v3211_v60, %v3217_v62  ;;  %v479_v10 = vmax.f32 %v3214_v61, %v3220_v63 }
 0x1cc   : > { %6178 = vst [vmem:[#allocation27_spill] sm:$0xff] %v3229_v8  ;;  %6179 = vst [vmem:[#allocation28_spill] sm:$0xff] %v3232_v5  ;;  %v469_v11 = vmax.f32 %v3223_v3, %v3229_v8  ;;  %v478_v2 = vmax.f32 %v3226_v7, %v3232_v5  ;;  %v450_v29 = vadd.f32 %v449_v28, %v3229_v8 }
 0x1cd   : > { %v459_v37 = vadd.f32 %v458_v35, %v3232_v5 }
 0x1ce   : > { %v471_v4 = vmax.f32 %v469_v11, %v470_v6  ;;  %v480_v9 = vmax.f32 %v478_v2, %v479_v10  ;;  %v451_v32 = vadd.f32 %v450_v29, %v3217_v62 }
 0x1cf   : > { %v460_v41 = vadd.f32 %v459_v37, %v3220_v63 }
 0x1d0   : > { %v472_v12 = vrot.slane %v471_v4, 4  ;;  %v481_v0 = vrot.slane %v480_v9, 4  ;;  %v452_v36 = vrot.slane %v451_v32, 4 }
 0x1d1   : > { %v461_v45 = vrot.slane %v460_v41, 4 }
 0x1d2   : > { %v473_v13 = vmax.f32 %v471_v4, %v472_v12  ;;  %v482_v14 = vmax.f32 %v480_v9, %v481_v0  ;;  %v453_v40 = vadd.f32 %v452_v36, %v451_v32 }
 0x1d3   : > { %v462_v49 = vadd.f32 %v461_v45, %v460_v41 }
 0x1d4   : > { %v474_v1 = vrot.slane %v473_v13, 2  ;;  %v483_v15 = vrot.slane %v482_v14, 2  ;;  %v454_v44 = vrot.slane %v453_v40, 2 }
 0x1d5   : > { %v463_v53 = vrot.slane %v462_v49, 2 }
 0x1d6   : > { %v475_v16 = vmax.f32 %v473_v13, %v474_v1  ;;  %v484_v17 = vmax.f32 %v482_v14, %v483_v15  ;;  %v455_v48 = vadd.f32 %v454_v44, %v453_v40 }
 0x1d7   : > { %v464_v57 = vadd.f32 %v463_v53, %v462_v49 }
 0x1d8   : > { %v476_v18 = vrot.slane %v475_v16, 1  ;;  %v485_v20 = vrot.slane %v484_v17, 1  ;;  %v456_v52 = vrot.slane %v455_v48, 1 }
 0x1d9   : > { %v465_v6 = vrot.slane %v464_v57, 1 }
 0x1da   : > { %v3242_v19 = vmax.f32 %v475_v16, %v476_v18  ;;  %v3248_v21 = vmax.f32 %v484_v17, %v485_v20  ;;  %v457_v56 = vadd.f32 %v456_v52, %v455_v48 }
 0x1db   : > { %v466_v4 = vadd.f32 %v465_v6, %v464_v57 }
 0x1dc   : > { %6180 = vst [vmem:[#allocation29_spill] sm:$0xff] %v3242_v19  ;;  %535 = vrot.lane.b32.xlu0 %v3242_v19, %s2917_s13  ;;  %496 = vrot.lane.b32.xlu1 %v3242_v19, %s2918_s25  ;;  %6181 = vst [vmem:[#allocation30_spill] sm:$0xff] %v3248_v21  ;;  %v3458_v10 = vmul.f32 0.03125, %v457_v56 }
 0x1dd   : > { %v3476_v0 = vmul.f32 0.03125, %v466_v4 }
 0x1e0   : > { %574 = vrot.lane.b32.xlu0 %v3242_v19, %s2919_s8  ;;  %498 = vrot.lane.b32.xlu1 %v3248_v21, %s2918_s25 }
 0x1e4   : > { %613 = vrot.lane.b32.xlu0 %v3242_v19, %s2920_s9  ;;  %537 = vrot.lane.b32.xlu1 %v3248_v21, %s2917_s13 }
 0x1e8   : > { %652 = vrot.lane.b32.xlu0 %v3242_v19, %s2921_s12  ;;  %576 = vrot.lane.b32.xlu1 %v3248_v21, %s2919_s8 }
 0x1ec   : > { %691 = vrot.lane.b32.xlu0 %v3242_v19, %s2922_s23  ;;  %615 = vrot.lane.b32.xlu1 %v3248_v21, %s2920_s9 }
 0x1f0   : > { %730 = vrot.lane.b32.xlu0 %v3242_v19, %s2923_s26  ;;  %654 = vrot.lane.b32.xlu1 %v3248_v21, %s2921_s12 }
 0x1f4   : > { %769 = vrot.lane.b32.xlu0 %v3242_v19, %s2924_s28  ;;  %693 = vrot.lane.b32.xlu1 %v3248_v21, %s2922_s23 }
 0x1f8   : > { %808 = vrot.lane.b32.xlu0 %v3242_v19, %s2925_s11  ;;  %732 = vrot.lane.b32.xlu1 %v3248_v21, %s2923_s26 }
 0x1fc   : > { %847 = vrot.lane.b32.xlu0 %v3242_v19, %s5977_s10  ;;  %771 = vrot.lane.b32.xlu1 %v3248_v21, %s2924_s28 }
 0x200   : > { %886 = vrot.lane.b32.xlu0 %v3242_v19, %s5979_s16  ;;  %810 = vrot.lane.b32.xlu1 %v3248_v21, %s2925_s11 }
 0x204   : > { %925 = vrot.lane.b32.xlu0 %v3242_v19, %s5981_s17  ;;  %849 = vrot.lane.b32.xlu1 %v3248_v21, %s5977_s10  ;;  %s5989_s10 = smov 18  }
 0x208   : > { %964 = vrot.lane.b32.xlu0 %v3242_v19, %s5983_s29  ;;  %888 = vrot.lane.b32.xlu1 %v3248_v21, %s5979_s16  ;;  %s5991_s16 = smov 17  }
 0x20c   : > { %1003 = vrot.lane.b32.xlu0 %v3242_v19, %s5985_s7  ;;  %927 = vrot.lane.b32.xlu1 %v3248_v21, %s5981_s17  ;;  %s5993_s17 = smov 16  }
 0x210   : > { %1042 = vrot.lane.b32.xlu0 %v3242_v19, %s5987_s15  ;;  %966 = vrot.lane.b32.xlu1 %v3248_v21, %s5983_s29  ;;  %s5995_s29 = smov 15  }
 0x214   : > { %1081 = vrot.lane.b32.xlu0 %v3242_v19, %s5989_s10  ;;  %1005 = vrot.lane.b32.xlu1 %v3248_v21, %s5985_s7  ;;  %s5997_s7 = smov 14  }
 0x218   : > { %1120 = vrot.lane.b32.xlu0 %v3242_v19, %s5991_s16  ;;  %1044 = vrot.lane.b32.xlu1 %v3248_v21, %s5987_s15  ;;  %s5999_s15 = smov 13  }
 0x21c   : > { %1159 = vrot.lane.b32.xlu0 %v3242_v19, %s5993_s17  ;;  %1083 = vrot.lane.b32.xlu1 %v3248_v21, %s5989_s10  ;;  %s6001_s10 = smov 3  }
 0x220   : > { %1198 = vrot.lane.b32.xlu0 %v3242_v19, %s5995_s29  ;;  %1122 = vrot.lane.b32.xlu1 %v3248_v21, %s5991_s16  ;;  %s6003_s16 = smov 2  }
 0x224   : > { %1237 = vrot.lane.b32.xlu0 %v3242_v19, %s5997_s7  ;;  %1161 = vrot.lane.b32.xlu1 %v3248_v21, %s5993_s17  ;;  %s6005_s17 = smov 1  }
 0x228   : > { %1276 = vrot.lane.b32.xlu0 %v3242_v19, %s5999_s15  ;;  %1200 = vrot.lane.b32.xlu1 %v3248_v21, %s5995_s29  ;;  %s6007_s29 = smov 127  }
 0x22c   : > { %1315 = vrot.lane.b32.xlu0 %v3242_v19, %s6001_s10  ;;  %1239 = vrot.lane.b32.xlu1 %v3248_v21, %s5997_s7  ;;  %s6060_s7 = smov 126  }
 0x230   : > { %1354 = vrot.lane.b32.xlu0 %v3242_v19, %s6003_s16  ;;  %1278 = vrot.lane.b32.xlu1 %v3248_v21, %s5999_s15  ;;  %s6009_s15 = smov 125  }
 0x234   : > { %1393 = vrot.lane.b32.xlu0 %v3242_v19, %s6005_s17  ;;  %1317 = vrot.lane.b32.xlu1 %v3248_v21, %s6001_s10  ;;  %s6011_s10 = smov 115  }
 0x238   : > { %1458 = vrot.lane.b32.xlu0 %v3242_v19, %s6007_s29  ;;  %1356 = vrot.lane.b32.xlu1 %v3248_v21, %s6003_s16  ;;  %s6057_s16 = smov 114  }
 0x23c   : > { %1497 = vrot.lane.b32.xlu0 %v3242_v19, %s6060_s7  ;;  %1395 = vrot.lane.b32.xlu1 %v3248_v21, %s6005_s17  ;;  %s6013_s17 = smov 113  }
 0x240   : > { %1536 = vrot.lane.b32.xlu0 %v3242_v19, %s6009_s15  ;;  %1460 = vrot.lane.b32.xlu1 %v3248_v21, %s6007_s29  ;;  %s6015_s29 = smov 112  }
 0x244   : > { %1575 = vrot.lane.b32.xlu0 %v3242_v19, %s6011_s10  ;;  %1499 = vrot.lane.b32.xlu1 %v3248_v21, %s6060_s7  ;;  %s3675_s7 = sld [smem:[#allocation6 + $0x39]] }
 0x248   : > { %1614 = vrot.lane.b32.xlu0 %v3242_v19, %s6057_s16  ;;  %1538 = vrot.lane.b32.xlu1 %v3248_v21, %s6009_s15  ;;  %s6017_s15 = smov 111  }
 0x24c   : > { %1653 = vrot.lane.b32.xlu0 %v3242_v19, %s6013_s17  ;;  %1577 = vrot.lane.b32.xlu1 %v3248_v21, %s6011_s10  ;;  %s6019_s10 = smov 110  }
 0x24e   : > { %v3362_v22 = vpop.permute.xlu0 %535  ;;  %v3364_v23 = vpop.permute.xlu1 %496 }
 0x250   : > { %1692 = vrot.lane.b32.xlu0 %v3242_v19, %s6015_s29  ;;  %1616 = vrot.lane.b32.xlu1 %v3248_v21, %s6057_s16  ;;  %s3662_s16 = sld [smem:[#allocation6 + $0x35]] }
 0x252   : > { %v3370_v24 = vpop.permute.xlu0 %574  ;;  %v3372_v25 = vpop.permute.xlu1 %498 }
 0x254   : > { %1731 = vrot.lane.b32.xlu0 %v3242_v19, %s6017_s15  ;;  %1655 = vrot.lane.b32.xlu1 %v3248_v21, %s6013_s17  ;;  %s6021_s17 = smov 109  }
 0x256   : > { %v3378_v26 = vpop.permute.xlu0 %613  ;;  %v3380_v27 = vpop.permute.xlu1 %537 }
 0x258   : > { %1770 = vrot.lane.b32.xlu0 %v3242_v19, %s6019_s10  ;;  %1694 = vrot.lane.b32.xlu1 %v3248_v21, %s6015_s29  ;;  %s6023_s29 = smov 99  }
 0x25a   : > { %v3389_v30 = vpop.permute.xlu0 %652  ;;  %v3391_v31 = vpop.permute.xlu1 %576 }
 0x25c   : > { %1809 = vrot.lane.b32.xlu0 %v3242_v19, %s6021_s17  ;;  %1733 = vrot.lane.b32.xlu1 %v3248_v21, %s6017_s15  ;;  %s6025_s15 = smov 98  }
 0x25e   : > { %v3398_v33 = vpop.permute.xlu0 %691  ;;  %v3400_v34 = vpop.permute.xlu1 %615 }
 0x260   : > { %1848 = vrot.lane.b32.xlu0 %v3242_v19, %s6023_s29  ;;  %1772 = vrot.lane.b32.xlu1 %v3248_v21, %s6019_s10  ;;  %s6027_s10 = smov 97  }
 0x262   : > { %v3409_v38 = vpop.permute.xlu0 %730  ;;  %v3411_v39 = vpop.permute.xlu1 %654 }
 0x264   : > { %1887 = vrot.lane.b32.xlu0 %v3242_v19, %s6025_s15  ;;  %1811 = vrot.lane.b32.xlu1 %v3248_v21, %s6021_s17  ;;  %s6055_s17 = smov 96  }
 0x266   : > { %v3418_v42 = vpop.permute.xlu0 %769  ;;  %v3420_v43 = vpop.permute.xlu1 %693 }
 0x268   : > { %1926 = vrot.lane.b32.xlu0 %v3242_v19, %s6027_s10  ;;  %1850 = vrot.lane.b32.xlu1 %v3248_v21, %s6023_s29  ;;  %s6052_s29 = smov 95  }
 0x26a   : > { %v3426_v46 = vpop.permute.xlu0 %808  ;;  %v3428_v47 = vpop.permute.xlu1 %732 }
 0x26c   : > { %1965 = vrot.lane.b32.xlu0 %v3242_v19, %s6055_s17  ;;  %1889 = vrot.lane.b32.xlu1 %v3248_v21, %s6025_s15  ;;  %s6049_s15 = smov 94  }
 0x26e   : > { %v3434_v50 = vpop.permute.xlu0 %847  ;;  %v3436_v51 = vpop.permute.xlu1 %771 }
 0x270   : > { %2004 = vrot.lane.b32.xlu0 %v3242_v19, %s6052_s29  ;;  %1928 = vrot.lane.b32.xlu1 %v3248_v21, %s6027_s10  ;;  %s6047_s10 = smov 93  }
 0x272   : > { %v3442_v54 = vpop.permute.xlu0 %886  ;;  %v3444_v55 = vpop.permute.xlu1 %810 }
 0x274   : > { %2043 = vrot.lane.b32.xlu0 %v3242_v19, %s6049_s15  ;;  %1967 = vrot.lane.b32.xlu1 %v3248_v21, %s6055_s17  ;;  %s3660_s17 = sld [smem:[#allocation6 + $0x34]] }
 0x276   : > { %v3450_v58 = vpop.permute.xlu0 %925  ;;  %v3452_v59 = vpop.permute.xlu1 %849 }
 0x278   : > { %2082 = vrot.lane.b32.xlu0 %v3242_v19, %s6047_s10  ;;  %2006 = vrot.lane.b32.xlu1 %v3248_v21, %s6052_s29  ;;  %s3658_s29 = sld [smem:[#allocation6 + $0x33]] }
 0x27a   : > { %v3460_v11 = vpop.permute.xlu0 %964  ;;  %v3462_v2 = vpop.permute.xlu1 %888 }
 0x27c   : > { %2045 = vrot.lane.b32.xlu1 %v3248_v21, %s6049_s15  ;;  %487 = vrot.lane.b32.xlu0 %v3458_v10, %s2918_s25  ;;  %s3671_s15 = sld [smem:[#allocation6 + $0x37]] }
 0x27e   : > { %v3468_v9 = vpop.permute.xlu0 %1003  ;;  %v3470_v12 = vpop.permute.xlu1 %927 }
 0x280   : > { %2084 = vrot.lane.b32.xlu1 %v3248_v21, %s6047_s10  ;;  %528 = vrot.lane.b32.xlu0 %v3458_v10, %s2917_s13  ;;  %s3673_s10 = sld [smem:[#allocation6 + $0x38]] }
 0x282   : > { %v3478_v13 = vpop.permute.xlu0 %1042  ;;  %v3480_v14 = vpop.permute.xlu1 %966 }
 0x284   : > { %489 = vrot.lane.b32.xlu1 %v3476_v0, %s2918_s25  ;;  %567 = vrot.lane.b32.xlu0 %v3458_v10, %s2919_s8  ;;  %s6185_s25 = smov 32  }
 0x286   : > { %v3486_v1 = vpop.permute.xlu0 %1081  ;;  %v3488_v15 = vpop.permute.xlu1 %1005 }
 0x288   : > { %530 = vrot.lane.b32.xlu1 %v3476_v0, %s2917_s13  ;;  %606 = vrot.lane.b32.xlu0 %v3458_v10, %s2920_s9  ;;  %s6183_s13 = smov 33  }
 0x28a   : > { %v3494_v16 = vpop.permute.xlu0 %1120  ;;  %v3496_v17 = vpop.permute.xlu1 %1044 }
 0x28c   : > { %569 = vrot.lane.b32.xlu1 %v3476_v0, %s2919_s8  ;;  %645 = vrot.lane.b32.xlu0 %v3458_v10, %s2921_s12  ;;  %s6188_s8 = smov 31  }
 0x28e   : > { %v3502_v18 = vpop.permute.xlu0 %1159  ;;  %v3504_v20 = vpop.permute.xlu1 %1083 }
 0x290   : > { %608 = vrot.lane.b32.xlu1 %v3476_v0, %s2920_s9  ;;  %684 = vrot.lane.b32.xlu0 %v3458_v10, %s2922_s23  ;;  %s6191_s9 = smov 30  }
 0x292   : > { %v3510_v28 = vpop.permute.xlu0 %1198  ;;  %v3512_v29 = vpop.permute.xlu1 %1122 }
 0x294   : > { %647 = vrot.lane.b32.xlu1 %v3476_v0, %s2921_s12  ;;  %723 = vrot.lane.b32.xlu0 %v3458_v10, %s2923_s26  ;;  %s6194_s12 = smov 29  }
 0x296   : > { %v3518_v32 = vpop.permute.xlu0 %1237  ;;  %v3520_v35 = vpop.permute.xlu1 %1161 }
 0x298   : > { %686 = vrot.lane.b32.xlu1 %v3476_v0, %s2922_s23  ;;  %762 = vrot.lane.b32.xlu0 %v3458_v10, %s2924_s28  ;;  %s6197_s23 = smov 19  }
 0x29a   : > { %v3526_v36 = vpop.permute.xlu0 %1276  ;;  %v3528_v37 = vpop.permute.xlu1 %1200 }
 0x29c   : > { %725 = vrot.lane.b32.xlu1 %v3476_v0, %s2923_s26  ;;  %801 = vrot.lane.b32.xlu0 %v3458_v10, %s2925_s11  ;;  %s6200_s26 = smov 18  }
 0x29e   : > { %v3534_v40 = vpop.permute.xlu0 %1315  ;;  %v3536_v41 = vpop.permute.xlu1 %1239 }
 0x29f   : > { %6182 = vst [vmem:[#allocation31_spill] sm:$0xff] %v3534_v40 }
 0x2a0   : > { %764 = vrot.lane.b32.xlu1 %v3476_v0, %s2924_s28  ;;  %840 = vrot.lane.b32.xlu0 %v3458_v10, %s6183_s13  ;;  %s6203_s28 = smov 17  }
 0x2a2   : > { %v3542_v44 = vpop.permute.xlu0 %1354  ;;  %v3544_v45 = vpop.permute.xlu1 %1278 }
 0x2a3   : > { %6184 = vst [vmem:[#allocation32_spill] sm:$0xff] %v3542_v44 }
 0x2a4   : > { %803 = vrot.lane.b32.xlu1 %v3476_v0, %s2925_s11  ;;  %879 = vrot.lane.b32.xlu0 %v3458_v10, %s6185_s25  ;;  %s6206_s11 = smov 16  }
 0x2a6   : > { %v3550_v48 = vpop.permute.xlu0 %1393  ;;  %v3552_v49 = vpop.permute.xlu1 %1317 }
 0x2a7   : > { %6186 = vst [vmem:[#allocation33_spill] sm:$0xff] %v3550_v48  ;;  %6187 = vst [vmem:[#allocation34_spill] sm:$0xff] %v3552_v49 }
 0x2a8   : > { %842 = vrot.lane.b32.xlu1 %v3476_v0, %s6183_s13  ;;  %918 = vrot.lane.b32.xlu0 %v3458_v10, %s6188_s8  ;;  %s6209_s13 = smov 15  }
 0x2aa   : > { %v3558_v52 = vpop.permute.xlu0 %1458  ;;  %v3560_v53 = vpop.permute.xlu1 %1356 }
 0x2ab   : > { %6189 = vst [vmem:[#allocation35_spill] sm:$0xff] %v3558_v52  ;;  %6190 = vst [vmem:[#allocation36_spill] sm:$0xff] %v3560_v53 }
 0x2ac   : > { %881 = vrot.lane.b32.xlu1 %v3476_v0, %s6185_s25  ;;  %957 = vrot.lane.b32.xlu0 %v3458_v10, %s6191_s9  ;;  %s6212_s25 = smov 14  }
 0x2ae   : > { %v3566_v56 = vpop.permute.xlu0 %1497  ;;  %v3568_v57 = vpop.permute.xlu1 %1395 }
 0x2af   : > { %6192 = vst [vmem:[#allocation37_spill] sm:$0xff] %v3566_v56  ;;  %6193 = vst [vmem:[#allocation38_spill] sm:$0xff] %v3568_v57 }
 0x2b0   : > { %920 = vrot.lane.b32.xlu1 %v3476_v0, %s6188_s8  ;;  %996 = vrot.lane.b32.xlu0 %v3458_v10, %s6194_s12  ;;  %s6215_s8 = smov 13  }
 0x2b2   : > { %v3574_v6 = vpop.permute.xlu0 %1536  ;;  %v3576_v4 = vpop.permute.xlu1 %1460 }
 0x2b3   : > { %6195 = vst [vmem:[#allocation39_spill] sm:$0xff] %v3574_v6  ;;  %6196 = vst [vmem:[#allocation40_spill] sm:$0xff] %v3576_v4 }
 0x2b4   : > { %959 = vrot.lane.b32.xlu1 %v3476_v0, %s6191_s9  ;;  %1035 = vrot.lane.b32.xlu0 %v3458_v10, %s6197_s23  ;;  %s3630_s9 = sld [smem:[#allocation6 + $0x18]] }
 0x2b6   : > { %v3582_v63 = vpop.permute.xlu0 %1575  ;;  %v3584_v5 = vpop.permute.xlu1 %1499 }
 0x2b7   : > { %6198 = vst [vmem:[#allocation41_spill] sm:$0xff] %v3582_v63  ;;  %6199 = vst [vmem:[#allocation42_spill] sm:$0xff] %v3584_v5 }
 0x2b8   : > { %998 = vrot.lane.b32.xlu1 %v3476_v0, %s6194_s12  ;;  %1074 = vrot.lane.b32.xlu0 %v3458_v10, %s6200_s26  ;;  %s3636_s12 = sld [smem:[#allocation6 + $0x49]] }
 0x2ba   : > { %v3590_v61 = vpop.permute.xlu0 %1614  ;;  %v3592_v7 = vpop.permute.xlu1 %1538 }
 0x2bb   : > { %6201 = vst [vmem:[#allocation43_spill] sm:$0xff] %v3590_v61  ;;  %6202 = vst [vmem:[#allocation44_spill] sm:$0xff] %v3592_v7 }
 0x2bc   : > { %1037 = vrot.lane.b32.xlu1 %v3476_v0, %s6197_s23  ;;  %1113 = vrot.lane.b32.xlu0 %v3458_v10, %s6203_s28  ;;  %s6218_s23 = smov 3  }
 0x2be   : > { %v3598_v62 = vpop.permute.xlu0 %1653  ;;  %v3600_v8 = vpop.permute.xlu1 %1577  ;;  %v1430_v7 = vstv %s3636_s12  ;;  %s3703_s12 = sld [smem:[#allocation6 + $0x3e]] }
 0x2bf   : > { %6204 = vst [vmem:[#allocation45_spill] sm:$0xff] %v3598_v62  ;;  %6205 = vst [vmem:[#allocation46_spill] sm:$0xff] %v3600_v8 }
 0x2c0   : > { %1076 = vrot.lane.b32.xlu1 %v3476_v0, %s6200_s26  ;;  %1152 = vrot.lane.b32.xlu0 %v3458_v10, %s6206_s11  ;;  %s3642_s26 = sld [smem:[#allocation6 + $0x31]] }
 0x2c2   : > { %v3606_v60 = vpop.permute.xlu0 %1692  ;;  %v3608_v3 = vpop.permute.xlu1 %1616 }
 0x2c3   : > { %6207 = vst [vmem:[#allocation47_spill] sm:$0xff] %v3606_v60  ;;  %6208 = vst [vmem:[#allocation48_spill] sm:$0xff] %v3608_v3  ;;  %v491_v3 = vlaneseq }
 0x2c4   : > { %1115 = vrot.lane.b32.xlu1 %v3476_v0, %s6203_s28  ;;  %1191 = vrot.lane.b32.xlu0 %v3458_v10, %s6209_s13  ;;  %s6223_s28 = smov 2  }
 0x2c5   : > { %v515_v8 = vshrl.u32 %v491_v3, 7  ;;  %v3701_v4 = vand.u32 127, %v491_v3 }
 0x2c6   : > { %v3614_v61 = vpop.permute.xlu0 %1731  ;;  %v3616_v62 = vpop.permute.xlu1 %1655 }
 0x2c7   : > { %6210 = vst [vmem:[#allocation49_spill] sm:$0xff] %v3614_v61  ;;  %6211 = vst [vmem:[#allocation50_spill] sm:$0xff] %v3616_v62  ;;  %v3686_v56 = vsub.s32 1, %v515_v8  ;;  %vm493_vm1 = vcmp.lt.s32.totalorder %v3701_v4, 51  ;;  %vm532_vm2 = vcmp.lt.s32.totalorder %v3701_v4, 50  ;;  %vm571_vm3 = vcmp.lt.s32.totalorder %v3701_v4, 49 }
 0x2c8   : > { %1154 = vrot.lane.b32.xlu1 %v3476_v0, %s6206_s11  ;;  %1230 = vrot.lane.b32.xlu0 %v3458_v10, %s6212_s25  ;;  %s3735_s11 = sld [smem:[#allocation6 + $0x47]]  ;;  %vm610_vm4 = vcmp.lt.s32.totalorder %v3701_v4, 48  ;;  %vm649_vm5 = vcmp.lt.s32.totalorder %v3701_v4, 47  ;;  %vm688_vm6 = vcmp.lt.s32.totalorder %v3701_v4, 46  ;;  %vm727_vm7 = vcmp.lt.s32.totalorder %v3701_v4, 45 }
 0x2c9   : > { %vm766_vm8 = vcmp.lt.s32.totalorder %v3701_v4, 35  ;;  %vm805_vm9 = vcmp.lt.s32.totalorder %v3701_v4, 34  ;;  %vm844_vm10 = vcmp.lt.s32.totalorder %v3701_v4, 33  ;;  %v539_v53 = vsel %vm532_vm2, %v3362_v22, %v3380_v27 }
 0x2ca   : > { %v3622_v63 = vpop.permute.xlu0 %1770  ;;  %v3624_v60 = vpop.permute.xlu1 %1694  ;;  %vm6115_vm11 = vcmp.lt.s32.totalorder %v3701_v4, 32  ;;  %vm922_vm12 = vcmp.lt.s32.totalorder %v3701_v4, 31  ;;  %vm6117_vm13 = vcmp.lt.s32.totalorder %v3701_v4, 30  ;;  %vm1000_vm14 = vcmp.lt.s32.totalorder %v3701_v4, 29 }
 0x2cb   : > { %6213 = vst [vmem:[#allocation51_spill] sm:$0xff] %v3622_v63  ;;  %6214 = vst [vmem:[#allocation52_spill] sm:$0xff] %v3624_v60  ;;  %vm1039_vm15 = vcmp.lt.s32.totalorder %v3701_v4, 19  ;;  %vm1078_vm0 = vcmp.lt.s32.totalorder %v3701_v4, 18 }
 0x2cc   : > { %1193 = vrot.lane.b32.xlu1 %v3476_v0, %s6209_s13  ;;  %1269 = vrot.lane.b32.xlu0 %v3458_v10, %s6215_s8  ;;  %s3669_s13 = sld [smem:[#allocation6 + $0x36]] }
 0x2ce   : > { %v3632_v61 = vpop.permute.xlu0 %1809  ;;  %v3634_v62 = vpop.permute.xlu1 %1733 }
 0x2cf   : > { %6216 = vst [vmem:[#allocation53_spill] sm:$0xff] %v3632_v61  ;;  %6217 = vst [vmem:[#allocation54_spill] sm:$0xff] %v3634_v62  ;;  %v3651_v61 = vld [vmem:[%s6221_s3 + $0x12] ss:$8 sm:$0x3] }
 0x2d0   : > { %1232 = vrot.lane.b32.xlu1 %v3476_v0, %s6212_s25  ;;  %1308 = vrot.lane.b32.xlu0 %v3458_v10, %s6218_s23  ;;  %6222 = vst [vmem:[#allocation57_spill] sm:$0xff] %v3651_v61  ;;  %v2535_v62 = vld [vmem:[%s6221_s3 + $0x3] ss:$8 sm:$0x3]  ;;  %s3656_s25 = sld [smem:[#allocation6 + $0x32]]  ;;  %s6237_s3 = smov 126  }
 0x2d1   : > { %v1435_v52 = vmul.f32 %v3651_v61, %v2535_v62  ;;  %v1432_v62 = vmul.f32 %v1430_v7, %v3248_v21 }
 0x2d2   : > { %v3644_v63 = vpop.permute.xlu0 %1848  ;;  %v3646_v60 = vpop.permute.xlu1 %1772 }
 0x2d3   : > { %6219 = vst [vmem:[#allocation55_spill] sm:$0xff] %v3644_v63  ;;  %6220 = vst [vmem:[#allocation56_spill] sm:$0xff] %v3646_v60  ;;  %v1427_v63 = vstv %s3630_s9  ;;  %s3690_s9 = sld [smem:[#allocation6 + $0x3c]]  ;;  %v1444_v3 = vrot.slane %v1435_v52, %v3686_v56 }
 0x2d4   : > { %1271 = vrot.lane.b32.xlu1 %v3476_v0, %s6215_s8  ;;  %1347 = vrot.lane.b32.xlu0 %v3458_v10, %s6223_s28  ;;  %s3684_s8 = sld [smem:[#allocation6 + $0x3b]]  ;;  %v1429_v5 = vmul.f32 %v1427_v63, %v3476_v0 }
 0x2d6   : > { %v3677_v60 = vpop.permute.xlu0 %1887  ;;  %v3679_v6 = vpop.permute.xlu1 %1811 }
 0x2d7   : > { %6224 = vst [vmem:[#allocation58_spill] sm:$0xff] %v3677_v60  ;;  %6225 = vst [vmem:[#allocation59_spill] sm:$0xff] %v3679_v6  ;;  %v3698_v60 = vsub.s32 0, %v515_v8  ;;  %v1428_v6 = vmul.f32 %v1427_v63, %v3458_v10  ;;  %v1431_v8 = vmul.f32 %v1430_v7, %v3242_v19  ;;  %v1434_v63 = vadd.f32 %v1432_v62, %v1429_v5 }
 0x2d8   : > { %1310 = vrot.lane.b32.xlu1 %v3476_v0, %s6218_s23  ;;  %1386 = vrot.lane.b32.xlu0 %v3458_v10, %s6227_s2  ;;  %s3717_s23 = sld [smem:[#allocation6 + $0x42]] }
 0x2d9   : > { %v1440_v7 = vrot.slane %v1435_v52, %v3698_v60 }
 0x2da   : > { %v3712_v48 = vpop.permute.xlu0 %1926  ;;  %v3714_v57 = vpop.permute.xlu1 %1850 }
 0x2db   : > { %6228 = vst [vmem:[#allocation61_spill] sm:$0xff] %v3712_v48  ;;  %6229 = vst [vmem:[#allocation62_spill] sm:$0xff] %v3714_v57  ;;  %v1433_v48 = vadd.f32 %v1431_v8, %v1428_v6  ;;  %v3754_v8 = vmul.f32 %v1444_v3, %v1434_v63  ;;  %v500_v57 = vsel %vm493_vm1, %v3364_v23, %v3372_v25 }
 0x2dc   : > { %1349 = vrot.lane.b32.xlu1 %v3476_v0, %s6223_s28  ;;  %1451 = vrot.lane.b32.xlu0 %v3458_v10, %s6230_s6  ;;  %s3741_s28 = sld [smem:[#allocation6 + $0x48]]  ;;  %v501_v6 = vsel %vm493_vm1, %v3372_v25, %v3364_v23  ;;  %v579_v23 = vsel %vm571_vm3, %v3391_v31, %v3370_v24  ;;  %v6247_v25 = vstv %s3656_s25  ;;  %s6254_s25 = sld [smem:[#allocation102_spill]] }
 0x2dd   : > { %6234 = vst [vmem:[#allocation66_spill] sm:$0xff] %v3754_v8  ;;  %v3767_v63 = vmul.f32 %v1440_v7, %v1433_v48  ;;  %v540_v48 = vsel %vm532_vm2, %v3380_v27, %v3362_v22  ;;  %v578_v22 = vsel %vm571_vm3, %v3370_v24, %v3391_v31  ;;  %v618_v27 = vsel %vm610_vm4, %v3400_v34, %v3378_v26 }
 0x2de   : > { %v3743_v21 = vpop.permute.xlu0 %1965  ;;  %v3745_v52 = vpop.permute.xlu1 %1889  ;;  %v6245_v24 = vstv %s3642_s26  ;;  %v3855_v3 = vmul.f32 %v6247_v25, %v540_v48  ;;  %v6248_v5 = vmov %v6247_v25  ;;  %v734_v25 = vsel %vm727_vm7, %v3409_v38, %v3428_v47  ;;  %s4046_s26 = sld [smem:[#allocation6 + $0x4]] }
 0x2df   : > { %6231 = vst [vmem:[#allocation63_spill] sm:$0xff] %v3743_v21  ;;  %6232 = vst [vmem:[#allocation64_spill] sm:$0xff] %v3745_v52  ;;  %v3847_v31 = vmul.f32 %v6245_v24, %v501_v6  ;;  %v6246_v21 = vmov %v6245_v24  ;;  %v3859_v62 = vmul.f32 %v6248_v5, %v539_v53  ;;  %v657_v53 = vsel %vm649_vm5, %v3411_v39, %v3389_v30 }
 0x2e0   : > { %1388 = vrot.lane.b32.xlu1 %v3476_v0, %s6227_s2  ;;  %1490 = vrot.lane.b32.xlu0 %v3458_v10, %s6237_s3  ;;  %6238 = vst [vmem:[#allocation69_spill] sm:$0xff] %v3767_v63  ;;  %s3789_s2 = sld [smem:[#allocation6 + $0x4e]]  ;;  %v3851_v52 = vmul.f32 %v6246_v21, %v500_v57  ;;  %v656_v21 = vsel %vm649_vm5, %v3389_v30, %v3411_v39  ;;  %v6253_v6 = vstv %s3660_s17 }
 0x2e1   : > { %v3890_v48 = vmul.f32 %v6253_v6, %v618_v27  ;;  %v695_v30 = vsel %vm688_vm6, %v3398_v33, %v3420_v43  ;;  %v696_v39 = vsel %vm688_vm6, %v3420_v43, %v3398_v33  ;;  %v735_v33 = vsel %vm727_vm7, %v3428_v47, %v3409_v38  ;;  %s4119_s17 = sld [smem:[#allocation6 + $0x6]] }
 0x2e2   : > { %v3777_v8 = vpop.permute.xlu0 %2004  ;;  %v3779_v44 = vpop.permute.xlu1 %1928  ;;  %v774_v43 = vsel %vm766_vm8, %v3436_v51, %v3418_v42  ;;  %v6257_v38 = vmov %v6253_v6  ;;  %v6258_v27 = vstv %s3662_s16  ;;  %s4583_s16 = sld [smem:[#allocation6 + $0xe]] }
 0x2e3   : > { %6239 = vst [vmem:[#allocation70_spill] sm:$0xff] %v3777_v8  ;;  %6240 = vst [vmem:[#allocation71_spill] sm:$0xff] %v3779_v44  ;;  %v3936_v24 = vmul.f32 %v6258_v27, %v657_v53 }
 0x2e4   : > { %1453 = vrot.lane.b32.xlu1 %v3476_v0, %s6230_s6  ;;  %1529 = vrot.lane.b32.xlu0 %v3458_v10, %s6241_s1  ;;  %s3839_s6 = sld [smem:[#allocation6 + $0x4f]] }
 0x2e6   : > { %v3817_v7 = vpop.permute.xlu0 %2043  ;;  %v3819_v63 = vpop.permute.xlu1 %1967 }
 0x2e7   : > { %6242 = vst [vmem:[#allocation72_spill] sm:$0xff] %v3817_v7  ;;  %6243 = vst [vmem:[#allocation73_spill] sm:$0xff] %v3819_v63  ;;  %v6249_v7 = vstv %s3658_s29  ;;  %v617_v63 = vsel %vm610_vm4, %v3378_v26, %v3400_v34  ;;  %s6348_s29 = smov 94  }
 0x2e8   : > { %1492 = vrot.lane.b32.xlu1 %v3476_v0, %s6237_s3  ;;  %1568 = vrot.lane.b32.xlu0 %v3458_v10, %s6244_s5  ;;  %v3863_v8 = vmul.f32 %v6249_v7, %v579_v23  ;;  %s3882_s3 = sld [smem:[#allocation6]]  ;;  %v6252_v26 = vmov %v6249_v7  ;;  %v3903_v7 = vld [vmem:[%s6254_s25] ss:$8 sm:$0x3]  ;;  %v3932_v47 = vmul.f32 %v6257_v38, %v617_v63  ;;  %v813_v63 = vsel %vm805_vm9, %v3444_v55, %v3426_v46 }
 0x2e9   : > { %v3886_v34 = vmul.f32 %v6252_v26, %v578_v22  ;;  %v3908_v23 = vld [vmem:[%s6254_s25 + $0x7] ss:$8 sm:$0x3]  ;;  %v6259_v26 = vmov %v6258_v27  ;;  %v773_v22 = vsel %vm766_vm8, %v3418_v42, %v3436_v51  ;;  %v3970_v51 = vld [vmem:[%s6254_s25 + $0x10] ss:$8 sm:$0x3]  ;;  %v6265_v38 = vstv %s3673_s10 }
 0x2ea   : > { %v3878_v57 = vpop.permute.xlu0 %2082  ;;  %v3880_v5 = vpop.permute.xlu1 %2006  ;;  %6255 = vst [vmem:[#allocation76_spill] sm:$0xff] %v3908_v23  ;;  %v3940_v6 = vmul.f32 %v6259_v26, %v656_v21  ;;  %v3965_v42 = vmul.f32 %v3908_v23, %v3903_v7  ;;  %v3982_v27 = vmul.f32 %v6265_v38, %v774_v43  ;;  %v812_v26 = vsel %vm805_vm9, %v3426_v46, %v3444_v55  ;;  %s4011_s10 = sld [smem:[#allocation6 + $0x2]] }
 0x2eb   : > { %6250 = vst [vmem:[#allocation74_spill] sm:$0xff] %v3878_v57  ;;  %6251 = vst [vmem:[#allocation75_spill] sm:$0xff] %v3880_v5  ;;  %v6260_v57 = vstv %s3669_s13  ;;  %v6266_v40 = vmov %v6265_v38  ;;  %v852_v43 = vsel %vm844_vm10, %v3452_v59, %v3434_v50  ;;  %v6268_v55 = vstv %s3675_s7  ;;  %s6312_s7 = smov 109   ;;  %s4615_s13 = sld [smem:[#allocation6 + $0xf]] }
 0x2ec   : > { %1531 = vrot.lane.b32.xlu1 %v3476_v0, %s6241_s1  ;;  %1607 = vrot.lane.b32.xlu0 %v3458_v10, %s6256_s22  ;;  %v3948_v5 = vmul.f32 %v6260_v57, %v696_v39  ;;  %v6261_v44 = vmov %v6260_v57  ;;  %v930_v46 = vsel %vm922_vm12, %v3470_v12, %v3450_v58  ;;  %s4085_s1 = sld [smem:[#allocation6 + $0x5]] }
 0x2ed   : > { %v3952_v19 = vmul.f32 %v6261_v44, %v695_v30  ;;  %v6263_v44 = vstv %s3671_s15  ;;  %s6267_s15 = smov 113  }
 0x2ee   : > { %v3959_v21 = vpop.permute.xlu1 %2045  ;;  %v3961_v53 = vpop.permute.xlu0 %487  ;;  %v3974_v57 = vmul.f32 %v6263_v44, %v735_v33  ;;  %v6264_v30 = vmov %v6263_v44  ;;  %v3995_v33 = vmul.f32 %v6266_v40, %v773_v22  ;;  %v4015_v40 = vmul.f32 %v6268_v55, %v813_v63 }
 0x2ef   : > { %6262 = vst [vmem:[#allocation77_spill] sm:$0xff] %v3959_v21  ;;  %v3978_v39 = vmul.f32 %v6264_v30, %v734_v25  ;;  %v3991_v21 = vld [vmem:[%s6254_s25 + $0x11] ss:$8 sm:$0x3]  ;;  %v851_v25 = vsel %vm844_vm10, %v3434_v50, %v3452_v59  ;;  %v890_v50 = vsel %vm6115_vm11, %v3442_v54, %v3462_v2  ;;  %v891_v59 = vsel %vm6115_vm11, %v3462_v2, %v3442_v54 }
 0x2f0   : > { %1570 = vrot.lane.b32.xlu1 %v3476_v0, %s6244_s5  ;;  %1646 = vrot.lane.b32.xlu0 %v3458_v10, %s6267_s15  ;;  %6269 = vst [vmem:[#allocation78_spill] sm:$0xff] %v4015_v40  ;;  %v4027_v22 = vmul.f32 %v3970_v51, %v3903_v7  ;;  %s4029_s5 = sld [smem:[#allocation6 + $0x3]]  ;;  %v6270_v63 = vmov %v6268_v55  ;;  %v4044_v54 = vmul.f32 %v3991_v21, %v3903_v7  ;;  %v6273_v2 = vstv %s3682_s0  ;;  %s6281_s0 = smov 112  }
 0x2f1   : > { %v4033_v44 = vmul.f32 %v6270_v63, %v812_v26  ;;  %v4050_v49 = vmul.f32 %v6273_v2, %v852_v43  ;;  %v6275_v26 = vmov %v6273_v2  ;;  %v929_v55 = vsel %vm922_vm12, %v3450_v58, %v3470_v12  ;;  %v4083_v58 = vld [vmem:[%s6254_s25 + $0x13] ss:$8 sm:$0x3] }
 0x2f2   : > { %v4035_v30 = vpop.permute.xlu1 %2084  ;;  %v4037_v38 = vpop.permute.xlu0 %528  ;;  %v4054_v63 = vmul.f32 %v6275_v26, %v851_v25  ;;  %vm1117_vm11 = vcmp.lt.s32.totalorder %v3701_v4, 17  ;;  %6282 = vst [vmem:[#allocation85_spill] sm:$0xff] %v4083_v58  ;;  %v968_v12 = vsel %vm6117_vm13, %v3460_v11, %v3480_v14  ;;  %v6285_v26 = vstv %s3690_s9  ;;  %s6293_s9 = smov 111  }
 0x2f3   : > { %6271 = vst [vmem:[#allocation79_spill] sm:$0xff] %v4033_v44  ;;  %6272 = vst [vmem:[#allocation80_spill] sm:$0xff] %v4035_v30  ;;  %v6277_v30 = vstv %s3684_s8  ;;  %s6283_s8 = sld [smem:[#allocation60_spill]] }
 0x2f4   : > { %6274 = vst [vmem:[#allocation81_spill] sm:$0xff] %v4050_v49  ;;  %6276 = vst [vmem:[#allocation82_spill] sm:$0xff] %v4054_v63  ;;  %v4067_v43 = vmul.f32 %v6277_v30, %v891_v59  ;;  %v6279_v2 = vmov %v6277_v30  ;;  %1609 = vrot.lane.b32.xlu1 %v3476_v0, %s6256_s22  ;;  %1685 = vrot.lane.b32.xlu0 %v3458_v10, %s6281_s0  ;;  %v4099_v30 = vmul.f32 %v3651_v61, %v3903_v7  ;;  %s4559_s22 = sld [smem:[#allocation6 + $0xd]] }
 0x2f5   : > { %v4071_v25 = vmul.f32 %v6279_v2, %v890_v50  ;;  %v969_v50 = vsel %vm6117_vm13, %v3480_v14, %v3460_v11  ;;  %v4104_v2 = vld [vmem:[%s6254_s25 + $0x14] ss:$8 sm:$0x3]  ;;  %v4108_v63 = vmul.f32 %v6285_v26, %v930_v46  ;;  %vm1156_vm13 = vcmp.lt.s32.totalorder %v3701_v4, 16 }
 0x2f6   : > { %6278 = vst [vmem:[#allocation83_spill] sm:$0xff] %v4067_v43  ;;  %6284 = vst [vmem:[#allocation86_spill] sm:$0xff] %v4104_v2  ;;  %v490_v14 = vpop.permute.xlu1 %489  ;;  %v568_v59 = vpop.permute.xlu0 %567  ;;  %v1007_v46 = vsel %vm1000_vm14, %v3468_v9, %v3488_v15 }
 0x2f7   : > { %6280 = vst [vmem:[#allocation84_spill] sm:$0xff] %v4071_v25  ;;  %6286 = vst [vmem:[#allocation87_spill] sm:$0xff] %v4108_v63  ;;  %v6287_v25 = vmov %v6285_v26  ;;  %v4133_v26 = vmul.f32 %v4083_v58, %v3903_v7 }
 0x2f8   : > { %v4112_v11 = vmul.f32 %v6287_v25, %v929_v55  ;;  %v1008_v55 = vsel %vm1000_vm14, %v3488_v15, %v3468_v9  ;;  %1648 = vrot.lane.b32.xlu1 %v3476_v0, %s6267_s15  ;;  %1724 = vrot.lane.b32.xlu0 %v3458_v10, %s6293_s9  ;;  %v582_v9 = vstv %s4011_s10  ;;  %v4150_v15 = vmul.f32 %v4104_v2, %v3903_v7  ;;  %s6303_s10 = smov 110   ;;  %s4639_s15 = sld [smem:[#allocation6 + $0x10]] }
 0x2f9   : > { %v6289_v49 = vstv %s6283_s8  ;;  %v6294_v25 = vstv %s3703_s12  ;;  %s4191_s12 = sld [smem:[#allocation6 + $0x7]]  ;;  %s4529_s8 = sld [smem:[#allocation6 + $0xc]] }
 0x2fa   : > { %6288 = vst [vmem:[#allocation88_spill] sm:$0xff] %v4112_v11  ;;  %v4137_v43 = vmul.f32 %v6289_v49, %v969_v50  ;;  %v6291_v11 = vmov %v6289_v49  ;;  %v1046_v49 = vsel %vm1039_vm15, %v3478_v13, %v3496_v17  ;;  %v531_v58 = vpop.permute.xlu1 %530  ;;  %v607_v44 = vpop.permute.xlu0 %606  ;;  %v1124_v50 = vsel %vm1117_vm11, %v3494_v16, %v3512_v29 }
 0x2fb   : > { %v4141_v63 = vmul.f32 %v6291_v11, %v968_v12  ;;  %v1047_v12 = vsel %vm1039_vm15, %v3496_v17, %v3478_v13  ;;  %v4177_v13 = vld [vmem:[%s6254_s25 + $0x15] ss:$8 sm:$0x3]  ;;  %v1085_v17 = vsel %vm1078_vm0, %v3486_v1, %v3504_v20 }
 0x2fc   : > { %6290 = vst [vmem:[#allocation89_spill] sm:$0xff] %v4137_v43  ;;  %v6296_v43 = vmov %v6294_v25  ;;  %6298 = vst [vmem:[#allocation93_spill] sm:$0xff] %v4177_v13  ;;  %1687 = vrot.lane.b32.xlu1 %v3476_v0, %s6281_s0  ;;  %1763 = vrot.lane.b32.xlu0 %v3458_v10, %s6303_s10  ;;  %s2961_s0 = smov 80  }
 0x2fd   : > { %6292 = vst [vmem:[#allocation90_spill] sm:$0xff] %v4141_v63  ;;  %v4165_v63 = vmul.f32 %v6294_v25, %v1008_v55  ;;  %v4169_v2 = vmul.f32 %v6296_v43, %v1007_v46  ;;  %v1086_v43 = vsel %vm1078_vm0, %v3504_v20, %v3486_v1  ;;  %v6299_v25 = vstv %s3705_s4  ;;  %s5315_s4 = sld [smem:[#allocation6 + $0x29]] }
 0x2fe   : > { %v4195_v40 = vmul.f32 %v6299_v25, %v1047_v12  ;;  %v6301_v11 = vmov %v6299_v25  ;;  %v533_v55 = vsel %vm532_vm2, %v4037_v38, %v531_v58  ;;  %v534_v12 = vsel %vm532_vm2, %v531_v58, %v4037_v38  ;;  %v4223_v25 = vld [vmem:[%s6254_s25 + $0x1] ss:$8 sm:$0x3]  ;;  %v646_v1 = vpop.permute.xlu0 %645 }
 0x2ff   : > { %6295 = vst [vmem:[#allocation91_spill] sm:$0xff] %v4165_v63  ;;  %6297 = vst [vmem:[#allocation92_spill] sm:$0xff] %v4169_v2  ;;  %v4199_v61 = vmul.f32 %v6301_v11, %v1046_v49  ;;  %v4218_v11 = vmul.f32 %v4177_v13, %v3903_v7  ;;  %v6304_v20 = vstv %s3708_s27  ;;  %v1125_v49 = vsel %vm1117_vm11, %v3512_v29, %v3494_v16  ;;  %v570_v7 = vpop.permute.xlu1 %569  ;;  %s4249_s27 = sld [smem:[#allocation6 + $0x8]] }
 0x300   : > { %6300 = vst [vmem:[#allocation94_spill] sm:$0xff] %v4195_v40  ;;  %v4227_v46 = vmul.f32 %v6304_v20, %v1086_v43  ;;  %v6306_v38 = vmov %v6304_v20  ;;  %vm1195_vm2 = vcmp.lt.s32.totalorder %v3701_v4, 15  ;;  %v494_v43 = vsel %vm493_vm1, %v3961_v53, %v490_v14  ;;  %1726 = vrot.lane.b32.xlu1 %v3476_v0, %s6293_s9  ;;  %1802 = vrot.lane.b32.xlu0 %v3458_v10, %s6312_s7  ;;  %s2959_s9 = smov 82  }
 0x301   : > { %6302 = vst [vmem:[#allocation95_spill] sm:$0xff] %v4199_v61  ;;  %v4231_v58 = vmul.f32 %v6306_v38, %v1085_v17  ;;  %v495_v17 = vsel %vm493_vm1, %v490_v14, %v3961_v53  ;;  %v572_v20 = vsel %vm571_vm3, %v568_v59, %v570_v7  ;;  %v573_v38 = vsel %vm571_vm3, %v570_v7, %v568_v59 }
 0x302   : > { %6305 = vst [vmem:[#allocation96_spill] sm:$0xff] %v4227_v46  ;;  %v4263_v53 = vmul.f32 %v3908_v23, %v4223_v25  ;;  %v6310_v59 = vstv %s3710_s20  ;;  %v1164_v16 = vsel %vm1156_vm13, %v3520_v35, %v3502_v18  ;;  %v583_v7 = vmul.f32 %v582_v9, %v573_v38  ;;  %v685_v2 = vpop.permute.xlu0 %684 }
 0x303   : > { %6307 = vst [vmem:[#allocation97_spill] sm:$0xff] %v4231_v58  ;;  %v6308_v58 = vstv %s3928_s14  ;;  %v4267_v14 = vmul.f32 %v6310_v59, %v1125_v49  ;;  %v584_v59 = vmul.f32 %v582_v9, %v572_v20  ;;  %v6315_v63 = vstv %s3710_s20  ;;  %s6319_s20 = smov 99   ;;  %s4390_s14 = sld [smem:[#allocation6 + $0x9]] }
 0x304   : > { %v544_v46 = vmul.f32 %v6308_v58, %v534_v12  ;;  %v6309_v61 = vmov %v6308_v58  ;;  %v4285_v23 = vmul.f32 %v6315_v63, %v1124_v50  ;;  %v777_v13 = vstv %s4191_s12  ;;  %1765 = vrot.lane.b32.xlu1 %v3476_v0, %s6303_s10  ;;  %1841 = vrot.lane.b32.xlu0 %v3458_v10, %s6319_s20  ;;  %s4666_s12 = sld [smem:[#allocation6 + $0x11]]  ;;  %s4690_s10 = sld [smem:[#allocation6 + $0x12]] }
 0x305   : > { %v545_v40 = vmul.f32 %v6309_v61, %v533_v55  ;;  %6311 = vst [vmem:[#allocation98_spill] sm:$0xff] %v4267_v14  ;;  %v6313_v55 = vstv %s3882_s3  ;;  %v609_v14 = vpop.permute.xlu1 %608  ;;  %v790_v63 = vrot.slane %v4263_v53, %v3698_v60  ;;  %v6316_v50 = vstv %s3717_s23  ;;  %s6325_s23 = smov 98   ;;  %s6334_s3 = smov 97  }
 0x306   : > { %v505_v12 = vmul.f32 %v6313_v55, %v495_v17  ;;  %v6314_v58 = vmov %v6313_v55  ;;  %v611_v61 = vsel %vm610_vm4, %v607_v44, %v609_v14  ;;  %v612_v29 = vsel %vm610_vm4, %v609_v14, %v607_v44 }
 0x307   : > { %v506_v49 = vmul.f32 %v6314_v58, %v494_v43  ;;  %v1163_v43 = vsel %vm1156_vm13, %v3502_v18, %v3520_v35  ;;  %v549_v9 = vadd.f32 %v3855_v3, %v544_v46  ;;  %v550_v17 = vadd.f32 %v3859_v62, %v545_v40 }
 0x308   : > { %v4304_v44 = vmul.f32 %v6316_v50, %v1164_v16  ;;  %v6317_v20 = vstv %s4029_s5  ;;  %v794_v35 = vrot.slane %v4263_v53, %v3686_v56  ;;  %v510_v62 = vadd.f32 %v3847_v31, %v505_v12  ;;  %1804 = vrot.lane.b32.xlu1 %v3476_v0, %s6312_s7  ;;  %1880 = vrot.lane.b32.xlu0 %v3458_v10, %s6325_s23  ;;  %s6342_s5 = smov 96   ;;  %s4746_s7 = sld [smem:[#allocation6 + $0x14]] }
 0x309   : > { %v622_v38 = vmul.f32 %v6317_v20, %v612_v29  ;;  %v6318_v14 = vmov %v6317_v20  ;;  %v511_v3 = vadd.f32 %v3851_v52, %v506_v49  ;;  %v588_v40 = vadd.f32 %v3863_v8, %v583_v7  ;;  %v648_v16 = vpop.permute.xlu1 %647  ;;  %v724_v29 = vpop.permute.xlu0 %723 }
 0x30a   : > { %v623_v18 = vmul.f32 %v6318_v14, %v611_v61  ;;  %v589_v46 = vadd.f32 %v3886_v34, %v584_v59  ;;  %v6320_v55 = vmov %v6316_v50  ;;  %v650_v61 = vsel %vm649_vm5, %v646_v1, %v648_v16 }
 0x30b   : > { %v4320_v58 = vmul.f32 %v6320_v55, %v1163_v43  ;;  %v651_v50 = vsel %vm649_vm5, %v648_v16, %v646_v1  ;;  %v816_v20 = vstv %s4249_s27  ;;  %v6321_v31 = vrot.slane %v4027_v22, %v3698_v60  ;;  %s4722_s27 = sld [smem:[#allocation6 + $0x13]] }
 0x30c   : > { %v6322_v8 = vrot.slane %v4027_v22, %v3686_v56  ;;  %v6323_v12 = vstv %s4046_s26  ;;  %v1202_v1 = vsel %vm1195_vm2, %v3510_v28, %v3528_v37  ;;  %v627_v43 = vadd.f32 %v3890_v48, %v622_v38  ;;  %1843 = vrot.lane.b32.xlu1 %v3476_v0, %s6319_s20  ;;  %1919 = vrot.lane.b32.xlu0 %v3458_v10, %s6334_s3  ;;  %s4458_s26 = sld [smem:[#allocation6 + $0xa]]  ;;  %s4773_s20 = sld [smem:[#allocation6 + $0x15]] }
 0x30d   : > { %v563_v52 = vmul.f32 %v6321_v31, %v549_v9  ;;  %v661_v49 = vmul.f32 %v6323_v12, %v651_v50  ;;  %v6324_v7 = vmov %v6323_v12  ;;  %v628_v9 = vadd.f32 %v3932_v47, %v623_v18  ;;  %v763_v50 = vpop.permute.xlu0 %762 }
 0x30e   : > { %v564_v34 = vmul.f32 %v6322_v8, %v550_v17  ;;  %v662_v59 = vmul.f32 %v6324_v7, %v650_v61  ;;  %v4349_v22 = vmul.f32 %v3970_v51, %v4223_v25  ;;  %vm1234_vm1 = vcmp.lt.s32.totalorder %v3701_v4, 14  ;;  %v687_v61 = vpop.permute.xlu1 %686 }
 0x30f   : > { %v6326_v17 = vrot.slane %v3965_v42, %v3698_v60  ;;  %v6327_v48 = vrot.slane %v3965_v42, %v3686_v56  ;;  %v6328_v47 = vrot.slane %v4044_v54, %v3698_v60  ;;  %v6329_v16 = vrot.slane %v4044_v54, %v3686_v56 }
 0x310   : > { %v666_v31 = vadd.f32 %v3936_v24, %v661_v49  ;;  %v667_v8 = vadd.f32 %v3940_v6, %v662_v59  ;;  %v690_v42 = vsel %vm688_vm6, %v687_v61, %v685_v2  ;;  %v6330_v7 = vstv %s4085_s1  ;;  %1882 = vrot.lane.b32.xlu1 %v3476_v0, %s6325_s23  ;;  %1958 = vrot.lane.b32.xlu0 %v3458_v10, %s6342_s5  ;;  %s4499_s1 = sld [smem:[#allocation6 + $0xb]] }
 0x311   : > { %v524_v14 = vmul.f32 %v6326_v17, %v510_v62  ;;  %v525_v38 = vmul.f32 %v6327_v48, %v511_v3  ;;  %v602_v18 = vmul.f32 %v6328_v47, %v588_v40  ;;  %v603_v55 = vmul.f32 %v6329_v16, %v589_v46  ;;  %v802_v59 = vpop.permute.xlu0 %801  ;;  %s6399_s23 = sld [smem:[#allocation65_spill]] }
 0x312   : > { %v689_v62 = vsel %vm688_vm6, %v685_v2, %v687_v61  ;;  %v700_v40 = vmul.f32 %v6330_v7, %v690_v42  ;;  %v6331_v17 = vmov %v6330_v7  ;;  %v1203_v24 = vsel %vm1195_vm2, %v3528_v37, %v3510_v28  ;;  %v726_v49 = vpop.permute.xlu1 %725 }
 0x313   : > { %v565_v3 = vadd.f32 %v563_v52, %v524_v14  ;;  %v566_v12 = vadd.f32 %v564_v34, %v525_v38  ;;  %v701_v48 = vmul.f32 %v6331_v17, %v689_v62  ;;  %v6332_v6 = vrot.slane %v4099_v30, %v3698_v60 }
 0x314   : > { %v6333_v2 = vrot.slane %v4099_v30, %v3686_v56  ;;  %v829_v52 = vrot.slane %v4349_v22, %v3698_v60  ;;  %vm1273_vm3 = vcmp.lt.s32.totalorder %v3701_v4, 13  ;;  %v705_v34 = vadd.f32 %v3948_v5, %v700_v40  ;;  %1921 = vrot.lane.b32.xlu1 %v3476_v0, %s6334_s3  ;;  %s4797_s3 = sld [smem:[#allocation6 + $0x16]] }
 0x315   : > { %v641_v54 = vmul.f32 %v6332_v6, %v627_v43  ;;  %v604_v28 = vadd.f32 %v602_v18, %v565_v3  ;;  %v605_v37 = vadd.f32 %v603_v55, %v566_v12  ;;  %v706_v30 = vadd.f32 %v3952_v19, %v701_v48  ;;  %v841_v6 = vpop.permute.xlu0 %840 }
 0x316   : > { %v642_v46 = vmul.f32 %v6333_v2, %v628_v9  ;;  %v6335_v43 = vrot.slane %v4133_v26, %v3698_v60  ;;  %v6336_v14 = vrot.slane %v4133_v26, %v3686_v56  ;;  %v728_v47 = vsel %vm727_vm7, %v724_v29, %v726_v49 }
 0x317   : > { %v729_v18 = vsel %vm727_vm7, %v726_v49, %v724_v29  ;;  %v6337_v5 = vstv %s3719_s19  ;;  %v6338_v19 = vstv %s4119_s17  ;;  %v833_v26 = vrot.slane %v4349_v22, %v3686_v56  ;;  %s6346_s19 = smov 95  }
 0x318   : > { %v680_v9 = vmul.f32 %v6335_v43, %v666_v31  ;;  %v681_v38 = vmul.f32 %v6336_v14, %v667_v8  ;;  %v4407_v16 = vmul.f32 %v6337_v5, %v1203_v24  ;;  %v739_v55 = vmul.f32 %v6338_v19, %v729_v18  ;;  %v765_v24 = vpop.permute.xlu1 %764  ;;  %1997 = vrot.lane.b32.xlu0 %v3458_v10, %s6346_s19 }
 0x319   : > { %v6339_v61 = vmov %v6338_v19  ;;  %v643_v31 = vadd.f32 %v641_v54, %v604_v28  ;;  %v644_v8 = vadd.f32 %v642_v46, %v605_v37  ;;  %v6340_v42 = vrot.slane %v4150_v15, %v3698_v60  ;;  %1960 = vrot.lane.b32.xlu1 %v3476_v0, %s6342_s5  ;;  %s5064_s5 = sld [smem:[#allocation6 + $0x56]] }
 0x31a   : > { %v740_v62 = vmul.f32 %v6339_v61, %v728_v47  ;;  %v6341_v3 = vrot.slane %v4150_v15, %v3686_v56  ;;  %v6343_v7 = vmov %v6337_v5  ;;  %v744_v17 = vadd.f32 %v3974_v57, %v739_v55  ;;  %v880_v47 = vpop.permute.xlu0 %879 }
 0x31b   : > { %v719_v29 = vmul.f32 %v6340_v42, %v705_v34  ;;  %v4427_v40 = vmul.f32 %v6343_v7, %v1202_v1  ;;  %v4433_v54 = vmul.f32 %v3991_v21, %v4223_v25  ;;  %v682_v15 = vadd.f32 %v680_v9, %v643_v31  ;;  %v6350_v42 = vld [vmem:[#allocation78_spill] sm:$0xff] }
 0x31c   : > { %v720_v12 = vmul.f32 %v6341_v3, %v706_v30  ;;  %v745_v48 = vadd.f32 %v3978_v39, %v740_v62  ;;  %v683_v2 = vadd.f32 %v681_v38, %v644_v8  ;;  %v767_v46 = vsel %vm766_vm8, %v763_v50, %v765_v24  ;;  %v804_v38 = vpop.permute.xlu1 %803  ;;  %2036 = vrot.lane.b32.xlu0 %v3458_v10, %s6348_s29  ;;  %v6351_v3 = vld [vmem:[#allocation79_spill] sm:$0xff] }
 0x31d   : > { %v768_v1 = vsel %vm766_vm8, %v765_v24, %v763_v50  ;;  %v6344_v57 = vrot.slane %v4218_v11, %v3698_v60  ;;  %v6345_v39 = vrot.slane %v4218_v11, %v3686_v56  ;;  %v779_v30 = vmul.f32 %v777_v13, %v767_v46  ;;  %1999 = vrot.lane.b32.xlu1 %v3476_v0, %s6346_s19  ;;  %s2963_s19 = smov 78  }
 0x31e   : > { %v778_v34 = vmul.f32 %v777_v13, %v768_v1  ;;  %v1241_v50 = vsel %vm1234_vm1, %v3518_v32, %v3536_v41  ;;  %v721_v49 = vadd.f32 %v719_v29, %v682_v15  ;;  %v722_v43 = vadd.f32 %v720_v12, %v683_v2 }
 0x31f   : > { %v758_v28 = vmul.f32 %v6344_v57, %v744_v17  ;;  %v759_v37 = vmul.f32 %v6345_v39, %v745_v48  ;;  %v855_v11 = vstv %s4390_s14  ;;  %v1242_v13 = vsel %vm1234_vm1, %v3536_v41, %v3518_v32  ;;  %v919_v17 = vpop.permute.xlu0 %918  ;;  %s5062_s14 = sld [smem:[#allocation6 + $0x55]] }
 0x320   : > { %vm1312_vm4 = vcmp.lt.s32.totalorder %v3701_v4, 3  ;;  %v783_v9 = vadd.f32 %v3982_v27, %v778_v34  ;;  %v784_v14 = vadd.f32 %v3995_v33, %v779_v30  ;;  %v868_v18 = vrot.slane %v4433_v54, %v3698_v60  ;;  %v843_v7 = vpop.permute.xlu1 %842  ;;  %v6356_v30 = vld [vmem:[#allocation82_spill] sm:$0xff] }
 0x321   : > { %v760_v5 = vadd.f32 %v758_v28, %v721_v49  ;;  %v761_v19 = vadd.f32 %v759_v37, %v722_v43  ;;  %v806_v55 = vsel %vm805_vm9, %v802_v59, %v804_v38  ;;  %v807_v32 = vsel %vm805_vm9, %v804_v38, %v802_v59  ;;  %v6360_v38 = vld [vmem:[#allocation85_spill] sm:$0xff]  ;;  %2038 = vrot.lane.b32.xlu1 %v3476_v0, %s6348_s29  ;;  %s6404_s29 = sld [smem:[#allocation67_spill]] }
 0x322   : > { %v797_v41 = vmul.f32 %v790_v63, %v783_v9  ;;  %v798_v27 = vmul.f32 %v794_v35, %v784_v14  ;;  %v817_v33 = vmul.f32 %v816_v20, %v807_v32  ;;  %v818_v61 = vmul.f32 %v816_v20, %v806_v55  ;;  %v6349_v35 = vld [vmem:[#allocation57_spill] sm:$0xff] }
 0x323   : > { %v6347_v62 = vstv %s3722_s24  ;;  %v1281_v63 = vsel %vm1273_vm3, %v3544_v45, %v3526_v36  ;;  %v872_v53 = vrot.slane %v4433_v54, %v3686_v56  ;;  %v902_v20 = vmul.f32 %v6349_v35, %v4223_v25  ;;  %s6354_s24 = smov 93   ;;  %v958_v43 = vpop.permute.xlu0 %957 }
 0x324   : > { %v4487_v31 = vmul.f32 %v6347_v62, %v1242_v13  ;;  %v799_v59 = vadd.f32 %v797_v41, %v760_v5  ;;  %v800_v8 = vadd.f32 %v798_v27, %v761_v19  ;;  %v822_v29 = vadd.f32 %v6350_v42, %v817_v33  ;;  %2075 = vrot.lane.b32.xlu0 %v3458_v10, %s6354_s24  ;;  %v882_v49 = vpop.permute.xlu1 %881  ;;  %v6361_v27 = vld [vmem:[#allocation34_spill] sm:$0xff]  ;;  %v6362_v33 = vld [vmem:[#allocation31_spill] sm:$0xff] }
 0x325   : > { %v823_v12 = vadd.f32 %v6351_v3, %v818_v61  ;;  %v6352_v48 = vmov %v6347_v62  ;;  %v1280_v54 = vsel %vm1273_vm3, %v3526_v36, %v3544_v45  ;;  %v845_v15 = vsel %vm844_vm10, %v841_v6, %v843_v7  ;;  %v6363_v62 = vld [vmem:[#allocation86_spill] sm:$0xff]  ;;  %2077 = vrot.lane.b32.xlu1 %v3476_v0, %s6354_s24  ;;  %s5170_s24 = sld [smem:[#allocation6 + $0x1f]] }
 0x326   : > { %v4505_v24 = vmul.f32 %v6352_v48, %v1241_v50  ;;  %v846_v2 = vsel %vm844_vm10, %v843_v7, %v841_v6  ;;  %v836_v46 = vmul.f32 %v829_v52, %v822_v29  ;;  %v857_v28 = vmul.f32 %v855_v11, %v845_v15 }
 0x327   : > { %v837_v1 = vmul.f32 %v833_v26, %v823_v12  ;;  %v856_v57 = vmul.f32 %v855_v11, %v846_v2  ;;  %v6353_v39 = vstv %s3724_s21  ;;  %v894_v36 = vstv %s4458_s26  ;;  %v6355_v26 = vld [vmem:[#allocation81_spill] sm:$0xff]  ;;  %s2958_s21 = smov 83   ;;  %v997_v3 = vpop.permute.xlu0 %996  ;;  %s4829_s26 = sld [smem:[#allocation6 + $0x17]] }
 0x328   : > { %v4522_v37 = vmul.f32 %v6353_v39, %v1281_v63  ;;  %v907_v45 = vrot.slane %v902_v20, %v3698_v60  ;;  %v911_v6 = vrot.slane %v902_v20, %v3686_v56  ;;  %vm1351_vm5 = vcmp.lt.s32.totalorder %v3701_v4, 2  ;;  %2114 = vrot.lane.b32.xlu0 %v3458_v10, %s2958_s21  ;;  %v6364_v20 = vld [vmem:[#allocation83_spill] sm:$0xff]  ;;  %v921_v29 = vpop.permute.xlu1 %920 }
 0x329   : > { %v838_v22 = vadd.f32 %v836_v46, %v799_v59  ;;  %v839_v52 = vadd.f32 %v837_v1, %v800_v8  ;;  %v861_v34 = vadd.f32 %v6355_v26, %v856_v57  ;;  %v862_v50 = vadd.f32 %v6356_v30, %v857_v28  ;;  %v6365_v8 = vld [vmem:[#allocation84_spill] sm:$0xff]  ;;  %2116 = vrot.lane.b32.xlu1 %v3476_v0, %s2958_s21 }
 0x32a   : > { %v6357_v11 = vmov %v6353_v39  ;;  %vm6358_vm6 = vcmp.lt.s32.totalorder %v3701_v4, 32  ;;  %v941_v5 = vmul.f32 %v6360_v38, %v4223_v25  ;;  %v1319_v61 = vsel %vm1312_vm4, %v6362_v33, %v6361_v27  ;;  %v6370_v30 = vld [vmem:[#allocation88_spill] sm:$0xff] }
 0x32b   : > { %v4536_v13 = vmul.f32 %v6357_v11, %v1280_v54  ;;  %v884_v9 = vsel %vm6358_vm6, %v880_v47, %v882_v49  ;;  %vm6359_vm7 = vmmov %vm6358_vm6  ;;  %v875_v19 = vmul.f32 %v868_v18, %v861_v34  ;;  %v876_v55 = vmul.f32 %v872_v53, %v862_v50  ;;  %v1036_v11 = vpop.permute.xlu0 %1035 }
 0x32c   : > { %v885_v14 = vsel %vm6359_vm7, %v882_v49, %v880_v47  ;;  %v896_v41 = vmul.f32 %v894_v36, %v884_v9  ;;  %v1320_v47 = vsel %vm1312_vm4, %v6361_v27, %v6362_v33  ;;  %v933_v18 = vstv %s4499_s1  ;;  %v960_v49 = vpop.permute.xlu1 %959  ;;  %v4591_v9 = vld [vmem:[%s6254_s25 + $0x2] ss:$8 sm:$0x3]  ;;  %s4854_s1 = sld [smem:[#allocation6 + $0x19]] }
 0x32d   : > { %v895_v32 = vmul.f32 %v894_v36, %v885_v14  ;;  %v980_v63 = vmul.f32 %v6363_v62, %v4223_v25  ;;  %v877_v53 = vadd.f32 %v875_v19, %v838_v22  ;;  %v878_v35 = vadd.f32 %v876_v55, %v839_v52  ;;  %v6368_v22 = vld [vmem:[#allocation29_spill] sm:$0xff] }
 0x32e   : > { %v901_v42 = vadd.f32 %v6365_v8, %v896_v41  ;;  %v946_v12 = vrot.slane %v941_v5, %v3698_v60  ;;  %v950_v7 = vrot.slane %v941_v5, %v3686_v56  ;;  %v923_v48 = vsel %vm922_vm12, %v919_v17, %v921_v29  ;;  %2121 = vrot.lane.b32.xlu0 %v6368_v22, %s2958_s21  ;;  %v6373_v55 = vld [vmem:[#allocation93_spill] sm:$0xff] }
 0x32f   : > { %v900_v59 = vadd.f32 %v6364_v20, %v895_v32  ;;  %v924_v54 = vsel %vm922_vm12, %v921_v29, %v919_v17  ;;  %v935_v1 = vmul.f32 %v933_v18, %v923_v48  ;;  %v6366_v57 = vstv %s3733_s18  ;;  %v6377_v8 = vld [vmem:[#allocation89_spill] sm:$0xff]  ;;  %v6378_v29 = vld [vmem:[#allocation90_spill] sm:$0xff]  ;;  %v1075_v48 = vpop.permute.xlu0 %1074  ;;  %s4909_s18 = sld [smem:[#allocation6 + $0x1b]] }
 0x330   : > { %v915_v2 = vmul.f32 %v911_v6, %v901_v42  ;;  %v934_v46 = vmul.f32 %v933_v18, %v924_v54  ;;  %v4573_v28 = vmul.f32 %v6366_v57, %v1320_v47  ;;  %v6367_v39 = vmov %v6366_v57  ;;  %v6369_v6 = vld [vmem:[#allocation87_spill] sm:$0xff]  ;;  %v6374_v47 = vld [vmem:[#allocation36_spill] sm:$0xff] }
 0x331   : > { %v914_v15 = vmul.f32 %v907_v45, %v900_v59  ;;  %v4577_v36 = vmul.f32 %v6367_v39, %v1319_v61  ;;  %v972_v52 = vstv %s4529_s8  ;;  %v985_v26 = vrot.slane %v980_v63, %v3698_v60  ;;  %v6375_v18 = vld [vmem:[#allocation32_spill] sm:$0xff]  ;;  %s5180_s8 = sld [smem:[#allocation6 + $0x20]] }
 0x332   : > { %vm1390_vm8 = vcmp.lt.s32.totalorder %v3701_v4, 1  ;;  %v917_v45 = vadd.f32 %v915_v2, %v878_v35  ;;  %v939_v34 = vadd.f32 %v6369_v6, %v934_v46  ;;  %v940_v50 = vadd.f32 %v6370_v30, %v935_v1  ;;  %2153 = vrot.lane.b32.xlu0 %v3458_v10, %s2959_s9 }
 0x333   : > { %v916_v17 = vadd.f32 %v914_v15, %v877_v53  ;;  %v989_v14 = vrot.slane %v980_v63, %v3686_v56  ;;  %vm6371_vm9 = vcmp.lt.s32.totalorder %v3701_v4, 30  ;;  %v1019_v32 = vmul.f32 %v6373_v55, %v4223_v25  ;;  %v6376_v53 = vld [vmem:[#allocation76_spill] sm:$0xff] }
 0x334   : > { %v962_v5 = vsel %vm6371_vm9, %v958_v43, %v960_v49  ;;  %vm6372_vm10 = vmmov %vm6371_vm9  ;;  %v953_v41 = vmul.f32 %v946_v12, %v939_v34  ;;  %v954_v27 = vmul.f32 %v950_v7, %v940_v50  ;;  %v1358_v63 = vsel %vm1351_vm5, %v6375_v18, %v6374_v47  ;;  %v999_v7 = vpop.permute.xlu1 %998 }
 0x335   : > { %v963_v19 = vsel %vm6372_vm10, %v960_v49, %v958_v43  ;;  %v974_v61 = vmul.f32 %v972_v52, %v962_v5  ;;  %v1359_v43 = vsel %vm1351_vm5, %v6374_v47, %v6375_v18  ;;  %v1011_v25 = vstv %s4559_s22  ;;  %s4885_s22 = sld [smem:[#allocation6 + $0x1a]] }
 0x336   : > { %v973_v33 = vmul.f32 %v972_v52, %v963_v19  ;;  %v1058_v35 = vmul.f32 %v6376_v53, %v4591_v9  ;;  %v955_v20 = vadd.f32 %v953_v41, %v916_v17  ;;  %v956_v59 = vadd.f32 %v954_v27, %v917_v45  ;;  %v6379_v17 = vld [vmem:[#allocation30_spill] sm:$0xff]  ;;  %2160 = vrot.lane.b32.xlu0 %v6368_v22, %s2959_s9  ;;  %v6383_v19 = vld [vmem:[#allocation92_spill] sm:$0xff]  ;;  %v1114_v27 = vpop.permute.xlu0 %1113 }
 0x337   : > { %v979_v12 = vadd.f32 %v6378_v29, %v974_v61  ;;  %v1024_v54 = vrot.slane %v1019_v32, %v3698_v60  ;;  %v1028_v15 = vrot.slane %v1019_v32, %v3686_v56  ;;  %v1001_v2 = vsel %vm1000_vm14, %v997_v3, %v999_v7  ;;  %2123 = vrot.lane.b32.xlu1 %v6379_v17, %s2958_s21  ;;  %s2964_s21 = smov 77  }
 0x338   : > { %v978_v42 = vadd.f32 %v6377_v8, %v973_v33  ;;  %v1002_v46 = vsel %vm1000_vm14, %v999_v7, %v997_v3  ;;  %v1013_v52 = vmul.f32 %v1011_v25, %v1001_v2  ;;  %v6380_v45 = vstv %s3735_s11  ;;  %v1038_v41 = vpop.permute.xlu1 %1037  ;;  %v6385_v8 = vld [vmem:[#allocation33_spill] sm:$0xff]  ;;  %s2960_s11 = smov 81   ;;  %v6387_v2 = vld [vmem:[#allocation95_spill] sm:$0xff] }
 0x339   : > { %v993_v57 = vmul.f32 %v989_v14, %v979_v12  ;;  %v1012_v39 = vmul.f32 %v1011_v25, %v1002_v46  ;;  %v4629_v6 = vmul.f32 %v6380_v45, %v1359_v43  ;;  %v6381_v34 = vmov %v6380_v45  ;;  %v6382_v14 = vld [vmem:[#allocation91_spill] sm:$0xff] }
 0x33a   : > { %v992_v1 = vmul.f32 %v985_v26, %v978_v42  ;;  %v4633_v30 = vmul.f32 %v6381_v34, %v1358_v63  ;;  %v1050_v50 = vstv %s4583_s16  ;;  %v1063_v49 = vrot.slane %v1058_v35, %v3698_v60  ;;  %2192 = vrot.lane.b32.xlu0 %v3458_v10, %s2960_s11  ;;  %s6409_s16 = sld [smem:[#allocation68_spill]] }
 0x33b   : > { %vm1455_vm12 = vcmp.lt.s32.totalorder %v3701_v4, 127  ;;  %v995_v26 = vadd.f32 %v993_v57, %v956_v59  ;;  %v1017_v5 = vadd.f32 %v6382_v14, %v1012_v39  ;;  %v1018_v32 = vadd.f32 %v6383_v19, %v1013_v52  ;;  %2155 = vrot.lane.b32.xlu1 %v3476_v0, %s2959_s9  ;;  %v6384_v59 = vld [vmem:[#allocation38_spill] sm:$0xff]  ;;  %v1153_v57 = vpop.permute.xlu0 %1152 }
 0x33c   : > { %v994_v3 = vadd.f32 %v992_v1, %v955_v20  ;;  %v1067_v33 = vrot.slane %v1058_v35, %v3686_v56  ;;  %v1040_v61 = vsel %vm1039_vm15, %v1036_v11, %v1038_v41  ;;  %v1041_v47 = vsel %vm1039_vm15, %v1038_v41, %v1036_v11  ;;  %v1077_v1 = vpop.permute.xlu1 %1076 }
 0x33d   : > { %v1097_v18 = vmul.f32 %v3970_v51, %v4591_v9  ;;  %v1031_v63 = vmul.f32 %v1024_v54, %v1017_v5  ;;  %v1032_v43 = vmul.f32 %v1028_v15, %v1018_v32  ;;  %v1051_v25 = vmul.f32 %v1050_v50, %v1041_v47  ;;  %v6386_v54 = vld [vmem:[#allocation94_spill] sm:$0xff] }
 0x33e   : > { %v1052_v20 = vmul.f32 %v1050_v50, %v1040_v61  ;;  %v1397_v35 = vsel %vm1390_vm8, %v6385_v8, %v6384_v59  ;;  %v1398_v11 = vsel %vm1390_vm8, %v6384_v59, %v6385_v8  ;;  %v1089_v42 = vstv %s4615_s13  ;;  %2199 = vrot.lane.b32.xlu0 %v6368_v22, %s2960_s11  ;;  %s4940_s13 = sld [smem:[#allocation6 + $0x1c]] }
 0x33f   : > { %v1136_v29 = vmul.f32 %v3991_v21, %v4591_v9  ;;  %v1033_v12 = vadd.f32 %v1031_v63, %v994_v3  ;;  %v1034_v7 = vadd.f32 %v1032_v43, %v995_v26  ;;  %v1056_v15 = vadd.f32 %v6386_v54, %v1051_v25  ;;  %2162 = vrot.lane.b32.xlu1 %v6379_v17, %s2959_s9  ;;  %v1192_v25 = vpop.permute.xlu0 %1191 }
 0x340   : > { %v1057_v46 = vadd.f32 %v6387_v2, %v1052_v20  ;;  %v1102_v39 = vrot.slane %v1097_v18, %v3698_v60  ;;  %v1106_v52 = vrot.slane %v1097_v18, %v3686_v56  ;;  %v1079_v21 = vsel %vm1078_vm0, %v1075_v48, %v1077_v1  ;;  %v6391_v18 = vld [vmem:[#allocation97_spill] sm:$0xff]  ;;  %v1116_v43 = vpop.permute.xlu1 %1115 }
 0x341   : > { %v1080_v45 = vsel %vm1078_vm0, %v1077_v1, %v1075_v48  ;;  %v1070_v34 = vmul.f32 %v1063_v49, %v1056_v15  ;;  %v1091_v26 = vmul.f32 %v1089_v42, %v1079_v21  ;;  %v6388_v14 = vstv %s3741_s28  ;;  %v6393_v15 = vld [vmem:[#allocation35_spill] sm:$0xff]  ;;  %v6394_v21 = vld [vmem:[#allocation98_spill] sm:$0xff]  ;;  %s4968_s28 = sld [smem:[#allocation6 + $0x1d]] }
 0x342   : > { %v1071_v50 = vmul.f32 %v1067_v33, %v1057_v46  ;;  %v1090_v3 = vmul.f32 %v1089_v42, %v1080_v45  ;;  %v4680_v5 = vmul.f32 %v6388_v14, %v1398_v11  ;;  %v6389_v19 = vmov %v6388_v14  ;;  %v6390_v33 = vld [vmem:[#allocation96_spill] sm:$0xff]  ;;  %2231 = vrot.lane.b32.xlu0 %v3458_v10, %s2961_s0 }
 0x343   : > { %v4684_v32 = vmul.f32 %v6389_v19, %v1397_v35  ;;  %v1128_v41 = vstv %s4639_s15  ;;  %v1141_v61 = vrot.slane %v1136_v29, %v3698_v60  ;;  %vm1494_vm14 = vcmp.lt.s32.totalorder %v3701_v4, 126  ;;  %v4703_v35 = vld [vmem:[%s6254_s25 + $0x12] ss:$8 sm:$0x3]  ;;  %2194 = vrot.lane.b32.xlu1 %v3476_v0, %s2960_s11 }
 0x344   : > { %v1072_v48 = vadd.f32 %v1070_v34, %v1033_v12  ;;  %v1073_v49 = vadd.f32 %v1071_v50, %v1034_v7  ;;  %v1095_v47 = vadd.f32 %v6390_v33, %v1090_v3  ;;  %v1096_v63 = vadd.f32 %v6391_v18, %v1091_v26  ;;  %v1155_v50 = vpop.permute.xlu1 %1154  ;;  %v1231_v3 = vpop.permute.xlu0 %1230 }
 0x345   : > { %v1145_v20 = vrot.slane %v1136_v29, %v3686_v56  ;;  %v1118_v59 = vsel %vm1117_vm11, %v1114_v27, %v1116_v43  ;;  %v1119_v8 = vsel %vm1117_vm11, %v1116_v43, %v1114_v27  ;;  %v1175_v11 = vmul.f32 %v4703_v35, %v4591_v9  ;;  %v6392_v29 = vld [vmem:[#allocation40_spill] sm:$0xff] }
 0x346   : > { %v1109_v42 = vmul.f32 %v1102_v39, %v1095_v47  ;;  %v1110_v12 = vmul.f32 %v1106_v52, %v1096_v63  ;;  %v1129_v7 = vmul.f32 %v1128_v41, %v1119_v8  ;;  %v1130_v54 = vmul.f32 %v1128_v41, %v1118_v59  ;;  %2238 = vrot.lane.b32.xlu0 %v6368_v22, %s2961_s0 }
 0x347   : > { %v1462_v27 = vsel %vm1455_vm12, %v6393_v15, %v6392_v29  ;;  %v1463_v2 = vsel %vm1455_vm12, %v6392_v29, %v6393_v15  ;;  %v1167_v46 = vstv %s4666_s12  ;;  %v1214_v1 = vmul.f32 %v6360_v38, %v4591_v9  ;;  %2201 = vrot.lane.b32.xlu1 %v6379_v17, %s2960_s11  ;;  %s5266_s11 = sld [smem:[#allocation6 + $0x25]]  ;;  %s5280_s12 = sld [smem:[#allocation6 + $0x26]] }
 0x348   : > { %v1111_v39 = vadd.f32 %v1109_v42, %v1072_v48  ;;  %v1112_v52 = vadd.f32 %v1110_v12, %v1073_v49  ;;  %v1134_v45 = vadd.f32 %v6394_v21, %v1129_v7  ;;  %v1135_v34 = vadd.f32 %v4285_v23, %v1130_v54  ;;  %v1194_v42 = vpop.permute.xlu1 %1193  ;;  %v1270_v12 = vpop.permute.xlu0 %1269 }
 0x349   : > { %v1180_v26 = vrot.slane %v1175_v11, %v3698_v60  ;;  %v1184_v14 = vrot.slane %v1175_v11, %v3686_v56  ;;  %v1157_v19 = vsel %vm1156_vm13, %v1153_v57, %v1155_v50  ;;  %v1158_v41 = vsel %vm1156_vm13, %v1155_v50, %v1153_v57 }
 0x34a   : > { %v1148_v48 = vmul.f32 %v1141_v61, %v1134_v45  ;;  %v1149_v33 = vmul.f32 %v1145_v20, %v1135_v34  ;;  %v1168_v49 = vmul.f32 %v1167_v46, %v1158_v41  ;;  %v1169_v47 = vmul.f32 %v1167_v46, %v1157_v19 }
 0x34b   : > { %v6395_v23 = vstv %s3750_s30  ;;  %v1206_v59 = vstv %s4690_s10  ;;  %v1219_v8 = vrot.slane %v1214_v1, %v3698_v60  ;;  %vm1533_vm11 = vcmp.lt.s32.totalorder %v3701_v4, 125  ;;  %2233 = vrot.lane.b32.xlu1 %v3476_v0, %s2961_s0  ;;  %s2962_s30 = smov 79   ;;  %s5301_s10 = sld [smem:[#allocation6 + $0x27]] }
 0x34c   : > { %v4736_v18 = vmul.f32 %v6395_v23, %v1462_v27  ;;  %v6396_v63 = vmov %v6395_v23  ;;  %v1150_v57 = vadd.f32 %v1148_v48, %v1111_v39  ;;  %v1151_v61 = vadd.f32 %v1149_v33, %v1112_v52  ;;  %v6398_v39 = vld [vmem:[#allocation37_spill] sm:$0xff]  ;;  %2270 = vrot.lane.b32.xlu0 %v3458_v10, %s2962_s30 }
 0x34d   : > { %v4740_v43 = vmul.f32 %v6396_v63, %v1463_v2  ;;  %v1173_v20 = vadd.f32 %v4304_v44, %v1168_v49  ;;  %v1174_v11 = vadd.f32 %v4320_v58, %v1169_v47  ;;  %v1223_v7 = vrot.slane %v1214_v1, %v3686_v56  ;;  %v6397_v58 = vld [vmem:[#allocation42_spill] sm:$0xff] }
 0x34e   : > { %v1196_v54 = vsel %vm1195_vm2, %v1192_v25, %v1194_v42  ;;  %v1197_v29 = vsel %vm1195_vm2, %v1194_v42, %v1192_v25  ;;  %v1253_v15 = vmul.f32 %v6363_v62, %v4591_v9  ;;  %v1501_v1 = vsel %vm1494_vm14, %v6398_v39, %v6397_v58 }
 0x34f   : > { %v1187_v27 = vmul.f32 %v1180_v26, %v1173_v20  ;;  %v1188_v2 = vmul.f32 %v1184_v14, %v1174_v11  ;;  %v1207_v46 = vmul.f32 %v1206_v59, %v1197_v29  ;;  %v1208_v44 = vmul.f32 %v1206_v59, %v1196_v54  ;;  %v1233_v26 = vpop.permute.xlu1 %1232  ;;  %v1309_v14 = vpop.permute.xlu0 %1308  ;;  %2240 = vrot.lane.b32.xlu1 %v6379_v17, %s2961_s0  ;;  %s5343_s0 = sld [smem:[#allocation6 + $0x2a]] }
 0x350   : > { %v1502_v25 = vsel %vm1494_vm14, %v6397_v58, %v6398_v39  ;;  %v1245_v62 = vstv %s4722_s27  ;;  %v1292_v52 = vmul.f32 %v6373_v55, %v4591_v9  ;;  %v1258_v19 = vrot.slane %v1253_v15, %v3698_v60  ;;  %2277 = vrot.lane.b32.xlu0 %v6368_v22, %s2962_s30  ;;  %v6403_v58 = vld [vmem:[#allocation39_spill] sm:$0xff] }
 0x351   : > { %v1189_v21 = vadd.f32 %v1187_v27, %v1150_v57  ;;  %v1190_v45 = vadd.f32 %v1188_v2, %v1151_v61  ;;  %v1212_v34 = vadd.f32 %v4407_v16, %v1207_v46  ;;  %v1213_v50 = vadd.f32 %v4427_v40, %v1208_v44  ;;  %v6402_v44 = vld [vmem:[#allocation44_spill] sm:$0xff] }
 0x352   : > { %v1262_v41 = vrot.slane %v1253_v15, %v3686_v56  ;;  %v1235_v9 = vsel %vm1234_vm1, %v1231_v3, %v1233_v26  ;;  %v1236_v55 = vsel %vm1234_vm1, %v1233_v26, %v1231_v3  ;;  %v6400_v16 = vstv %s6399_s23  ;;  %v4810_v15 = vld [vmem:[%s6254_s25 + $0x3] ss:$8 sm:$0x3]  ;;  %s5058_s23 = sld [smem:[#allocation6 + $0x53]] }
 0x353   : > { %v1226_v48 = vmul.f32 %v1219_v8, %v1212_v34  ;;  %v1227_v33 = vmul.f32 %v1223_v7, %v1213_v50  ;;  %v1246_v49 = vmul.f32 %v1245_v62, %v1236_v55  ;;  %v1247_v47 = vmul.f32 %v1245_v62, %v1235_v9  ;;  %v1272_v11 = vpop.permute.xlu1 %1271  ;;  %v1348_v42 = vpop.permute.xlu0 %1347  ;;  %2272 = vrot.lane.b32.xlu1 %v3476_v0, %s2962_s30 }
 0x354   : > { %v4787_v40 = vmul.f32 %v6400_v16, %v1501_v1  ;;  %v6401_v23 = vmov %v6400_v16  ;;  %v1284_v59 = vstv %s4746_s7  ;;  %v1297_v57 = vrot.slane %v1292_v52, %v3698_v60  ;;  %2309 = vrot.lane.b32.xlu0 %v3458_v10, %s2963_s19  ;;  %s4995_s7 = sld [smem:[#allocation6 + $0x1e]] }
 0x355   : > { %v4791_v63 = vmul.f32 %v6401_v23, %v1502_v25  ;;  %vm1572_vm13 = vcmp.lt.s32.totalorder %v3701_v4, 115  ;;  %v1228_v3 = vadd.f32 %v1226_v48, %v1189_v21  ;;  %v1229_v8 = vadd.f32 %v1227_v33, %v1190_v45 }
 0x356   : > { %v1251_v61 = vadd.f32 %v4487_v31, %v1246_v49  ;;  %v1252_v20 = vadd.f32 %v4505_v24, %v1247_v47  ;;  %v1301_v7 = vrot.slane %v1292_v52, %v3686_v56  ;;  %v1274_v54 = vsel %vm1273_vm3, %v1270_v12, %v1272_v11 }
 0x357   : > { %v1275_v29 = vsel %vm1273_vm3, %v1272_v11, %v1270_v12  ;;  %v1331_v31 = vmul.f32 %v4810_v15, %v6376_v53  ;;  %v1286_v46 = vmul.f32 %v1284_v59, %v1274_v54  ;;  %v1540_v12 = vsel %vm1533_vm11, %v6403_v58, %v6402_v44  ;;  %v1311_v45 = vpop.permute.xlu1 %1310  ;;  %v1387_v34 = vpop.permute.xlu0 %1386  ;;  %2279 = vrot.lane.b32.xlu1 %v6379_v17, %s2962_s30  ;;  %s5054_s30 = sld [smem:[#allocation6 + $0x51]] }
 0x358   : > { %v1265_v24 = vmul.f32 %v1258_v19, %v1251_v61  ;;  %v1266_v27 = vmul.f32 %v1262_v41, %v1252_v20  ;;  %v1285_v2 = vmul.f32 %v1284_v59, %v1275_v29  ;;  %v1541_v39 = vsel %vm1533_vm11, %v6402_v44, %v6403_v58  ;;  %2316 = vrot.lane.b32.xlu0 %v6368_v22, %s2963_s19 }
 0x359   : > { %v1323_v53 = vstv %s4773_s20  ;;  %v1370_v1 = vmul.f32 %v4810_v15, %v3970_v51  ;;  %vm1611_vm15 = vcmp.lt.s32.totalorder %v3701_v4, 114  ;;  %v1291_v21 = vadd.f32 %v4536_v13, %v1286_v46  ;;  %s5056_s20 = sld [smem:[#allocation6 + $0x52]] }
 0x35a   : > { %v1267_v25 = vadd.f32 %v1265_v24, %v1228_v3  ;;  %v1268_v62 = vadd.f32 %v1266_v27, %v1229_v8  ;;  %v1290_v52 = vadd.f32 %v4522_v37, %v1285_v2  ;;  %v1336_v50 = vrot.slane %v1331_v31, %v3698_v60  ;;  %v6407_v24 = vld [vmem:[#allocation46_spill] sm:$0xff]  ;;  %v6408_v27 = vld [vmem:[#allocation41_spill] sm:$0xff] }
 0x35b   : > { %v1340_v26 = vrot.slane %v1331_v31, %v3686_v56  ;;  %v1313_v51 = vsel %vm1312_vm4, %v1309_v14, %v1311_v45  ;;  %v1314_v19 = vsel %vm1312_vm4, %v1311_v45, %v1309_v14  ;;  %v1305_v9 = vmul.f32 %v1301_v7, %v1291_v21  ;;  %v1350_v3 = vpop.permute.xlu1 %1349  ;;  %v1452_v8 = vpop.permute.xlu0 %1451  ;;  %v4866_v7 = vld [vmem:[%s6254_s25 + $0x11] ss:$8 sm:$0x3]  ;;  %2311 = vrot.lane.b32.xlu1 %v3476_v0, %s2963_s19 }
 0x35c   : > { %v1304_v41 = vmul.f32 %v1297_v57, %v1290_v52  ;;  %v1324_v55 = vmul.f32 %v1323_v53, %v1314_v19  ;;  %v1325_v48 = vmul.f32 %v1323_v53, %v1313_v51  ;;  %v6405_v37 = vstv %s6404_s29  ;;  %2348 = vrot.lane.b32.xlu0 %v3458_v10, %s2964_s21  ;;  %v6411_v51 = vld [vmem:[#allocation48_spill] sm:$0xff]  ;;  %v6412_v19 = vld [vmem:[#allocation43_spill] sm:$0xff]  ;;  %s5074_s29 = sld [smem:[#allocation6 + $0x59]] }
 0x35d   : > { %v4844_v13 = vmul.f32 %v6405_v37, %v1540_v12  ;;  %v6406_v33 = vmov %v6405_v37  ;;  %v1362_v47 = vstv %s4797_s3  ;;  %v1375_v16 = vrot.slane %v1370_v1, %v3698_v60  ;;  %s5060_s3 = sld [smem:[#allocation6 + $0x54]] }
 0x35e   : > { %v4848_v49 = vmul.f32 %v6406_v33, %v1541_v39  ;;  %v1306_v14 = vadd.f32 %v1304_v41, %v1267_v25  ;;  %v1307_v23 = vadd.f32 %v1305_v9, %v1268_v62  ;;  %v1329_v59 = vadd.f32 %v4573_v28, %v1324_v55 }
 0x35f   : > { %v1330_v57 = vadd.f32 %v4577_v36, %v1325_v48  ;;  %v1379_v61 = vrot.slane %v1370_v1, %v3686_v56  ;;  %v1352_v20 = vsel %vm1351_vm5, %v1348_v42, %v1350_v3  ;;  %v1353_v11 = vsel %vm1351_vm5, %v1350_v3, %v1348_v42  ;;  %v1389_v1 = vpop.permute.xlu1 %1388  ;;  %v1491_v25 = vpop.permute.xlu0 %1490  ;;  %2318 = vrot.lane.b32.xlu1 %v6379_v17, %s2963_s19  ;;  %s5068_s19 = sld [smem:[#allocation6 + $0x57]] }
 0x360   : > { %v1409_v28 = vmul.f32 %v4866_v7, %v4810_v15  ;;  %v1343_v36 = vmul.f32 %v1336_v50, %v1329_v59  ;;  %v1363_v29 = vmul.f32 %v1362_v47, %v1353_v11  ;;  %v1364_v31 = vmul.f32 %v1362_v47, %v1352_v20  ;;  %2355 = vrot.lane.b32.xlu0 %v6368_v22, %s2964_s21  ;;  %v4921_v59 = vld [vmem:[%s6254_s25 + $0x14] ss:$8 sm:$0x3] }
 0x361   : > { %v1344_v54 = vmul.f32 %v1340_v26, %v1330_v57  ;;  %v1579_v42 = vsel %vm1572_vm13, %v6408_v27, %v6407_v24  ;;  %v1580_v2 = vsel %vm1572_vm13, %v6407_v24, %v6408_v27  ;;  %v1401_v46 = vstv %s4829_s26  ;;  %6413 = vst [vmem:[#allocation57_spill] sm:$0xff] %v4921_v59  ;;  %s5070_s26 = sld [smem:[#allocation6 + $0x58]] }
 0x362   : > { %v1474_v44 = vmul.f32 %v4810_v15, %v6360_v38  ;;  %v1345_v58 = vadd.f32 %v1343_v36, %v1306_v14  ;;  %v1368_v39 = vadd.f32 %v4629_v6, %v1363_v29  ;;  %v1369_v53 = vadd.f32 %v4633_v30, %v1364_v31 }
 0x363   : > { %v1346_v12 = vadd.f32 %v1344_v54, %v1307_v23  ;;  %v1414_v62 = vrot.slane %v1409_v28, %v3698_v60  ;;  %v1418_v10 = vrot.slane %v1409_v28, %v3686_v56  ;;  %v1391_v52 = vsel %vm1390_vm8, %v1387_v34, %v1389_v1  ;;  %v1454_v47 = vpop.permute.xlu1 %1453  ;;  %2350 = vrot.lane.b32.xlu1 %v3476_v0, %s2964_s21 }
 0x364   : > { %v1392_v38 = vsel %vm1390_vm8, %v1389_v1, %v1387_v34  ;;  %v1382_v21 = vmul.f32 %v1375_v16, %v1368_v39  ;;  %v1383_v45 = vmul.f32 %v1379_v61, %v1369_v53  ;;  %v1403_v26 = vmul.f32 %v1401_v46, %v1391_v52  ;;  %v1530_v16 = vpop.permute.xlu0 %1529  ;;  %v6418_v53 = vld [vmem:[#allocation66_spill] sm:$0xff] }
 0x365   : > { %v1402_v50 = vmul.f32 %v1401_v46, %v1392_v38  ;;  %v6410_v6 = vstv %s6409_s16  ;;  %v1618_v41 = vsel %vm1611_vm15, %v6412_v19, %v6411_v51  ;;  %v1466_v9 = vstv %s4854_s1  ;;  %s5076_s1 = sld [smem:[#allocation6 + $0x5a]]  ;;  %s5232_s16 = sld [smem:[#allocation6 + $0x23]] }
 0x366   : > { %v4899_v30 = vmul.f32 %v6410_v6, %v1579_v42  ;;  %v1479_v34 = vrot.slane %v1474_v44, %v3698_v60  ;;  %v1384_v55 = vadd.f32 %v1382_v21, %v1345_v58  ;;  %v1385_v48 = vadd.f32 %v1383_v45, %v1346_v12  ;;  %v4953_v58 = vld [vmem:[%s6254_s25 + $0x15] ss:$8 sm:$0x3]  ;;  %v6417_v12 = vld [vmem:[#allocation69_spill] sm:$0xff] }
 0x367   : > { %v1407_v37 = vadd.f32 %v4680_v5, %v1402_v50  ;;  %v1408_v33 = vadd.f32 %v4684_v32, %v1403_v26  ;;  %v1483_v14 = vrot.slane %v1474_v44, %v3686_v56  ;;  %v1456_v22 = vsel %vm1455_vm12, %v1452_v8, %v1454_v47  ;;  %v1493_v27 = vpop.permute.xlu1 %1492  ;;  %6416 = vst [vmem:[#allocation78_spill] sm:$0xff] %v4953_v58 }
 0x368   : > { %v1457_v23 = vsel %vm1455_vm12, %v1454_v47, %v1452_v8  ;;  %v1513_v5 = vmul.f32 %v4921_v59, %v4810_v15  ;;  %v1467_v3 = vmul.f32 %v1466_v9, %v1456_v22  ;;  %v6414_v20 = vmov %v6410_v6  ;;  %v1569_v42 = vpop.permute.xlu0 %1568  ;;  %2357 = vrot.lane.b32.xlu1 %v6379_v17, %s2964_s21  ;;  %s5198_s21 = sld [smem:[#allocation6 + $0x21]] }
 0x369   : > { %v1421_v32 = vmul.f32 %v1414_v62, %v1407_v37  ;;  %v1422_v57 = vmul.f32 %v1418_v10, %v1408_v33  ;;  %v1468_v61 = vmul.f32 %v1466_v9, %v1457_v23  ;;  %v4929_v11 = vmul.f32 %v6414_v20, %v1580_v2 }
 0x36a   : > { %v1619_v8 = vsel %vm1611_vm15, %v6411_v51, %v6412_v19  ;;  %v6415_v28 = vstv %s3789_s2  ;;  %v1505_v54 = vstv %s4885_s22  ;;  %vm1650_vm0 = vcmp.lt.s32.totalorder %v3701_v4, 113  ;;  %v4975_v19 = vld [vmem:[%s6254_s25 + $0x7] ss:$8 sm:$0x3]  ;;  %s5230_s22 = sld [smem:[#allocation6 + $0x22]]  ;;  %s5345_s2 = sld [smem:[#allocation6 + $0x5b]] }
 0x36b   : > { %v4937_v36 = vmul.f32 %v6415_v28, %v1618_v41  ;;  %v1423_v29 = vadd.f32 %v1421_v32, %v1384_v55  ;;  %v1424_v31 = vadd.f32 %v1422_v57, %v1385_v48  ;;  %v1472_v0 = vadd.f32 %v4736_v18, %v1467_v3  ;;  %v1532_v6 = vpop.permute.xlu1 %1531 }
 0x36c   : > { %v1473_v24 = vadd.f32 %v4740_v43, %v1468_v61  ;;  %v1518_v2 = vrot.slane %v1513_v5, %v3698_v60  ;;  %v1495_v46 = vsel %vm1494_vm14, %v1491_v25, %v1493_v27  ;;  %v1496_v44 = vsel %vm1494_vm14, %v1493_v27, %v1491_v25  ;;  %v4960_v43 = vld [vmem:[%s6254_s25 + $0x4] ss:$8 sm:$0x3]  ;;  %v1608_v51 = vpop.permute.xlu0 %1607 }
 0x36d   : > { %v1552_v18 = vmul.f32 %v4953_v58, %v4810_v15  ;;  %v1449_v39 = vadd.f32 %v6417_v12, %v1423_v29  ;;  %v1450_v1 = vadd.f32 %v6418_v53, %v1424_v31  ;;  %v1486_v62 = vmul.f32 %v1479_v34, %v1472_v0 }
 0x36e   : > { %v1487_v10 = vmul.f32 %v1483_v14, %v1473_v24  ;;  %v1522_v25 = vrot.slane %v1513_v5, %v3686_v56  ;;  %v1506_v52 = vmul.f32 %v1505_v54, %v1495_v46  ;;  %v1507_v38 = vmul.f32 %v1505_v54, %v1496_v44  ;;  %v6420_v24 = vld [vmem:[#allocation50_spill] sm:$0xff] }
 0x36f   : > { %v1544_v21 = vstv %s4909_s18  ;;  %v6419_v15 = vmov %v6415_v28  ;;  %v1488_v50 = vadd.f32 %v1486_v62, %v1449_v39  ;;  %v1591_v17 = vmul.f32 %v4975_v19, %v4960_v43  ;;  %v1571_v3 = vpop.permute.xlu1 %1570  ;;  %s5242_s18 = sld [smem:[#allocation6 + $0x24]] }
 0x370   : > { %v1627_v45 = vmul.f32 %v6419_v15, %v1619_v8  ;;  %v1489_v26 = vadd.f32 %v1487_v10, %v1450_v1  ;;  %v1511_v41 = vadd.f32 %v4787_v40, %v1506_v52  ;;  %v1512_v9 = vadd.f32 %v4791_v63, %v1507_v38  ;;  %v4991_v40 = vld [vmem:[%s6254_s25 + $0x10] ss:$8 sm:$0x3]  ;;  %v1647_v61 = vpop.permute.xlu0 %1646 }
 0x371   : > { %v1534_v34 = vsel %vm1533_vm11, %v1530_v16, %v1532_v6  ;;  %v1535_v55 = vsel %vm1533_vm11, %v1532_v6, %v1530_v16  ;;  %v1557_v48 = vrot.slane %v1552_v18, %v3698_v60  ;;  %v1561_v37 = vrot.slane %v1552_v18, %v3686_v56 }
 0x372   : > { %v1545_v33 = vmul.f32 %v1544_v21, %v1534_v34  ;;  %v1546_v47 = vmul.f32 %v1544_v21, %v1535_v55  ;;  %v1525_v14 = vmul.f32 %v1518_v2, %v1511_v41  ;;  %v1526_v22 = vmul.f32 %v1522_v25, %v1512_v9 }
 0x373   : > { %v1583_v23 = vstv %s4940_s13  ;;  %v1630_v63 = vmul.f32 %v4991_v40, %v4960_v43  ;;  %v1596_v32 = vrot.slane %v1591_v17, %v3698_v60  ;;  %v1600_v57 = vrot.slane %v1591_v17, %v3686_v56  ;;  %v1610_v53 = vpop.permute.xlu1 %1609  ;;  %s6546_s13 = sld [smem:[#allocation104_spill]] }
 0x374   : > { %v1550_v16 = vadd.f32 %v4844_v13, %v1545_v33  ;;  %v1551_v5 = vadd.f32 %v4848_v49, %v1546_v47  ;;  %v1527_v20 = vadd.f32 %v1525_v14, %v1488_v50  ;;  %v1528_v8 = vadd.f32 %v1526_v22, %v1489_v26  ;;  %v6421_v49 = vld [vmem:[#allocation45_spill] sm:$0xff]  ;;  %v5017_v1 = vpop.permute.xlu0 %1685 }
 0x375   : > { %v1573_v28 = vsel %vm1572_vm13, %v1569_v42, %v1571_v3  ;;  %v1574_v54 = vsel %vm1572_vm13, %v1571_v3, %v1569_v42  ;;  %v1657_v27 = vsel %vm1650_vm0, %v6421_v49, %v6420_v24  ;;  %v1658_v2 = vsel %vm1650_vm0, %v6420_v24, %v6421_v49 }
 0x376   : > { %v1564_v29 = vmul.f32 %v1557_v48, %v1550_v16  ;;  %v1565_v31 = vmul.f32 %v1561_v37, %v1551_v5  ;;  %v1584_v13 = vmul.f32 %v1583_v23, %v1573_v28  ;;  %v1585_v0 = vmul.f32 %v1583_v23, %v1574_v54 }
 0x377   : > { %v1622_v46 = vstv %s4968_s28  ;;  %v1635_v44 = vrot.slane %v1630_v63, %v3698_v60  ;;  %v1639_v62 = vrot.slane %v1630_v63, %v3686_v56  ;;  %v1612_v10 = vsel %vm1611_vm15, %v1608_v51, %v1610_v53  ;;  %v1649_v48 = vpop.permute.xlu1 %1648  ;;  %s5313_s28 = sld [smem:[#allocation6 + $0x28]] }
 0x378   : > { %v1566_v42 = vadd.f32 %v1564_v29, %v1527_v20  ;;  %v1567_v18 = vadd.f32 %v1565_v31, %v1528_v8  ;;  %v1589_v12 = vadd.f32 %v4899_v30, %v1584_v13  ;;  %v1590_v39 = vadd.f32 %v4929_v11, %v1585_v0  ;;  %v5032_v37 = vpop.permute.xlu0 %1724 }
 0x379   : > { %v1613_v25 = vsel %vm1611_vm15, %v1610_v53, %v1608_v51  ;;  %v1669_v52 = vmul.f32 %v4866_v7, %v4960_v43  ;;  %v1623_v15 = vmul.f32 %v1622_v46, %v1612_v10  ;;  %v6422_v50 = vstv %s3839_s6  ;;  %s5050_s6 = sld [smem:[#allocation6 + $0x50]]  ;;  %v6424_v10 = vld [vmem:[#allocation52_spill] sm:$0xff] }
 0x37a   : > { %v1603_v38 = vmul.f32 %v1596_v32, %v1589_v12  ;;  %v1604_v21 = vmul.f32 %v1600_v57, %v1590_v39  ;;  %v1624_v30 = vmul.f32 %v1622_v46, %v1613_v25  ;;  %v1665_v11 = vmul.f32 %v6422_v50, %v1657_v27  ;;  %v6425_v25 = vld [vmem:[#allocation47_spill] sm:$0xff] }
 0x37b   : > { %v6423_v26 = vmov %v6422_v50  ;;  %v1661_v17 = vstv %s4995_s7  ;;  %v1628_v34 = vadd.f32 %v4937_v36, %v1623_v15  ;;  %v1674_v51 = vrot.slane %v1669_v52, %v3698_v60  ;;  %v5040_v57 = vpop.permute.xlu1 %1687  ;;  %v6427_v15 = vld [vmem:[#allocation49_spill] sm:$0xff] }
 0x37c   : > { %v1666_v6 = vmul.f32 %v6423_v26, %v1658_v2  ;;  %v1605_v41 = vadd.f32 %v1603_v38, %v1566_v42  ;;  %v1606_v9 = vadd.f32 %v1604_v21, %v1567_v18  ;;  %v1629_v55 = vadd.f32 %v1627_v45, %v1624_v30  ;;  %v5042_v3 = vpop.permute.xlu0 %1763  ;;  %v6426_v21 = vld [vmem:[#allocation54_spill] sm:$0xff]  ;;  %v6429_v26 = vld [vmem:[#allocation51_spill] sm:$0xff] }
 0x37d   : > { %v1678_v33 = vrot.slane %v1669_v52, %v3686_v56  ;;  %v1651_v47 = vsel %vm1650_vm0, %v1647_v61, %v1649_v48  ;;  %v1652_v14 = vsel %vm1650_vm0, %v1649_v48, %v1647_v61  ;;  %v1642_v22 = vmul.f32 %v1635_v44, %v1628_v34  ;;  %v6430_v34 = vld [vmem:[#allocation59_spill] sm:$0xff] }
 0x37e   : > { %v1643_v23 = vmul.f32 %v1639_v62, %v1629_v55  ;;  %v1662_v63 = vmul.f32 %v1661_v17, %v1651_v47  ;;  %v1663_v16 = vmul.f32 %v1661_v17, %v1652_v14  ;;  %vm1689_vm2 = vcmp.lt.s32.totalorder %v3701_v4, 112  ;;  %v6431_v55 = vld [vmem:[#allocation53_spill] sm:$0xff]  ;;  %v6433_v47 = vld [vmem:[#allocation55_spill] sm:$0xff] }
 0x37f   : > { %v1644_v5 = vadd.f32 %v1642_v22, %v1605_v41  ;;  %v5048_v29 = vpop.permute.xlu1 %1726  ;;  %v1703_v24 = vstv %s5050_s6  ;;  %vm1728_vm1 = vcmp.lt.s32.totalorder %v3701_v4, 111  ;;  %v1742_v27 = vstv %s5054_s30  ;;  %s5386_s6 = sld [smem:[#allocation6 + $0x5c]] }
 0x380   : > { %v1645_v36 = vadd.f32 %v1643_v23, %v1606_v9  ;;  %v1667_v45 = vadd.f32 %v1665_v11, %v1662_v63  ;;  %v1668_v32 = vadd.f32 %v1666_v6, %v1663_v16  ;;  %v5052_v61 = vpop.permute.xlu0 %1802  ;;  %vm1767_vm3 = vcmp.lt.s32.totalorder %v3701_v4, 110  ;;  %v6428_v11 = vld [vmem:[#allocation56_spill] sm:$0xff]  ;;  %s5397_s30 = sld [smem:[#allocation6 + $0x2c]] }
 0x381   : > { %v1781_v2 = vstv %s5056_s20  ;;  %vm1806_vm4 = vcmp.lt.s32.totalorder %v3701_v4, 109  ;;  %v1820_v46 = vstv %s5058_s23  ;;  %vm1845_vm5 = vcmp.lt.s32.totalorder %v3701_v4, 99  ;;  %s5407_s20 = sld [smem:[#allocation6 + $0x5d]] }
 0x382   : > { %v1681_v20 = vmul.f32 %v1674_v51, %v1667_v45  ;;  %v1682_v8 = vmul.f32 %v1678_v33, %v1668_v32  ;;  %v1859_v44 = vstv %s5060_s3  ;;  %vm1884_vm6 = vcmp.lt.s32.totalorder %v3701_v4, 98  ;;  %v6432_v33 = vld [vmem:[#allocation62_spill] sm:$0xff]  ;;  %s5439_s23 = sld [smem:[#allocation6 + $0x2d]]  ;;  %s5441_s3 = sld [smem:[#allocation6 + $0x5e]] }
 0x383   : > { %v5066_v31 = vpop.permute.xlu1 %1765  ;;  %v1898_v42 = vstv %s5062_s14  ;;  %vm1923_vm7 = vcmp.lt.s32.totalorder %v3701_v4, 97  ;;  %v1937_v18 = vstv %s5064_s5  ;;  %vm1962_vm8 = vcmp.lt.s32.totalorder %v3701_v4, 96  ;;  %s5489_s14 = sld [smem:[#allocation6 + $0x2e]]  ;;  %s5580_s5 = sld [smem:[#allocation6 + $0x5f]] }
 0x384   : > { %v5044_v28 = vadd.f32 %v1681_v20, %v1644_v5  ;;  %v5046_v54 = vadd.f32 %v1682_v8, %v1645_v36  ;;  %v5072_v13 = vpop.permute.xlu0 %1841  ;;  %v1976_v39 = vstv %s5068_s19  ;;  %vm2001_vm9 = vcmp.lt.s32.totalorder %v3701_v4, 95  ;;  %v6434_v20 = vld [vmem:[#allocation64_spill] sm:$0xff]  ;;  %v6435_v8 = vld [vmem:[#allocation58_spill] sm:$0xff]  ;;  %s5669_s19 = sld [smem:[#allocation6 + $0x2f]] }
 0x385   : > { %v2015_v53 = vstv %s5070_s26  ;;  %vm2040_vm10 = vcmp.lt.s32.totalorder %v3701_v4, 94  ;;  %v1696_v52 = vsel %vm1689_vm2, %v6425_v25, %v6424_v10  ;;  %v1697_v38 = vsel %vm1689_vm2, %v6424_v10, %v6425_v25  ;;  %s5740_s26 = sld [smem:[#allocation6 + $0x60]] }
 0x386   : > { %v1735_v30 = vsel %vm1728_vm1, %v6427_v15, %v6426_v21  ;;  %v1736_v50 = vsel %vm1728_vm1, %v6426_v21, %v6427_v15  ;;  %v1774_v6 = vsel %vm1767_vm3, %v6429_v26, %v6428_v11  ;;  %v2054_v17 = vstv %s5074_s29  ;;  %v6436_v21 = vld [vmem:[#allocation71_spill] sm:$0xff]  ;;  %v6437_v15 = vld [vmem:[#allocation61_spill] sm:$0xff]  ;;  %s5838_s29 = sld [smem:[#allocation6 + $0x30]] }
 0x387   : > { %v5078_v0 = vpop.permute.xlu1 %1804  ;;  %vm2079_vm12 = vcmp.lt.s32.totalorder %v3701_v4, 93  ;;  %v2093_v41 = vstv %s5076_s1  ;;  %v1775_v9 = vsel %vm1767_vm3, %v6428_v11, %v6429_v26  ;;  %v1813_v48 = vsel %vm1806_vm4, %v6431_v55, %v6430_v34  ;;  %v6439_v11 = vld [vmem:[#allocation63_spill] sm:$0xff]  ;;  %s5840_s1 = sld [smem:[#allocation6 + $0x61]] }
 0x388   : > { %v5083_v49 = vpop.permute.xlu0 %1880  ;;  %v1814_v51 = vsel %vm1806_vm4, %v6430_v34, %v6431_v55  ;;  %v1852_v14 = vsel %vm1845_vm5, %v6433_v47, %v6432_v33  ;;  %v5146_v23 = vmul.f32 %v1703_v24, %v1696_v52  ;;  %v5148_v63 = vmul.f32 %v1703_v24, %v1697_v38 }
 0x389   : > { %v5150_v16 = vmul.f32 %v1742_v27, %v1735_v30  ;;  %v5152_v5 = vmul.f32 %v1742_v27, %v1736_v50  ;;  %v5156_v45 = vmul.f32 %v1781_v2, %v1774_v6  ;;  %v1853_v32 = vsel %vm1845_vm5, %v6432_v33, %v6433_v47 }
 0x38a   : > { %v1891_v10 = vsel %vm1884_vm6, %v6435_v8, %v6434_v20  ;;  %v1892_v24 = vsel %vm1884_vm6, %v6434_v20, %v6435_v8  ;;  %v5172_v27 = vmul.f32 %v1781_v2, %v1775_v9  ;;  %v5174_v25 = vmul.f32 %v1820_v46, %v1813_v48  ;;  %v6438_v2 = vld [vmem:[#allocation73_spill] sm:$0xff]  ;;  %v6440_v48 = vld [vmem:[#allocation75_spill] sm:$0xff]  ;;  %v6443_v8 = vld [vmem:[#allocation72_spill] sm:$0xff] }
 0x38b   : > { %v5097_v12 = vpop.permute.xlu1 %1843  ;;  %v5176_v52 = vmul.f32 %v1820_v46, %v1814_v51  ;;  %v5178_v38 = vmul.f32 %v1859_v44, %v1852_v14  ;;  %v1930_v30 = vsel %vm1923_vm7, %v6437_v15, %v6436_v21  ;;  %v1931_v50 = vsel %vm1923_vm7, %v6436_v21, %v6437_v15  ;;  %v6441_v51 = vld [vmem:[#allocation70_spill] sm:$0xff]  ;;  %v6442_v20 = vld [vmem:[#allocation77_spill] sm:$0xff] }
 0x38c   : > { %v5103_v62 = vpop.permute.xlu0 %1919  ;;  %v1969_v46 = vsel %vm1962_vm8, %v6439_v11, %v6438_v2  ;;  %v1970_v26 = vsel %vm1962_vm8, %v6438_v2, %v6439_v11  ;;  %v5202_v9 = vmul.f32 %v1859_v44, %v1853_v32  ;;  %v5204_v34 = vmul.f32 %v1898_v42, %v1891_v10  ;;  %v6447_v11 = vld [vmem:[#allocation80_spill] sm:$0xff] }
 0x38d   : > { %v5206_v55 = vmul.f32 %v1898_v42, %v1892_v24  ;;  %v2008_v33 = vsel %vm2001_vm9, %v6441_v51, %v6440_v48  ;;  %v2009_v14 = vsel %vm2001_vm9, %v6440_v48, %v6441_v51  ;;  %v2047_v44 = vsel %vm2040_vm10, %v6443_v8, %v6442_v20  ;;  %v6448_v48 = vld [vmem:[#allocation74_spill] sm:$0xff] }
 0x38e   : > { %v2048_v42 = vsel %vm2040_vm10, %v6442_v20, %v6443_v8  ;;  %v5228_v32 = vmul.f32 %v4703_v35, %v4960_v43  ;;  %v5234_v10 = vmul.f32 %v1937_v18, %v1930_v30  ;;  %v5236_v24 = vmul.f32 %v1937_v18, %v1931_v50  ;;  %v2537_v50 = vld [vmem:[%s6254_s25 + $0x5] ss:$8 sm:$0x3] }
 0x38f   : > { %v5144_v22 = vpop.permute.xlu1 %1882  ;;  %v5238_v21 = vmul.f32 %v1976_v39, %v1969_v46  ;;  %v5240_v15 = vmul.f32 %v1976_v39, %v1970_v26  ;;  %v5244_v2 = vmul.f32 %v2015_v53, %v2008_v33  ;;  %v2086_v51 = vsel %vm2079_vm12, %v6448_v48, %v6447_v11  ;;  %v5257_v39 = vld [vmem:[%s6254_s25 + $0x13] ss:$8 sm:$0x3] }
 0x390   : > { %v5154_v36 = vpop.permute.xlu0 %1958  ;;  %v2087_v18 = vsel %vm2079_vm12, %v6447_v11, %v6448_v48  ;;  %v5261_v30 = vmul.f32 %v5257_v39, %v4960_v43  ;;  %v5270_v26 = vmul.f32 %v2015_v53, %v2009_v14  ;;  %v5272_v33 = vmul.f32 %v2054_v17, %v2047_v44 }
 0x391   : > { %6444 = vst [vmem:[#allocation79_spill] sm:$0xff] %v5238_v21  ;;  %6445 = vst [vmem:[#allocation81_spill] sm:$0xff] %v5240_v15  ;;  %v5274_v20 = vmul.f32 %v2054_v17, %v2048_v42  ;;  %v5278_v8 = vmul.f32 %v4921_v59, %v4960_v43  ;;  %v1700_v48 = vstv %s5170_s24  ;;  %v5291_v14 = vmul.f32 %v4953_v58, %v4960_v43  ;;  %v5360_v15 = vld [vmem:[%s6254_s25 + $0x6] ss:$8 sm:$0x3]  ;;  %s5384_s25 = sld [smem:[#allocation6 + $0x2b]] }
 0x392   : > { %6446 = vst [vmem:[#allocation82_spill] sm:$0xff] %v5244_v2  ;;  %6449 = vst [vmem:[#allocation85_spill] sm:$0xff] %v5270_v26  ;;  %v5293_v17 = vmul.f32 %v2093_v41, %v2086_v51  ;;  %v5295_v44 = vmul.f32 %v2093_v41, %v2087_v18  ;;  %v5309_v51 = vmul.f32 %v4991_v40, %v2537_v50  ;;  %vm2118_vm14 = vcmp.lt.s32.totalorder %v3701_v4, 83  ;;  %s6539_s24 = sld [smem:[#allocation15_spill]] }
 0x393   : > { %v5200_v6 = vpop.permute.xlu1 %1921  ;;  %6450 = vst [vmem:[#allocation34_spill] sm:$0xff] %v5272_v33  ;;  %6451 = vst [vmem:[#allocation31_spill] sm:$0xff] %v5274_v20  ;;  %v5299_v20 = vmul.f32 %v4975_v19, %v2537_v50  ;;  %v5322_v53 = vmul.f32 %v4866_v7, %v2537_v50  ;;  %v5325_v43 = vmul.f32 %v4703_v35, %v2537_v50  ;;  %vm2157_vm11 = vcmp.lt.s32.totalorder %v3701_v4, 82 }
 0x394   : > { %v5212_v47 = vpop.permute.xlu0 %1997  ;;  %6452 = vst [vmem:[#allocation86_spill] sm:$0xff] %v5293_v17  ;;  %6453 = vst [vmem:[#allocation83_spill] sm:$0xff] %v5295_v44  ;;  %v5341_v21 = vmul.f32 %v5257_v39, %v2537_v50  ;;  %v5353_v2 = vmul.f32 %v4921_v59, %v2537_v50  ;;  %v1691_v44 = vsel %vm1689_vm2, %v5040_v57, %v5017_v1  ;;  %vm2196_vm13 = vcmp.lt.s32.totalorder %v3701_v4, 81 }
 0x395   : > { %6454 = vst [vmem:[#allocation84_spill] sm:$0xff] %v5322_v53  ;;  %6455 = vst [vmem:[#allocation29_spill] sm:$0xff] %v5325_v43  ;;  %v5382_v33 = vmul.f32 %v4953_v58, %v2537_v50  ;;  %v1730_v50 = vsel %vm1728_vm1, %v5048_v29, %v5032_v37  ;;  %v1768_v18 = vsel %vm1767_vm3, %v5042_v3, %v5066_v31  ;;  %vm2235_vm15 = vcmp.lt.s32.totalorder %v3701_v4, 80 }
 0x396   : > { %6457 = vst [vmem:[#allocation88_spill] sm:$0xff] %v5341_v21  ;;  %6458 = vst [vmem:[#allocation93_spill] sm:$0xff] %v5353_v2  ;;  %vm2274_vm0 = vcmp.lt.s32.totalorder %v3701_v4, 79 }
 0x397   : > { %v5268_v46 = vpop.permute.xlu1 %1960  ;;  %6460 = vst [vmem:[#allocation32_spill] sm:$0xff] %v5382_v33  ;;  %v6464_v33 = vstv %s5198_s21 }
 0x398   : > { %v5282_v11 = vpop.permute.xlu0 %2036  ;;  %s2655_s21 = sshll.u32 %s6539_s24, 10 }
 0x399   : > { %s5916_s15 = scalar_lea.hbm %s6546_s13, %s2655_s21 }
 0x39b   : > { %v5311_v41 = vpop.permute.xlu1 %1999 }
 0x39c   : > { %v5327_v42 = vpop.permute.xlu0 %2075 }
 0x39d   : > { %6456 = vst [vmem:[#allocation87_spill] sm:$0xff] %v5327_v42  ;;  %v1690_v42 = vsel %vm1689_vm2, %v5017_v1, %v5040_v57  ;;  %v5395_v1 = vmul.f32 %v4975_v19, %v5360_v15  ;;  %v1702_v19 = vmul.f32 %v1700_v48, %v1691_v44  ;;  %v1729_v57 = vsel %vm1728_vm1, %v5032_v37, %v5048_v29 }
 0x39e   : > { %v1701_v53 = vmul.f32 %v1700_v48, %v1690_v42  ;;  %v1769_v48 = vsel %vm1767_vm3, %v5066_v31, %v5042_v3  ;;  %v5431_v37 = vmul.f32 %v4991_v40, %v5360_v15  ;;  %v6462_v3 = vstv %s5180_s8  ;;  %s6540_s8 = sld [smem:[#allocation20_spill]] }
 0x39f   : > { %v5355_v26 = vpop.permute.xlu1 %2038  ;;  %v1740_v31 = vmul.f32 %v6462_v3, %v1729_v57  ;;  %v6463_v44 = vmov %v6462_v3  ;;  %v5453_v42 = vmul.f32 %v4866_v7, %v5360_v15  ;;  %v1707_v58 = vadd.f32 %v5148_v63, %v1702_v19 }
 0x3a0   : > { %v5369_v59 = vpop.permute.xlu0 %2114  ;;  %v1741_v40 = vmul.f32 %v6463_v44, %v1730_v50  ;;  %v1706_v2 = vadd.f32 %v5146_v23, %v1701_v53  ;;  %v6465_v57 = vmov %v6464_v33  ;;  %v2168_v50 = vstv %s5384_s25 }
 0x3a1   : > { %6459 = vst [vmem:[#allocation36_spill] sm:$0xff] %v5369_v59  ;;  %v1780_v3 = vmul.f32 %v6465_v57, %v1769_v48  ;;  %v2171_v44 = vstv %s5386_s6  ;;  %v1807_v23 = vsel %vm1806_vm4, %v5052_v61, %v5078_v0  ;;  %v1808_v63 = vsel %vm1806_vm4, %v5078_v0, %v5052_v61 }
 0x3a2   : > { %v5480_v53 = vmul.f32 %v4703_v35, %v5360_v15  ;;  %v1746_v19 = vadd.f32 %v5152_v5, %v1741_v40  ;;  %v6466_v61 = vrot.slane %v5228_v32, %v3698_v60  ;;  %v6467_v35 = vrot.slane %v5228_v32, %v3686_v56 }
 0x3a3   : > { %v5405_v59 = vpop.permute.xlu1 %2077  ;;  %v1785_v5 = vadd.f32 %v5172_v27, %v1780_v3  ;;  %v6468_v29 = vstv %s5230_s22  ;;  %v2249_v32 = vstv %s5441_s3  ;;  %vm2313_vm2 = vcmp.lt.s32.totalorder %v3701_v4, 78 }
 0x3a4   : > { %v5417_v17 = vpop.permute.xlu0 %2121  ;;  %v1720_v0 = vmul.f32 %v6466_v61, %v1706_v2  ;;  %v6469_v7 = vmov %v6468_v29  ;;  %v1846_v2 = vsel %vm1845_vm5, %v5072_v13, %v5097_v12  ;;  %vm2352_vm1 = vcmp.lt.s32.totalorder %v3701_v4, 77  ;;  %s6541_s22 = sshll.u32 %s6540_s8, 6 }
 0x3a5   : > { %6461 = vst [vmem:[#allocation76_spill] sm:$0xff] %v5417_v17  ;;  %v1779_v17 = vmul.f32 %v6464_v33, %v1768_v18  ;;  %v1745_v18 = vadd.f32 %v5150_v16, %v1740_v31  ;;  %v1721_v16 = vmul.f32 %v6467_v35, %v1707_v58  ;;  %v1818_v33 = vmul.f32 %v6468_v29, %v1807_v23 }
 0x3a6   : > { %v1819_v57 = vmul.f32 %v6469_v7, %v1808_v63  ;;  %v1847_v58 = vsel %vm1845_vm5, %v5097_v12, %v5072_v13  ;;  %v6470_v29 = vrot.slane %v5261_v30, %v3698_v60  ;;  %v6471_v7 = vrot.slane %v5261_v30, %v3686_v56 }
 0x3a7   : > { %v5447_v21 = vpop.permute.xlu1 %2116  ;;  %v1784_v31 = vadd.f32 %v5156_v45, %v1779_v17  ;;  %v1885_v13 = vsel %vm1884_vm6, %v5083_v49, %v5144_v22  ;;  %v1886_v12 = vsel %vm1884_vm6, %v5144_v22, %v5083_v49  ;;  %v1722_v61 = vadd.f32 %v1720_v0, %v5044_v28 }
 0x3a8   : > { %v5461_v43 = vpop.permute.xlu0 %2153  ;;  %v1759_v3 = vmul.f32 %v6470_v29, %v1745_v18  ;;  %v1760_v23 = vmul.f32 %v6471_v7, %v1746_v19  ;;  %v1723_v18 = vadd.f32 %v1721_v16, %v5046_v54  ;;  %v6472_v35 = vstv %s5232_s16  ;;  %s256_s16 = scalar_lea.vmem [#allocation7], %s6541_s22 }
 0x3a9   : > { %v1857_v30 = vmul.f32 %v6472_v35, %v1846_v2  ;;  %v6473_v19 = vmov %v6472_v35  ;;  %v6474_v17 = vrot.slane %v5278_v8, %v3698_v60  ;;  %v6475_v49 = vrot.slane %v5278_v8, %v3686_v56 }
 0x3aa   : > { %v1858_v29 = vmul.f32 %v6473_v19, %v1847_v58  ;;  %v1823_v27 = vadd.f32 %v5174_v25, %v1818_v33  ;;  %v1824_v28 = vadd.f32 %v5176_v52, %v1819_v57  ;;  %v6476_v54 = vstv %s5242_s18  ;;  %s2437_s18 = sshll.u32 %s256_s16, 4  ;;  %s5922_s18 = int_to_ptr.vmem [resolvable:$true] %s2437_s18 }
 0x3ab   : > { %v5484_v48 = vpop.permute.xlu1 %2123  ;;  %v1798_v45 = vmul.f32 %v6474_v17, %v1784_v31  ;;  %v1799_v22 = vmul.f32 %v6475_v49, %v1785_v5  ;;  %v1896_v0 = vmul.f32 %v6476_v54, %v1885_v13  ;;  %v6477_v16 = vmov %v6476_v54 }
 0x3ac   : > { %v5499_v40 = vpop.permute.xlu0 %2160  ;;  %v1897_v2 = vmul.f32 %v6477_v16, %v1886_v12  ;;  %v1924_v58 = vsel %vm1923_vm7, %v5103_v62, %v5200_v6  ;;  %v1925_v8 = vsel %vm1923_vm7, %v5200_v6, %v5103_v62  ;;  %v1761_v31 = vadd.f32 %v1759_v3, %v1722_v61 }
 0x3ad   : > { %v1762_v25 = vadd.f32 %v1760_v23, %v1723_v18  ;;  %v2263_v52 = vrot.slane %v5480_v53, %v3686_v56  ;;  %v2285_v57 = vstv %s5489_s14  ;;  %v1862_v5 = vadd.f32 %v5178_v38, %v1857_v30 }
 0x3ae   : > { %v1863_v17 = vadd.f32 %v5202_v9, %v1858_v29  ;;  %v1963_v13 = vsel %vm1962_vm8, %v5154_v36, %v5268_v46  ;;  %v1964_v62 = vsel %vm1962_vm8, %v5268_v46, %v5154_v36  ;;  %v6478_v3 = vrot.slane %v5291_v14, %v3698_v60 }
 0x3af   : > { %v5533_v63 = vpop.permute.xlu1 %2155  ;;  %v6479_v9 = vrot.slane %v5291_v14, %v3686_v56  ;;  %v6480_v12 = vstv %s5266_s11  ;;  %v1800_v30 = vadd.f32 %v1798_v45, %v1761_v31  ;;  %v1801_v19 = vadd.f32 %v1799_v22, %v1762_v25  ;;  %s6549_s11 = sld [smem:[#allocation18_spill]] }
 0x3b0   : > { %v5541_v7 = vpop.permute.xlu0 %2192  ;;  %v1837_v38 = vmul.f32 %v6478_v3, %v1823_v27  ;;  %v1935_v61 = vmul.f32 %v6480_v12, %v1924_v58  ;;  %v6481_v18 = vmov %v6480_v12  ;;  %v1901_v36 = vadd.f32 %v5204_v34, %v1896_v0  ;;  %v6490_v3 = vld [vmem:[#allocation79_spill] sm:$0xff] }
 0x3b1   : > { %v1838_v23 = vmul.f32 %v6479_v9, %v1824_v28  ;;  %v1936_v35 = vmul.f32 %v6481_v18, %v1925_v8  ;;  %v1902_v46 = vadd.f32 %v5206_v55, %v1897_v2  ;;  %v6482_v29 = vstv %s5280_s12  ;;  %v6491_v9 = vld [vmem:[#allocation81_spill] sm:$0xff]  ;;  %s2424_s12 = scalar_lea.sflag [#allocation4], %s6540_s8 }
 0x3b2   : > { %v1974_v49 = vmul.f32 %v6482_v29, %v1963_v13  ;;  %v6483_v54 = vmov %v6482_v29  ;;  %v2002_v14 = vsel %vm2001_vm9, %v5212_v47, %v5311_v41  ;;  %v2003_v45 = vsel %vm2001_vm9, %v5311_v41, %v5212_v47 }
 0x3b3   : > { %v5563_v33 = vpop.permute.xlu1 %2162  ;;  %v1975_v16 = vmul.f32 %v6483_v54, %v1964_v62  ;;  %v6484_v55 = vrot.slane %v5299_v20, %v3698_v60  ;;  %v6485_v22 = vrot.slane %v5299_v20, %v3686_v56  ;;  %v2041_v0 = vsel %vm2040_vm10, %v5282_v11, %v5355_v26 }
 0x3b4   : > { %v5578_v6 = vpop.permute.xlu0 %2199  ;;  %v2042_v47 = vsel %vm2040_vm10, %v5355_v26, %v5282_v11  ;;  %v1839_v2 = vadd.f32 %v1837_v38, %v1800_v30  ;;  %v1840_v58 = vadd.f32 %v1838_v23, %v1801_v19  ;;  %v1940_v8 = vadd.f32 %v5234_v10, %v1935_v61 }
 0x3b5   : > { %v1876_v27 = vmul.f32 %v6484_v55, %v1862_v5  ;;  %v1877_v28 = vmul.f32 %v6485_v22, %v1863_v17  ;;  %v1941_v20 = vadd.f32 %v5236_v24, %v1936_v35  ;;  %v6486_v31 = vrot.slane %v5309_v51, %v3698_v60  ;;  %v6498_v22 = vld [vmem:[#allocation82_spill] sm:$0xff]  ;;  %p6552_p12 = scmp.ne.s32.totalorder %s6549_s11, 0 }
 0x3b6   : > { %v6487_v5 = vrot.slane %v5309_v51, %v3686_v56  ;;  %v6488_v13 = vstv %s5301_s10  ;;  %v1979_v38 = vadd.f32 %v6490_v3, %v1974_v49  ;;  %v1980_v23 = vadd.f32 %v6491_v9, %v1975_v16  ;;  %v6507_v9 = vld [vmem:[#allocation76_spill] sm:$0xff]  ;;  %s2841_s10 = scalar_lea.vmem %s5922_s18, 1024 }
 0x3b7   : > { %v5607_v34 = vpop.permute.xlu1 %2194  ;;  %v1915_v25 = vmul.f32 %v6486_v31, %v1901_v36  ;;  %v2013_v62 = vmul.f32 %v6488_v13, %v2002_v14  ;;  %v6489_v26 = vmov %v6488_v13  ;;  %v6492_v12 = vstv %s5313_s28  ;;  %v6497_v14 = vld [vmem:[#allocation87_spill] sm:$0xff]  ;;  %p2842_p5 = scmp.ne.s32.totalorder %s5922_s18, %s2841_s10  ;;  %s2965_s28 = smov [#allocation7]  }
 0x3b8   : > { %v5623_v41 = vpop.permute.xlu0 %2231  ;;  %v1916_v17 = vmul.f32 %v6487_v5, %v1902_v46  ;;  %v2014_v11 = vmul.f32 %v6489_v26, %v2003_v45  ;;  %v2052_v10 = vmul.f32 %v6492_v12, %v2041_v0  ;;  %v6493_v61 = vmov %v6492_v12  ;;  %v6494_v46 = vld [vmem:[#allocation84_spill] sm:$0xff]  ;;  %v6499_v0 = vld [vmem:[#allocation85_spill] sm:$0xff]  ;;  %v6503_v5 = vld [vmem:[#allocation34_spill] sm:$0xff] }
 0x3b9   : > { %v2053_v24 = vmul.f32 %v6493_v61, %v2042_v47  ;;  %v1878_v35 = vadd.f32 %v1876_v27, %v1839_v2  ;;  %v1879_v30 = vadd.f32 %v1877_v28, %v1840_v58  ;;  %v2288_v19 = vstv %s5580_s5  ;;  %v6500_v2 = vld [vmem:[#allocation29_spill] sm:$0xff]  ;;  %v6504_v26 = vld [vmem:[#allocation31_spill] sm:$0xff]  ;;  %p2843_p8 = pnand %p2842_p5, %p6552_p12 }
 0x3ba   : > { %v5651_v36 = vmul.f32 %v5257_v39, %v5360_v15  ;;  %v6495_v29 = vrot.slane %v6494_v46, %v3698_v60  ;;  %v6496_v54 = vrot.slane %v6494_v46, %v3686_v56  ;;  %v2080_v45 = vsel %vm2079_vm12, %v6497_v14, %v5405_v59 }
 0x3bb   : > { %v5643_v18 = vpop.permute.xlu1 %2201  ;;  %v2081_v39 = vsel %vm2079_vm12, %v5405_v59, %v6497_v14  ;;  %v1917_v55 = vadd.f32 %v1915_v25, %v1878_v35  ;;  %v1918_v27 = vadd.f32 %v1916_v17, %v1879_v30  ;;  %v2018_v28 = vadd.f32 %v6498_v22, %v2013_v62  ;;  %v6508_v30 = vld [vmem:[#allocation88_spill] sm:$0xff]  ;;  %p2844_p9 = pneg %p2843_p8 }
 0x3bc   : > { %v5646_v51 = vpop.permute.xlu0 %2238  ;;  %v1954_v49 = vmul.f32 %v6495_v29, %v1940_v8  ;;  %v1955_v16 = vmul.f32 %v6496_v54, %v1941_v20  ;;  %v2019_v47 = vadd.f32 %v6499_v0, %v2014_v11  ;;  %v6501_v58 = vrot.slane %v6500_v2, %v3698_v60  ;;  %v6511_v14 = vld [vmem:[#allocation36_spill] sm:$0xff] }
 0x3bd   : > { %v6502_v20 = vrot.slane %v6500_v2, %v3686_v56  ;;  %v2057_v13 = vadd.f32 %v6503_v5, %v2052_v10  ;;  %v2058_v59 = vadd.f32 %v6504_v26, %v2053_v24  ;;  %v6505_v17 = vstv %s5315_s4  ;;  %v6517_v26 = vld [vmem:[#allocation86_spill] sm:$0xff]  ;;  %s2845_s4 = sshll.u32 %s2965_s28, 4  ;;  %s2846_s4 = int_to_ptr.vmem [resolvable:$false] %s2845_s4 }
 0x3be   : > { %v1993_v8 = vmul.f32 %v6501_v58, %v1979_v38  ;;  %v2091_v62 = vmul.f32 %v6505_v17, %v2080_v45  ;;  %v6506_v11 = vmov %v6505_v17  ;;  %v2125_v38 = vsel %vm2118_vm14, %v6507_v9, %v5484_v48  ;;  %v6518_v17 = vld [vmem:[#allocation83_spill] sm:$0xff]  ;;  %p2848_p10 = scmp.lt.s32.totalorder %s5922_s18, %s2846_s4 }
 0x3bf   : > { %v1994_v31 = vmul.f32 %v6502_v20, %v1980_v23  ;;  %v5680_v25 = vpop.permute.xlu1 %2233  ;;  %v2092_v3 = vmul.f32 %v6506_v11, %v2081_v39  ;;  %v2126_v23 = vsel %vm2118_vm14, %v5484_v48, %v6507_v9  ;;  %v1956_v10 = vadd.f32 %v1954_v49, %v1917_v55 }
 0x3c0   : > { %v5694_v12 = vpop.permute.xlu0 %2270  ;;  %v1957_v61 = vadd.f32 %v1955_v16, %v1918_v27  ;;  %v2298_v24 = vrot.slane %v5651_v36, %v3698_v60  ;;  %v2302_v35 = vrot.slane %v5651_v36, %v3686_v56  ;;  %v6509_v46 = vrot.slane %v6508_v30, %v3698_v60 }
 0x3c1   : > { %v6510_v54 = vrot.slane %v6508_v30, %v3686_v56  ;;  %v2119_v49 = vsel %vm2118_vm14, %v6511_v14, %v5447_v21  ;;  %v2120_v16 = vsel %vm2118_vm14, %v5447_v21, %v6511_v14  ;;  %v1995_v45 = vadd.f32 %v1993_v8, %v1956_v10 }
 0x3c2   : > { %v2032_v29 = vmul.f32 %v6509_v46, %v2018_v28  ;;  %v1996_v39 = vadd.f32 %v1994_v31, %v1957_v61  ;;  %v6512_v55 = vstv %s5345_s2  ;;  %v2096_v21 = vadd.f32 %v6517_v26, %v2091_v62  ;;  %v6521_v61 = vld [vmem:[#allocation57_spill] sm:$0xff] }
 0x3c3   : > { %v2033_v48 = vmul.f32 %v6510_v54, %v2019_v47  ;;  %v2133_v27 = vmul.f32 %v6512_v55, %v2125_v38  ;;  %v6513_v22 = vmov %v6512_v55  ;;  %v2241_v0 = vpop.permute.xlu1 %2240  ;;  %v6514_v47 = vld [vmem:[#allocation93_spill] sm:$0xff]  ;;  %v2097_v11 = vadd.f32 %v6518_v17, %v2092_v3 }
 0x3c4   : > { %v2134_v28 = vmul.f32 %v6513_v22, %v2126_v23  ;;  %v6515_v2 = vrot.slane %v6514_v47, %v3698_v60  ;;  %v6516_v20 = vrot.slane %v6514_v47, %v3686_v56  ;;  %v2278_v8 = vpop.permute.xlu0 %2277  ;;  %v6519_v9 = vstv %s5343_s0  ;;  %s2847_s0 = scalar_lea.vmem %s2846_s4, 2048 }
 0x3c5   : > { %v2130_v31 = vmul.f32 %v6519_v9, %v2119_v49  ;;  %v6520_v38 = vmov %v6519_v9  ;;  %v2034_v62 = vadd.f32 %v2032_v29, %v1995_v45  ;;  %v2035_v10 = vadd.f32 %v2033_v48, %v1996_v39  ;;  %v6522_v45 = vld [vmem:[#allocation32_spill] sm:$0xff]  ;;  %p2849_p1 = scmp.lt.s32.totalorder %s2847_s0, %s2841_s10 }
 0x3c6   : > { %v2071_v58 = vmul.f32 %v6515_v2, %v2057_v13  ;;  %v2072_v5 = vmul.f32 %v6516_v20, %v2058_v59  ;;  %v2131_v23 = vmul.f32 %v6520_v38, %v2120_v16  ;;  %v2164_v13 = vsel %vm2157_vm11, %v5499_v40, %v5563_v33 }
 0x3c7   : > { %v2165_v59 = vsel %vm2157_vm11, %v5563_v33, %v5499_v40  ;;  %v2324_v3 = vstv %s5669_s19  ;;  %v5744_v30 = vmul.f32 %v6521_v61, %v5360_v15  ;;  %v2135_v46 = vadd.f32 %v2133_v27, %v2130_v31  ;;  %v2273_v33 = vpop.permute.xlu1 %2272  ;;  %v6531_v61 = vld [vmem:[#allocation78_spill] sm:$0xff]  ;;  %p2850_p4 = por %p2849_p1, %p2848_p10 }
 0x3c8   : > { %v2136_v54 = vadd.f32 %v2134_v28, %v2131_v23  ;;  %v2158_v14 = vsel %vm2157_vm11, %v5461_v43, %v5533_v63  ;;  %v2159_v40 = vsel %vm2157_vm11, %v5533_v63, %v5461_v43  ;;  %v2172_v29 = vmul.f32 %v2171_v44, %v2164_v13  ;;  %v2310_v22 = vpop.permute.xlu0 %2309 }
 0x3c9   : > { %v2173_v48 = vmul.f32 %v2171_v44, %v2165_v59  ;;  %v2203_v49 = vsel %vm2196_vm13, %v5578_v6, %v5643_v18  ;;  %v2204_v16 = vsel %vm2196_vm13, %v5643_v18, %v5578_v6  ;;  %v2073_v43 = vadd.f32 %v2071_v58, %v2034_v62  ;;  %p2851_p11 = pnand %p2850_p4, %p2844_p9 }
 0x3ca   : > { %v2074_v63 = vadd.f32 %v2072_v5, %v2035_v10  ;;  %v6523_v39 = vrot.slane %v6522_v45, %v3698_v60  ;;  %v6524_v44 = vrot.slane %v6522_v45, %v3686_v56  ;;  %v2169_v28 = vmul.f32 %v2168_v50, %v2158_v14 }
 0x3cb   : > { %v2170_v47 = vmul.f32 %v2168_v50, %v2159_v40  ;;  %v2197_v6 = vsel %vm2196_vm13, %v5541_v7, %v5607_v34  ;;  %v2198_v18 = vsel %vm2196_vm13, %v5607_v34, %v5541_v7  ;;  %v6525_v2 = vstv %s5407_s20 }
 0x3cc   : > { %v2110_v55 = vmul.f32 %v6523_v39, %v2096_v21  ;;  %v2111_v27 = vmul.f32 %v6524_v44, %v2097_v11  ;;  %v2211_v58 = vmul.f32 %v6525_v2, %v2203_v49  ;;  %v6526_v20 = vmov %v6525_v2  ;;  %v2280_v21 = vpop.permute.xlu1 %2279 }
 0x3cd   : > { %v2212_v5 = vmul.f32 %v6526_v20, %v2204_v16  ;;  %v2242_v50 = vsel %vm2235_vm15, %v5646_v51, %v2241_v0  ;;  %v2243_v26 = vsel %vm2235_vm15, %v2241_v0, %v5646_v51  ;;  %v6527_v17 = vrot.slane %v5395_v1, %v3698_v60 }
 0x3ce   : > { %v6528_v7 = vrot.slane %v5395_v1, %v3686_v56  ;;  %v2174_v9 = vadd.f32 %v2172_v29, %v2169_v28  ;;  %v2175_v31 = vadd.f32 %v2173_v48, %v2170_v47  ;;  %v6529_v38 = vstv %s5397_s30  ;;  %v2317_v48 = vpop.permute.xlu0 %2316 }
 0x3cf   : > { %v2149_v11 = vmul.f32 %v6527_v17, %v2135_v46  ;;  %v2208_v23 = vmul.f32 %v6529_v38, %v2197_v6  ;;  %v6530_v13 = vmov %v6529_v38  ;;  %v2236_v51 = vsel %vm2235_vm15, %v5623_v41, %v5680_v25 }
 0x3d0   : > { %v2150_v34 = vmul.f32 %v6528_v7, %v2136_v54  ;;  %v2209_v59 = vmul.f32 %v6530_v13, %v2198_v18  ;;  %v2237_v0 = vsel %vm2235_vm15, %v5680_v25, %v5623_v41  ;;  %v2250_v1 = vmul.f32 %v2249_v32, %v2242_v50  ;;  %v2312_v49 = vpop.permute.xlu1 %2311 }
 0x3d1   : > { %v2251_v62 = vmul.f32 %v2249_v32, %v2243_v26  ;;  %v2327_v10 = vstv %s5740_s26  ;;  %v5821_v46 = vmul.f32 %v6531_v61, %v5360_v15  ;;  %v2112_v54 = vadd.f32 %v2110_v55, %v2073_v43 }
 0x3d2   : > { %v2113_v14 = vadd.f32 %v2111_v27, %v2074_v63  ;;  %v2213_v40 = vadd.f32 %v2211_v58, %v2208_v23  ;;  %v2214_v29 = vadd.f32 %v2212_v5, %v2209_v59  ;;  %v6532_v16 = vstv %s5439_s23 }
 0x3d3   : > { %v2247_v41 = vmul.f32 %v6532_v16, %v2236_v51  ;;  %v6533_v25 = vmov %v6532_v16  ;;  %v2281_v32 = vsel %vm2274_vm0, %v2278_v8, %v2280_v21  ;;  %v2282_v15 = vsel %vm2274_vm0, %v2280_v21, %v2278_v8 }
 0x3d4   : > { %v2248_v45 = vmul.f32 %v6533_v25, %v2237_v0  ;;  %v2151_v43 = vadd.f32 %v2149_v11, %v2112_v54  ;;  %v2152_v63 = vadd.f32 %v2150_v34, %v2113_v14  ;;  %v6534_v39 = vrot.slane %v5431_v37, %v3698_v60  ;;  %v2319_v20 = vpop.permute.xlu1 %2318 }
 0x3d5   : > { %v6535_v44 = vrot.slane %v5431_v37, %v3686_v56  ;;  %v2252_v28 = vadd.f32 %v2250_v1, %v2247_v41  ;;  %v2275_v8 = vsel %vm2274_vm0, %v5694_v12, %v2273_v33  ;;  %v2276_v6 = vsel %vm2274_vm0, %v2273_v33, %v5694_v12 }
 0x3d6   : > { %v2188_v55 = vmul.f32 %v6534_v39, %v2174_v9  ;;  %v2253_v47 = vadd.f32 %v2251_v62, %v2248_v45  ;;  %v2289_v18 = vmul.f32 %v2288_v19, %v2281_v32  ;;  %v2290_v37 = vmul.f32 %v2288_v19, %v2282_v15 }
 0x3d7   : > { %v2189_v27 = vmul.f32 %v6535_v44, %v2175_v31  ;;  %v2314_v2 = vsel %vm2313_vm2, %v2310_v22, %v2312_v49  ;;  %v2315_v58 = vsel %vm2313_vm2, %v2312_v49, %v2310_v22  ;;  %v6536_v5 = vrot.slane %v5453_v42, %v3698_v60  ;;  %v2349_v22 = vpop.permute.xlu0 %2348 }
 0x3d8   : > { %v6537_v12 = vrot.slane %v5453_v42, %v3686_v56  ;;  %v2320_v26 = vsel %vm2313_vm2, %v2317_v48, %v2319_v20  ;;  %v2321_v19 = vsel %vm2313_vm2, %v2319_v20, %v2317_v48  ;;  %v2286_v21 = vmul.f32 %v2285_v57, %v2275_v8  ;;  %v2351_v51 = vpop.permute.xlu1 %2350 }
 0x3d9   : > { %v2227_v50 = vmul.f32 %v6536_v5, %v2213_v40  ;;  %v2287_v17 = vmul.f32 %v2285_v57, %v2276_v6  ;;  %v2328_v11 = vmul.f32 %v2327_v10, %v2320_v26  ;;  %v2329_v7 = vmul.f32 %v2327_v10, %v2321_v19  ;;  %v6542_v26 = vld [vmem:[#allocation25_spill] sm:$0xff] }
 0x3da   : > { %v2228_v33 = vmul.f32 %v6537_v12, %v2214_v29  ;;  %v2190_v34 = vadd.f32 %v2188_v55, %v2151_v43  ;;  %v2191_v9 = vadd.f32 %v2189_v27, %v2152_v63  ;;  %v2325_v42 = vmul.f32 %v2324_v3, %v2314_v2 }
 0x3db   : > { %v2326_v31 = vmul.f32 %v2324_v3, %v2315_v58  ;;  %v6538_v38 = vrot.slane %v5480_v53, %v3698_v60  ;;  %v2267_v13 = vmul.f32 %v2263_v52, %v2253_v47  ;;  %v2291_v57 = vadd.f32 %v2289_v18, %v2286_v21  ;;  %v2356_v41 = vpop.permute.xlu0 %2355  ;;  %v6543_v21 = vld [vmem:[#allocation21_spill] sm:$0xff] }
 0x3dc   : > { %v2292_v59 = vadd.f32 %v2290_v37, %v2287_v17  ;;  %v2337_v0 = vrot.slane %v5744_v30, %v3698_v60  ;;  %v2341_v1 = vrot.slane %v5744_v30, %v3686_v56  ;;  %v2330_v62 = vadd.f32 %v2328_v11, %v2325_v42  ;;  %v2358_v25 = vpop.permute.xlu1 %2357 }
 0x3dd   : > { %v2266_v23 = vmul.f32 %v6538_v38, %v2252_v28  ;;  %v2331_v10 = vadd.f32 %v2329_v7, %v2326_v31  ;;  %v2229_v3 = vadd.f32 %v2227_v50, %v2190_v34  ;;  %v2230_v61 = vadd.f32 %v2228_v33, %v2191_v9  ;;  %v6545_v7 = vld [vmem:[#allocation23_spill] sm:$0xff]  ;;  %v6547_v9 = vld [vmem:[#allocation26_spill] sm:$0xff] }
 0x3de   : > { %v2363_v54 = vstv %s5838_s29  ;;  %v2366_v14 = vstv %s5840_s1  ;;  %v2353_v40 = vsel %vm2352_vm1, %v2349_v22, %v2351_v51  ;;  %v2354_v53 = vsel %vm2352_vm1, %v2351_v51, %v2349_v22  ;;  %v6544_v22 = vld [vmem:[#allocation27_spill] sm:$0xff]  ;;  %v6548_v31 = vld [vmem:[#allocation22_spill] sm:$0xff] }
 0x3df   : > { %v2376_v52 = vrot.slane %v5821_v46, %v3698_v60  ;;  %v2380_v29 = vrot.slane %v5821_v46, %v3686_v56  ;;  %v2268_v48 = vadd.f32 %v2266_v23, %v2229_v3  ;;  %v2269_v30 = vadd.f32 %v2267_v13, %v2230_v61  ;;  %v6551_v13 = vld [vmem:[#allocation24_spill] sm:$0xff] }
 0x3e0   : > { %v2305_v49 = vmul.f32 %v2298_v24, %v2291_v57  ;;  %v2306_v16 = vmul.f32 %v2302_v35, %v2292_v59  ;;  %v2344_v45 = vmul.f32 %v2337_v0, %v2330_v62  ;;  %v2345_v32 = vmul.f32 %v2341_v1, %v2331_v10 }
 0x3e1   : > { %v2359_v15 = vsel %vm2352_vm1, %v2356_v41, %v2358_v25  ;;  %v2360_v46 = vsel %vm2352_vm1, %v2358_v25, %v2356_v41  ;;  %v2364_v43 = vmul.f32 %v2363_v54, %v2353_v40  ;;  %v2365_v63 = vmul.f32 %v2363_v54, %v2354_v53 }
 0x3e2   : > { %v2367_v39 = vmul.f32 %v2366_v14, %v2359_v15  ;;  %v2368_v55 = vmul.f32 %v2366_v14, %v2360_v46  ;;  %v2307_v44 = vadd.f32 %v2305_v49, %v2268_v48  ;;  %v2308_v24 = vadd.f32 %v2306_v16, %v2269_v30 }
 0x3e4   : > { %v2369_v27 = vadd.f32 %v2367_v39, %v2364_v43  ;;  %v2370_v28 = vadd.f32 %v2368_v55, %v2365_v63  ;;  %v2346_v56 = vadd.f32 %v2344_v45, %v2307_v44  ;;  %v2347_v36 = vadd.f32 %v2345_v32, %v2308_v24 }
 0x3e6   : > { %v2383_v35 = vmul.f32 %v2376_v52, %v2369_v27  ;;  %v2384_v47 = vmul.f32 %v2380_v29, %v2370_v28 }
 0x3e8   : > { %v2385_v8 = vadd.f32 %v2383_v35, %v2346_v56  ;;  %v2386_v6 = vadd.f32 %v2384_v47, %v2347_v36 }
 0x3ea   : > { %v2647_v18 = vmul.f32 -1.442695, %v2385_v8  ;;  %v2648_v37 = vmul.f32 -1.442695, %v2386_v6 }
 0x3ec   : > { %2780 = vpow2.f32 %v2647_v18 }
 0x3ed   : > { %2782 = vpow2.f32 %v2648_v37 }
 0x3f6   : > { %v2781_v4 = vpop.eup %2780 }
 0x3f7   : > { %v2783_v2 = vpop.eup %2782  ;;  %v2393_v58 = vadd.f32 1.0, %v2781_v4 }
 0x3f8   : > { %v2394_v20 = vadd.f32 1.0, %v2783_v2 }
 0x3f9   : > { %2784 = vrcp.f32 %v2393_v58 }
 0x3fa   : > { %2786 = vrcp.f32 %v2394_v20 }
 0x403   : > { %v2785_v5 = vpop.eup %2784 }
 0x404   : > { %v2787_v50 = vpop.eup %2786  ;;  %v2402_v12 = vrot.slane %v2785_v5, %v3698_v60 }
 0x405   : > { %v2406_v33 = vrot.slane %v2787_v50, %v3698_v60  ;;  %v6550_v60 = vld [vmem:[#allocation28_spill] sm:$0xff] }
 0x406   : > { %v2407_v19 = vmul.f32 %v2402_v12, %v6542_v26  ;;  %v2409_v17 = vmul.f32 %v2402_v12, %v6543_v21  ;;  %v2411_v11 = vmul.f32 %v2402_v12, %v6544_v22  ;;  %v2413_v34 = vmul.f32 %v2402_v12, %v6545_v7 }
 0x407   : > { %v2408_v42 = vmul.f32 %v2406_v33, %v6547_v9  ;;  %v2410_v38 = vmul.f32 %v2406_v33, %v6548_v31  ;;  %v2412_v23 = vmul.f32 %v2406_v33, %v6550_v60  ;;  %v2414_v57 = vmul.f32 %v2406_v33, %v6551_v13 }
 0x408   : > { %2415 = vst [vmem:[%s256_s16] sm:$0xff] %v2407_v19  ;;  %2417 = vst [vmem:[%s256_s16 + $0x10] sm:$0xff] %v2409_v17 }
 0x409   : > { %2419 = vst [vmem:[%s256_s16 + $0x20] sm:$0xff] %v2411_v11  ;;  %2421 = vst [vmem:[%s256_s16 + $0x30] sm:$0xff] %v2413_v34 }
 0x40a   : > { %2416 = vst [vmem:[%s256_s16 + $0x8] sm:$0xff] %v2408_v42  ;;  %2418 = vst [vmem:[%s256_s16 + $0x18] sm:$0xff] %v2410_v38 }
 0x40b   : > { %2420 = vst [vmem:[%s256_s16 + $0x28] sm:$0xff] %v2412_v23  ;;  %2422 = vst [vmem:[%s256_s16 + $0x38] sm:$0xff] %v2414_v57 }
 0x40c   : > { %2854 = shalt.err (!%p2851_p11)
}
 0x40d   : > { %s2855_s2 = scalar_lea.hbm %s5916_s15, 1024  ;;  %s2859_s25 = scalar_lea.hbm %s6546_s13, 2048 }
 0x40e   : > { %p2856_p0 = scmp.ne.s32.totalorder %s5916_s15, %s2855_s2  ;;  %p2860_p6 = scmp.lt.u32.totalorder %s5916_s15, %s6546_s13 }
 0x40f   : > { %p2861_p3 = scmp.lt.u32.totalorder %s2859_s25, %s2855_s2  ;;  %p2863_p5 = scmp.lt.u32.totalorder %s2855_s2, %s5916_s15 }
 0x410   : > { %p2857_p2 = pnand %p2856_p0, %p6552_p12 }
 0x411   : > { %p2862_p13 = por %p2861_p3, %p2860_p6 }
 0x412   : > { %p2858_p7 = pneg %p2857_p2 }
 0x413   : > { %p2864_p8 = por %p2863_p5, %p2862_p13 }
 0x415   : > { %p2865_p9 = pnand %p2864_p8, %p2858_p7 }
 0x417   : > { %2868 = shalt.err (!%p2865_p9)
}
 0x418   : > { %s2966_s20 = smov 256   ;;  %s6553_s23 = smov 16  }
 0x419   : > { %2662 = dma.vmem_to_hbm [thread:$0]  (%p6552_p12), %s5922_s18, 1024, %s5916_s15, %s2424_s12, %s2966_s20, %s2966_s20, %s6553_s23  }
 0x41a PF: > { %s6554_s3 = sld [smem:[#allocation11_spill]]  ;;  %s6555_s14 = sld [smem:[#allocation19_spill]] }
 0x41b   : > { %s6556_s5 = sld [smem:[#allocation14_spill]] }
 0x420   : > { %s2452_s19 = sand.u32 1, %s6554_s3   ;;  %p6557_p10 = scmp.ne.s32.totalorder %s6555_s14, 0 }
 0x421   : > { %p6558_p1 = scmp.ge.s32.totalorder %s6556_s5, 2  ;;  %s2453_s26 = scalar_lea.sflag [#allocation4], %s2452_s19 }
 0x423   : > { %p2673_p4 = pnand %p6558_p1, %p6557_p10 }
 0x425   : > { %2894 = dma.done.wait (!%p2673_p4), %s2453_s26, 1024  }
 0x426   : > { %2896 = vsyncadd (!%p2673_p4), %s2453_s26, 4294966272  ;;  %s6559_s21 = sld [smem:[#allocation16_spill]]  ;;  %s6560_s18 = sld [smem:[#allocation12_spill]] }
 0x427   : > { %s6561_s19 = sld [smem:[#allocation13_spill]]  ;;  %s6562_s20 = sld [smem:[#allocation17_spill]] }
 0x42c   : > { %p19_p11 = scmp.ge.s32.totalorder %s6559_s21, 4  }
 0x42e   :  { %21 = sbr.rel (!%p19_p11) target bundleno = 13 (0xd), region = 103 }
 0x435   :  { %2458 = vsyncpa [#allocation3], 1 }
 0x436   :  { %2460 = vsyncpa [#allocation3 + $0x1], 1 }
 0x437   :  { %2461 = vsyncpa [#allocation4], 1 }
 0x438   :  { %2463 = vsyncpa [#allocation4 + $0x1], 1 }
 0x439   :  { %2464 = vsyncpa [#allocation5], 1 }
 0x43a   :  { %2466 = vsyncpa [#allocation5 + $0x1], 1 }

</bundles_post_ra>
